<compile_context>
chip_gen: v5e
topology: v5e:2x2
jax: 0.10.0
libtpu: 0.0.40
codegen_flags: <defaults>
</compile_context>

<pallas_src>
import functools

import jax
import jax.numpy as jnp
from jax.experimental import pallas as pl
from jax.experimental.pallas import tpu as pltpu

EPS = 1e-5                      # PyTorch LayerNorm default
MATMUL_DTYPE = jnp.bfloat16     # MXU-native on v5e/v6e/v7x; f32 accumulation kept
MAX_TILE_B = 512                # upper bound on batch rows per grid step


def _layer_norm(v, gamma, beta):
    mu = jnp.mean(v, axis=-1, keepdims=True)
    var = jnp.mean(jnp.square(v - mu), axis=-1, keepdims=True)
    return (v - mu) * jax.lax.rsqrt(var + EPS) * gamma + beta


def _dot(a, w):
    # w is already bf16 in HBM/VMEM; only the activation needs a cast.
    return jnp.dot(a.astype(MATMUL_DTYPE), w, preferred_element_type=jnp.float32)


def mlp_diffusion_kernel(
    t_ref,        # (TB, 1)   int32      tiled
    x_ref,        # (TB, D_in) f32       tiled
    te_tab_ref,   # (n_steps, 3U) f32    resident: LayerNorm'd embedding tables
    w0_ref,       # (D_in, U)  bf16      resident
    wsq_ref,      # (4, U, U)  bf16      resident: [w1, w2, wr0, wr1]
    bpack_ref,    # (11, U)    f32       resident: [b0,b1,b2, ng0..2, nb0..2, br0, br1]
    wout_ref,     # (U, N_pad) bf16      resident (lane-padded)
    bout_ref,     # (1, N_pad) f32       resident (lane-padded)
    out_ref,      # (TB, N_pad) f32
    *, num_units, n_steps,
):
    u = num_units
    tb = t_ref.shape[0]

    def brow(r):                      # static row slice -> (1, U)
        return bpack_ref[r:r + 1, :]

    # In-kernel step-embedding gather: one-hot @ table (K = n_steps, f32 MXU).
    step_ids = jax.lax.broadcasted_iota(jnp.int32, (tb, n_steps), 1)
    onehot = (step_ids == t_ref[...]).astype(jnp.float32)          # (TB, n_steps)
    te = jnp.dot(onehot, te_tab_ref[...],
                 preferred_element_type=jnp.float32)               # (TB, 3U)

    h = x_ref[...]
    for g in range(3):
        te_g = te[:, g * u:(g + 1) * u]
        w_g = w0_ref[...] if g == 0 else wsq_ref[g - 1]
        # i = 3g   : Linear, then + te
        h = _dot(h, w_g) + brow(g) + te_g
        # i = 3g+1 : ReLU, + te ;  i = 3g+2 : Dropout(identity), + te
        h = jnp.maximum(h, 0.0) + 2.0 * te_g
        # LayerNorm after the third op of the group.
        h = _layer_norm(h, brow(3 + g), brow(6 + g))

    # Residual block: Linear -> ReLU -> Linear, then add.
    r = jnp.maximum(_dot(h, wsq_ref[2]) + brow(9), 0.0)
    r = _dot(r, wsq_ref[3]) + brow(10)
    h = h + r

    # Output projection (lane-padded to N_pad).
    out_ref[...] = (_dot(h, wout_ref[...]) + bout_ref[...]).astype(out_ref.dtype)


def _precompute_te_table(params):
    """LayerNorm(Embedding) over the full (n_steps, U) tables -> (n_steps, 3U)."""
    emb = jnp.stack([params["emb0"], params["emb1"], params["emb2"]], axis=0)
    g = params["leg"][:, None, :]
    b = params["leb"][:, None, :]
    mu = jnp.mean(emb, axis=-1, keepdims=True)
    var = jnp.mean(jnp.square(emb - mu), axis=-1, keepdims=True)
    te = (emb - mu) * jax.lax.rsqrt(var + EPS) * g + b              # (3, S, U)
    s, u = emb.shape[1], emb.shape[2]
    return jnp.transpose(te, (1, 0, 2)).reshape(s, 3 * u)           # (S, 3U)


def pack_params(params):
    """One-time packing (call when params are created/updated, NOT per forward):
    bf16 weights in HBM, fused bias/LN buffer, LayerNorm'd step-embedding table,
    lane-padded output projection.  Returns (packed_dict, d_out)."""
    u = params["w0"].shape[1]
    d_out = params["wout"].shape[1]
    n_pad = max(128, ((d_out + 127) // 128) * 128)

    wsq = jnp.stack(
        [params["w1"], params["w2"], params["wr0"], params["wr1"]], axis=0)
    bpack = jnp.concatenate(
        [params["b0"], params["b1"], params["b2"],
         params["ng"], params["nb"],
         params["br0"], params["br1"]], axis=0)                     # (11, U)
    wout = jnp.zeros((u, n_pad), jnp.float32).at[:, :d_out].set(params["wout"])
    bout = jnp.zeros((1, n_pad), jnp.float32).at[:, :d_out].set(params["bout"])

    packed = dict(
        te_table=_precompute_te_table(params),                      # f32
        w0=params["w0"].astype(MATMUL_DTYPE),
        wsq=wsq.astype(MATMUL_DTYPE),
        bpack=bpack,                                                # f32
        wout=wout.astype(MATMUL_DTYPE),
        bout=bout,                                                  # f32
    )
    return packed, d_out


def _choose_tile_b(b, max_tile=MAX_TILE_B):
    """8-aligned batch tile, <= max_tile, and <= ceil(B/2) so the 'parallel'
    grid has >= 2 steps (keeps both v7x TensorCores busy) whenever B allows."""
    tb = min(max_tile, max(8, -(-b // 2)))
    tb = -(-tb // 8) * 8
    return min(tb, -(-b // 8) * 8)


@functools.partial(jax.jit, static_argnames=("d_out", "max_tile_b"))
def mlp_diffusion_forward(x, t, packed, d_out, max_tile_b=MAX_TILE_B):
    """x: (B, discrete+continuous) f32; t: (B, 1) int32; packed from pack_params."""
    b, d_in = x.shape
    u = packed["w0"].shape[1]
    n_steps = packed["te_table"].shape[0]
    n_pad = packed["wout"].shape[1]

    tb = _choose_tile_b(b, max_tile_b)
    grid = (pl.cdiv(b, tb),)

    kernel = functools.partial(mlp_diffusion_kernel, num_units=u, n_steps=n_steps)
    out = pl.pallas_call(
        kernel,
        out_shape=jax.ShapeDtypeStruct((b, n_pad), jnp.float32),
        grid_spec=pltpu.PrefetchScalarGridSpec(
            num_scalar_prefetch=0,
            grid=grid,
            in_specs=[
                pl.BlockSpec((tb, 1), lambda i: (i, 0)),            # t   (tiled)
                pl.BlockSpec((tb, d_in), lambda i: (i, 0)),         # x   (tiled)
                pl.BlockSpec((n_steps, 3 * u), lambda i: (0, 0)),   # te table
                pl.BlockSpec((d_in, u), lambda i: (0, 0)),          # w0
                pl.BlockSpec((4, u, u), lambda i: (0, 0, 0)),       # wsq
                pl.BlockSpec((11, u), lambda i: (0, 0)),            # bpack
                pl.BlockSpec((u, n_pad), lambda i: (0, 0)),         # wout
                pl.BlockSpec((1, n_pad), lambda i: (0, 0)),         # bout
            ],
            out_specs=pl.BlockSpec((tb, n_pad), lambda i: (i, 0)),
        ),
        compiler_params=pltpu.CompilerParams(
            dimension_semantics=("parallel",)),
    )(t, x, packed["te_table"], packed["w0"], packed["wsq"],
      packed["bpack"], packed["wout"], packed["bout"])
    return out[:, :d_out]


def init_params(key, discrete_dim, continuous_dim, n_steps, num_units):
    d_in = discrete_dim + continuous_dim
    u = num_units
    keys = jax.random.split(key, 19)
    scale = 0.05

    def rnd(k, shape):
        return scale * jax.random.normal(k, shape, dtype=jnp.float32)

    return dict(
        w0=rnd(keys[0], (d_in, u)), b0=rnd(keys[1], (1, u)),
        w1=rnd(keys[2], (u, u)),    b1=rnd(keys[3], (1, u)),
        w2=rnd(keys[4], (u, u)),    b2=rnd(keys[5], (1, u)),
        emb0=rnd(keys[6], (n_steps, u)),
        emb1=rnd(keys[7], (n_steps, u)),
        emb2=rnd(keys[8], (n_steps, u)),
        leg=1.0 + rnd(keys[9], (3, u)),  leb=rnd(keys[10], (3, u)),
        ng=1.0 + rnd(keys[11], (3, u)),  nb=rnd(keys[12], (3, u)),
        wr0=rnd(keys[13], (u, u)), br0=rnd(keys[14], (1, u)),
        wr1=rnd(keys[15], (u, u)), br1=rnd(keys[16], (1, u)),
        wout=rnd(keys[17], (u, d_in)), bout=rnd(keys[18], (1, d_in)),
    )


def reference_forward(x, t, params, matmul_dtype=jnp.float32):
    """Pure-JAX reference matching the PyTorch module (eval-mode dropout).
    matmul_dtype lets us mirror the kernel's bf16-input / f32-accum matmuls."""
    t_idx = jnp.squeeze(t, axis=-1)

    def ln(v, g, b_):
        mu = v.mean(-1, keepdims=True)
        var = ((v - mu) ** 2).mean(-1, keepdims=True)
        return (v - mu) / jnp.sqrt(var + EPS) * g + b_

    def mm(a, w):
        return jnp.dot(a.astype(matmul_dtype), w.astype(matmul_dtype),
                       preferred_element_type=jnp.float32)

    te = []
    for g, emb in enumerate((params["emb0"], params["emb1"], params["emb2"])):
        te.append(ln(emb[t_idx], params["leg"][g], params["leb"][g]))

    lin = ((params["w0"], params["b0"]), (params["w1"], params["b1"]),
           (params["w2"], params["b2"]))
    h = x
    for g in range(3):
        w, b_ = lin[g]
        h = mm(h, w) + b_
        h = h + te[g]
        h = jnp.maximum(h, 0.0)
        h = h + te[g]
        h = h + te[g]                        # dropout = identity
        h = ln(h, params["ng"][g], params["nb"][g])

    r = jnp.maximum(mm(h, params["wr0"]) + params["br0"], 0.0)
    r = mm(r, params["wr1"]) + params["br1"]
    h = h + r
    return mm(h, params["wout"]) + params["bout"]


if __name__ == "__main__":
    discrete_dim, continuous_dim = 4, 4
    n_steps = 16
    num_units = 128          # module default; lane-aligned
    batch = 256              # -> tile 128, 2 parallel grid steps
    d_in = discrete_dim + continuous_dim

    key = jax.random.PRNGKey(0)
    k_param, k_x, k_t = jax.random.split(key, 3)

    params = init_params(k_param, discrete_dim, continuous_dim, n_steps, num_units)
    packed, d_out = pack_params(params)     # hoisted one-time packing

    x = jax.random.normal(k_x, (batch, d_in), dtype=jnp.float32)
    t = jax.random.randint(k_t, (batch, 1), 0, n_steps, dtype=jnp.int32)

    out = jax.block_until_ready(mlp_diffusion_forward(x, t, packed, d_out=d_out))
    # Compare against a reference using the same bf16-input / f32-accum matmul
    # semantics (the f32-everywhere PyTorch numbers differ only by bf16 rounding).
    ref = reference_forward(x, t, params, matmul_dtype=MATMUL_DTYPE)

    assert out.shape == (batch, d_in), out.shape
    assert jnp.allclose(out, ref, atol=1e-2, rtol=1e-2), (
        float(jnp.max(jnp.abs(out - ref)))
    )
    print("KERNEL_OK")
</pallas_src>

<mosaic_0001>
module attributes {stable_mosaic.version = 11 : i64} {
  func.func @mlp_diffusion_kernel(%arg0: i32, %arg1: memref<128x1xi32, #tpu.memory_space<vmem>>, %arg2: memref<128x8xf32, #tpu.memory_space<vmem>>, %arg3: memref<16x384xf32, #tpu.memory_space<vmem>>, %arg4: memref<8x128xbf16, #tpu.memory_space<vmem>>, %arg5: memref<4x128x128xbf16, #tpu.memory_space<vmem>>, %arg6: memref<11x128xf32, #tpu.memory_space<vmem>>, %arg7: memref<128x128xbf16, #tpu.memory_space<vmem>>, %arg8: memref<1x128xf32, #tpu.memory_space<vmem>>, %arg9: memref<128x128xf32, #tpu.memory_space<vmem>>) attributes {dimension_semantics = [#tpu.dimension_semantics<parallel>], iteration_bounds = array<i64: 2>, scalar_prefetch = 0 : i64, scratch_operands = 0 : i64, tpu.core_type = #tpu.core_type<tc>, window_params = [{transform_indices = @transform_0, window_bounds = array<i64: 128, 1>}, {transform_indices = @transform_1, window_bounds = array<i64: 128, 8>}, {pipeline_mode = #tpu.pipeline_mode<synchronous>, transform_indices = @transform_2, window_bounds = array<i64: 16, 384>}, {pipeline_mode = #tpu.pipeline_mode<synchronous>, transform_indices = @transform_3, window_bounds = array<i64: 8, 128>}, {pipeline_mode = #tpu.pipeline_mode<synchronous>, transform_indices = @transform_4, window_bounds = array<i64: 4, 128, 128>}, {pipeline_mode = #tpu.pipeline_mode<synchronous>, transform_indices = @transform_5, window_bounds = array<i64: 11, 128>}, {pipeline_mode = #tpu.pipeline_mode<synchronous>, transform_indices = @transform_6, window_bounds = array<i64: 128, 128>}, {pipeline_mode = #tpu.pipeline_mode<synchronous>, transform_indices = @transform_7, window_bounds = array<i64: 1, 128>}, {transform_indices = @transform_8, window_bounds = array<i64: 128, 128>}]} {
    %0 = tpu.iota {dimensions = array<i32: 1>} : vector<128x16xi32>
    %c0 = arith.constant 0 : index
    %c0_0 = arith.constant 0 : index
    %1 = vector.load %arg1[%c0, %c0_0] : memref<128x1xi32, #tpu.memory_space<vmem>>, vector<128x1xi32>
    %2 = vector.broadcast %1 : vector<128x1xi32> to vector<128x16xi32>
    %3 = arith.cmpi eq, %0, %2 : vector<128x16xi32>
    %4 = arith.extui %3 : vector<128x16xi1> to vector<128x16xi32>
    %5 = arith.sitofp %4 : vector<128x16xi32> to vector<128x16xf32>
    %c0_1 = arith.constant 0 : index
    %c0_2 = arith.constant 0 : index
    %6 = vector.load %arg3[%c0_1, %c0_2] : memref<16x384xf32, #tpu.memory_space<vmem>>, vector<16x384xf32>
    %cst = arith.constant dense<0.000000e+00> : vector<128x384xf32>
    %7 = tpu.matmul %5, %6, %cst {dimension_numbers = #tpu.dot_dimension_numbers<[1], [0], [0], [1], [0, 0, 1, 1], [], []>} : vector<128x16xf32>, vector<16x384xf32>, vector<128x384xf32> -> vector<128x384xf32>
    %c0_3 = arith.constant 0 : index
    %c0_4 = arith.constant 0 : index
    %8 = vector.load %arg2[%c0_3, %c0_4] : memref<128x8xf32, #tpu.memory_space<vmem>>, vector<128x8xf32>
    %9 = vector.extract_strided_slice %7 {offsets = [0, 0], sizes = [128, 128], strides = [1, 1]} : vector<128x384xf32> to vector<128x128xf32>
    %c0_5 = arith.constant 0 : index
    %c0_6 = arith.constant 0 : index
    %10 = vector.load %arg4[%c0_5, %c0_6] : memref<8x128xbf16, #tpu.memory_space<vmem>>, vector<8x128xbf16>
    %11 = arith.truncf %8 : vector<128x8xf32> to vector<128x8xbf16>
    %cst_7 = arith.constant dense<0.000000e+00> : vector<128x128xf32>
    %12 = tpu.matmul %11, %10, %cst_7 {dimension_numbers = #tpu.dot_dimension_numbers<[1], [0], [0], [1], [0, 0, 1, 1], [], []>} : vector<128x8xbf16>, vector<8x128xbf16>, vector<128x128xf32> -> vector<128x128xf32>
    %c0_8 = arith.constant 0 : index
    %c0_9 = arith.constant 0 : index
    %13 = vector.load %arg6[%c0_8, %c0_9] : memref<11x128xf32, #tpu.memory_space<vmem>>, vector<1x128xf32>
    %14 = vector.broadcast %13 : vector<1x128xf32> to vector<128x128xf32>
    %15 = arith.addf %12, %14 : vector<128x128xf32>
    %16 = arith.addf %15, %9 : vector<128x128xf32>
    %cst_10 = arith.constant 0.000000e+00 : f32
    %17 = vector.broadcast %cst_10 : f32 to vector<128x128xf32>
    %18 = arith.maximumf %16, %17 : vector<128x128xf32>
    %cst_11 = arith.constant 2.000000e+00 : f32
    %19 = vector.broadcast %cst_11 : f32 to vector<128x128xf32>
    %20 = arith.mulf %19, %9 : vector<128x128xf32>
    %21 = arith.addf %18, %20 : vector<128x128xf32>
    %c3 = arith.constant 3 : index
    %c0_12 = arith.constant 0 : index
    %22 = vector.load %arg6[%c3, %c0_12] : memref<11x128xf32, #tpu.memory_space<vmem>>, vector<1x128xf32>
    %c6 = arith.constant 6 : index
    %c0_13 = arith.constant 0 : index
    %23 = vector.load %arg6[%c6, %c0_13] : memref<11x128xf32, #tpu.memory_space<vmem>>, vector<1x128xf32>
    %cst_14 = arith.constant dense<0.000000e+00> : vector<128xf32>
    %24 = vector.multi_reduction <add>, %21, %cst_14 [1] : vector<128x128xf32> to vector<128xf32>
    %25 = vector.shape_cast %24 : vector<128xf32> to vector<128x1xf32>
    %cst_15 = arith.constant 1.280000e+02 : f32
    %26 = vector.broadcast %cst_15 : f32 to vector<128x1xf32>
    %27 = arith.divf %25, %26 : vector<128x1xf32>
    %28 = vector.broadcast %27 : vector<128x1xf32> to vector<128x128xf32>
    %29 = arith.subf %21, %28 : vector<128x128xf32>
    %30 = arith.mulf %29, %29 : vector<128x128xf32>
    %cst_16 = arith.constant dense<0.000000e+00> : vector<128xf32>
    %31 = vector.multi_reduction <add>, %30, %cst_16 [1] : vector<128x128xf32> to vector<128xf32>
    %32 = vector.shape_cast %31 : vector<128xf32> to vector<128x1xf32>
    %cst_17 = arith.constant 1.280000e+02 : f32
    %33 = vector.broadcast %cst_17 : f32 to vector<128x1xf32>
    %34 = arith.divf %32, %33 : vector<128x1xf32>
    %35 = vector.broadcast %27 : vector<128x1xf32> to vector<128x128xf32>
    %36 = arith.subf %21, %35 : vector<128x128xf32>
    %cst_18 = arith.constant 9.99999974E-6 : f32
    %37 = vector.broadcast %cst_18 : f32 to vector<128x1xf32>
    %38 = arith.addf %34, %37 : vector<128x1xf32>
    %39 = math.rsqrt %38 : vector<128x1xf32>
    %40 = vector.broadcast %39 : vector<128x1xf32> to vector<128x128xf32>
    %41 = arith.mulf %36, %40 : vector<128x128xf32>
    %42 = vector.broadcast %22 : vector<1x128xf32> to vector<128x128xf32>
    %43 = arith.mulf %41, %42 : vector<128x128xf32>
    %44 = vector.broadcast %23 : vector<1x128xf32> to vector<128x128xf32>
    %45 = arith.addf %43, %44 : vector<128x128xf32>
    %46 = vector.extract_strided_slice %7 {offsets = [0, 128], sizes = [128, 128], strides = [1, 1]} : vector<128x384xf32> to vector<128x128xf32>
    %c0_19 = arith.constant 0 : index
    %c0_20 = arith.constant 0 : index
    %c0_21 = arith.constant 0 : index
    %47 = vector.load %arg5[%c0_19, %c0_20, %c0_21] : memref<4x128x128xbf16, #tpu.memory_space<vmem>>, vector<1x128x128xbf16>
    %48 = vector.shape_cast %47 : vector<1x128x128xbf16> to vector<128x128xbf16>
    %49 = arith.truncf %45 : vector<128x128xf32> to vector<128x128xbf16>
    %cst_22 = arith.constant dense<0.000000e+00> : vector<128x128xf32>
    %50 = tpu.matmul %49, %48, %cst_22 {dimension_numbers = #tpu.dot_dimension_numbers<[1], [0], [0], [1], [0, 0, 1, 1], [], []>} : vector<128x128xbf16>, vector<128x128xbf16>, vector<128x128xf32> -> vector<128x128xf32>
    %c1 = arith.constant 1 : index
    %c0_23 = arith.constant 0 : index
    %51 = vector.load %arg6[%c1, %c0_23] : memref<11x128xf32, #tpu.memory_space<vmem>>, vector<1x128xf32>
    %52 = vector.broadcast %51 : vector<1x128xf32> to vector<128x128xf32>
    %53 = arith.addf %50, %52 : vector<128x128xf32>
    %54 = arith.addf %53, %46 : vector<128x128xf32>
    %cst_24 = arith.constant 0.000000e+00 : f32
    %55 = vector.broadcast %cst_24 : f32 to vector<128x128xf32>
    %56 = arith.maximumf %54, %55 : vector<128x128xf32>
    %cst_25 = arith.constant 2.000000e+00 : f32
    %57 = vector.broadcast %cst_25 : f32 to vector<128x128xf32>
    %58 = arith.mulf %57, %46 : vector<128x128xf32>
    %59 = arith.addf %56, %58 : vector<128x128xf32>
    %c4 = arith.constant 4 : index
    %c0_26 = arith.constant 0 : index
    %60 = vector.load %arg6[%c4, %c0_26] : memref<11x128xf32, #tpu.memory_space<vmem>>, vector<1x128xf32>
    %c7 = arith.constant 7 : index
    %c0_27 = arith.constant 0 : index
    %61 = vector.load %arg6[%c7, %c0_27] : memref<11x128xf32, #tpu.memory_space<vmem>>, vector<1x128xf32>
    %cst_28 = arith.constant dense<0.000000e+00> : vector<128xf32>
    %62 = vector.multi_reduction <add>, %59, %cst_28 [1] : vector<128x128xf32> to vector<128xf32>
    %63 = vector.shape_cast %62 : vector<128xf32> to vector<128x1xf32>
    %cst_29 = arith.constant 1.280000e+02 : f32
    %64 = vector.broadcast %cst_29 : f32 to vector<128x1xf32>
    %65 = arith.divf %63, %64 : vector<128x1xf32>
    %66 = vector.broadcast %65 : vector<128x1xf32> to vector<128x128xf32>
    %67 = arith.subf %59, %66 : vector<128x128xf32>
    %68 = arith.mulf %67, %67 : vector<128x128xf32>
    %cst_30 = arith.constant dense<0.000000e+00> : vector<128xf32>
    %69 = vector.multi_reduction <add>, %68, %cst_30 [1] : vector<128x128xf32> to vector<128xf32>
    %70 = vector.shape_cast %69 : vector<128xf32> to vector<128x1xf32>
    %cst_31 = arith.constant 1.280000e+02 : f32
    %71 = vector.broadcast %cst_31 : f32 to vector<128x1xf32>
    %72 = arith.divf %70, %71 : vector<128x1xf32>
    %73 = vector.broadcast %65 : vector<128x1xf32> to vector<128x128xf32>
    %74 = arith.subf %59, %73 : vector<128x128xf32>
    %cst_32 = arith.constant 9.99999974E-6 : f32
    %75 = vector.broadcast %cst_32 : f32 to vector<128x1xf32>
    %76 = arith.addf %72, %75 : vector<128x1xf32>
    %77 = math.rsqrt %76 : vector<128x1xf32>
    %78 = vector.broadcast %77 : vector<128x1xf32> to vector<128x128xf32>
    %79 = arith.mulf %74, %78 : vector<128x128xf32>
    %80 = vector.broadcast %60 : vector<1x128xf32> to vector<128x128xf32>
    %81 = arith.mulf %79, %80 : vector<128x128xf32>
    %82 = vector.broadcast %61 : vector<1x128xf32> to vector<128x128xf32>
    %83 = arith.addf %81, %82 : vector<128x128xf32>
    %84 = vector.extract_strided_slice %7 {offsets = [0, 256], sizes = [128, 128], strides = [1, 1]} : vector<128x384xf32> to vector<128x128xf32>
    %c1_33 = arith.constant 1 : index
    %c0_34 = arith.constant 0 : index
    %c0_35 = arith.constant 0 : index
    %85 = vector.load %arg5[%c1_33, %c0_34, %c0_35] : memref<4x128x128xbf16, #tpu.memory_space<vmem>>, vector<1x128x128xbf16>
    %86 = vector.shape_cast %85 : vector<1x128x128xbf16> to vector<128x128xbf16>
    %87 = arith.truncf %83 : vector<128x128xf32> to vector<128x128xbf16>
    %cst_36 = arith.constant dense<0.000000e+00> : vector<128x128xf32>
    %88 = tpu.matmul %87, %86, %cst_36 {dimension_numbers = #tpu.dot_dimension_numbers<[1], [0], [0], [1], [0, 0, 1, 1], [], []>} : vector<128x128xbf16>, vector<128x128xbf16>, vector<128x128xf32> -> vector<128x128xf32>
    %c2 = arith.constant 2 : index
    %c0_37 = arith.constant 0 : index
    %89 = vector.load %arg6[%c2, %c0_37] : memref<11x128xf32, #tpu.memory_space<vmem>>, vector<1x128xf32>
    %90 = vector.broadcast %89 : vector<1x128xf32> to vector<128x128xf32>
    %91 = arith.addf %88, %90 : vector<128x128xf32>
    %92 = arith.addf %91, %84 : vector<128x128xf32>
    %cst_38 = arith.constant 0.000000e+00 : f32
    %93 = vector.broadcast %cst_38 : f32 to vector<128x128xf32>
    %94 = arith.maximumf %92, %93 : vector<128x128xf32>
    %cst_39 = arith.constant 2.000000e+00 : f32
    %95 = vector.broadcast %cst_39 : f32 to vector<128x128xf32>
    %96 = arith.mulf %95, %84 : vector<128x128xf32>
    %97 = arith.addf %94, %96 : vector<128x128xf32>
    %c5 = arith.constant 5 : index
    %c0_40 = arith.constant 0 : index
    %98 = vector.load %arg6[%c5, %c0_40] : memref<11x128xf32, #tpu.memory_space<vmem>>, vector<1x128xf32>
    %c8 = arith.constant 8 : index
    %c0_41 = arith.constant 0 : index
    %99 = vector.load %arg6[%c8, %c0_41] : memref<11x128xf32, #tpu.memory_space<vmem>>, vector<1x128xf32>
    %cst_42 = arith.constant dense<0.000000e+00> : vector<128xf32>
    %100 = vector.multi_reduction <add>, %97, %cst_42 [1] : vector<128x128xf32> to vector<128xf32>
    %101 = vector.shape_cast %100 : vector<128xf32> to vector<128x1xf32>
    %cst_43 = arith.constant 1.280000e+02 : f32
    %102 = vector.broadcast %cst_43 : f32 to vector<128x1xf32>
    %103 = arith.divf %101, %102 : vector<128x1xf32>
    %104 = vector.broadcast %103 : vector<128x1xf32> to vector<128x128xf32>
    %105 = arith.subf %97, %104 : vector<128x128xf32>
    %106 = arith.mulf %105, %105 : vector<128x128xf32>
    %cst_44 = arith.constant dense<0.000000e+00> : vector<128xf32>
    %107 = vector.multi_reduction <add>, %106, %cst_44 [1] : vector<128x128xf32> to vector<128xf32>
    %108 = vector.shape_cast %107 : vector<128xf32> to vector<128x1xf32>
    %cst_45 = arith.constant 1.280000e+02 : f32
    %109 = vector.broadcast %cst_45 : f32 to vector<128x1xf32>
    %110 = arith.divf %108, %109 : vector<128x1xf32>
    %111 = vector.broadcast %103 : vector<128x1xf32> to vector<128x128xf32>
    %112 = arith.subf %97, %111 : vector<128x128xf32>
    %cst_46 = arith.constant 9.99999974E-6 : f32
    %113 = vector.broadcast %cst_46 : f32 to vector<128x1xf32>
    %114 = arith.addf %110, %113 : vector<128x1xf32>
    %115 = math.rsqrt %114 : vector<128x1xf32>
    %116 = vector.broadcast %115 : vector<128x1xf32> to vector<128x128xf32>
    %117 = arith.mulf %112, %116 : vector<128x128xf32>
    %118 = vector.broadcast %98 : vector<1x128xf32> to vector<128x128xf32>
    %119 = arith.mulf %117, %118 : vector<128x128xf32>
    %120 = vector.broadcast %99 : vector<1x128xf32> to vector<128x128xf32>
    %121 = arith.addf %119, %120 : vector<128x128xf32>
    %c2_47 = arith.constant 2 : index
    %c0_48 = arith.constant 0 : index
    %c0_49 = arith.constant 0 : index
    %122 = vector.load %arg5[%c2_47, %c0_48, %c0_49] : memref<4x128x128xbf16, #tpu.memory_space<vmem>>, vector<1x128x128xbf16>
    %123 = vector.shape_cast %122 : vector<1x128x128xbf16> to vector<128x128xbf16>
    %124 = arith.truncf %121 : vector<128x128xf32> to vector<128x128xbf16>
    %cst_50 = arith.constant dense<0.000000e+00> : vector<128x128xf32>
    %125 = tpu.matmul %124, %123, %cst_50 {dimension_numbers = #tpu.dot_dimension_numbers<[1], [0], [0], [1], [0, 0, 1, 1], [], []>} : vector<128x128xbf16>, vector<128x128xbf16>, vector<128x128xf32> -> vector<128x128xf32>
    %c9 = arith.constant 9 : index
    %c0_51 = arith.constant 0 : index
    %126 = vector.load %arg6[%c9, %c0_51] : memref<11x128xf32, #tpu.memory_space<vmem>>, vector<1x128xf32>
    %127 = vector.broadcast %126 : vector<1x128xf32> to vector<128x128xf32>
    %128 = arith.addf %125, %127 : vector<128x128xf32>
    %cst_52 = arith.constant 0.000000e+00 : f32
    %129 = vector.broadcast %cst_52 : f32 to vector<128x128xf32>
    %130 = arith.maximumf %128, %129 : vector<128x128xf32>
    %c3_53 = arith.constant 3 : index
    %c0_54 = arith.constant 0 : index
    %c0_55 = arith.constant 0 : index
    %131 = vector.load %arg5[%c3_53, %c0_54, %c0_55] : memref<4x128x128xbf16, #tpu.memory_space<vmem>>, vector<1x128x128xbf16>
    %132 = vector.shape_cast %131 : vector<1x128x128xbf16> to vector<128x128xbf16>
    %133 = arith.truncf %130 : vector<128x128xf32> to vector<128x128xbf16>
    %cst_56 = arith.constant dense<0.000000e+00> : vector<128x128xf32>
    %134 = tpu.matmul %133, %132, %cst_56 {dimension_numbers = #tpu.dot_dimension_numbers<[1], [0], [0], [1], [0, 0, 1, 1], [], []>} : vector<128x128xbf16>, vector<128x128xbf16>, vector<128x128xf32> -> vector<128x128xf32>
    %c10 = arith.constant 10 : index
    %c0_57 = arith.constant 0 : index
    %135 = vector.load %arg6[%c10, %c0_57] : memref<11x128xf32, #tpu.memory_space<vmem>>, vector<1x128xf32>
    %136 = vector.broadcast %135 : vector<1x128xf32> to vector<128x128xf32>
    %137 = arith.addf %134, %136 : vector<128x128xf32>
    %138 = arith.addf %121, %137 : vector<128x128xf32>
    %c0_58 = arith.constant 0 : index
    %c0_59 = arith.constant 0 : index
    %139 = vector.load %arg7[%c0_58, %c0_59] : memref<128x128xbf16, #tpu.memory_space<vmem>>, vector<128x128xbf16>
    %140 = arith.truncf %138 : vector<128x128xf32> to vector<128x128xbf16>
    %cst_60 = arith.constant dense<0.000000e+00> : vector<128x128xf32>
    %141 = tpu.matmul %140, %139, %cst_60 {dimension_numbers = #tpu.dot_dimension_numbers<[1], [0], [0], [1], [0, 0, 1, 1], [], []>} : vector<128x128xbf16>, vector<128x128xbf16>, vector<128x128xf32> -> vector<128x128xf32>
    %c0_61 = arith.constant 0 : index
    %c0_62 = arith.constant 0 : index
    %142 = vector.load %arg8[%c0_61, %c0_62] : memref<1x128xf32, #tpu.memory_space<vmem>>, vector<1x128xf32>
    %143 = vector.broadcast %142 : vector<1x128xf32> to vector<128x128xf32>
    %144 = arith.addf %141, %143 : vector<128x128xf32>
    %c0_63 = arith.constant 0 : index
    %c0_64 = arith.constant 0 : index
    %145 = vector.load %arg9[%c0_63, %c0_64] : memref<128x128xf32, #tpu.memory_space<vmem>>, vector<128x128xf32>
    tpu.vector_store %arg9[%c0_63, %c0_64], %144 {strides = array<i32>} : memref<128x128xf32, #tpu.memory_space<vmem>>, vector<128x128xf32>,
    return
  }
  func.func @transform_0(%arg0: i32) -> (i32, i32) {
    %c0_i32 = arith.constant 0 : i32
    %c0_i32_0 = arith.constant 0 : i32
    return %arg0, %c0_i32 : i32, i32
  }
  func.func @transform_1(%arg0: i32) -> (i32, i32) {
    %c0_i32 = arith.constant 0 : i32
    %c0_i32_0 = arith.constant 0 : i32
    return %arg0, %c0_i32 : i32, i32
  }
  func.func @transform_2(%arg0: i32) -> (i32, i32) {
    %c0_i32 = arith.constant 0 : i32
    %c0_i32_0 = arith.constant 0 : i32
    %c0_i32_1 = arith.constant 0 : i32
    return %c0_i32, %c0_i32_0 : i32, i32
  }
  func.func @transform_3(%arg0: i32) -> (i32, i32) {
    %c0_i32 = arith.constant 0 : i32
    %c0_i32_0 = arith.constant 0 : i32
    %c0_i32_1 = arith.constant 0 : i32
    return %c0_i32, %c0_i32_0 : i32, i32
  }
  func.func @transform_4(%arg0: i32) -> (i32, i32, i32) {
    %c0_i32 = arith.constant 0 : i32
    %c0_i32_0 = arith.constant 0 : i32
    %c0_i32_1 = arith.constant 0 : i32
    %c0_i32_2 = arith.constant 0 : i32
    return %c0_i32, %c0_i32_0, %c0_i32_1 : i32, i32, i32
  }
  func.func @transform_5(%arg0: i32) -> (i32, i32) {
    %c0_i32 = arith.constant 0 : i32
    %c0_i32_0 = arith.constant 0 : i32
    %c0_i32_1 = arith.constant 0 : i32
    return %c0_i32, %c0_i32_0 : i32, i32
  }
  func.func @transform_6(%arg0: i32) -> (i32, i32) {
    %c0_i32 = arith.constant 0 : i32
    %c0_i32_0 = arith.constant 0 : i32
    %c0_i32_1 = arith.constant 0 : i32
    return %c0_i32, %c0_i32_0 : i32, i32
  }
  func.func @transform_7(%arg0: i32) -> (i32, i32) {
    %c0_i32 = arith.constant 0 : i32
    %c0_i32_0 = arith.constant 0 : i32
    %c0_i32_1 = arith.constant 0 : i32
    return %c0_i32, %c0_i32_0 : i32, i32
  }
  func.func @transform_8(%arg0: i32) -> (i32, i32) {
    %c0_i32 = arith.constant 0 : i32
    %c0_i32_0 = arith.constant 0 : i32
    return %arg0, %c0_i32 : i32, i32
  }
}

</mosaic_0001>

<bundles_post_ra>
// kernel: mlp_diffusion_forward.1
= control target key start
LH: loop header
LB: loop body
LE: loop exit
PB: predicated region body
PF: predicated region fallthrough
CT: control target
= control target key end

     0   :  { %s3323_s27 = smov 0   ;;  %s4551_s0 = inlined_call_operand.vmem [shape: s32[256,1], index: 0, kind: input, shape index: {}]   ;;  %s4552_s1 = inlined_call_operand.vmem [shape: f32[256,8], index: 1, kind: input, shape index: {}]   ;;  %s4553_s2 = inlined_call_operand.vmem [shape: f32[16,384], index: 2, kind: input, shape index: {}]   ;;  %s4554_s3 = inlined_call_operand.vmem [shape: bf16[8,128], index: 3, kind: input, shape index: {}]   ;;  %s4555_s4 = inlined_call_operand.vmem [shape: bf16[4,128,128], index: 4, kind: input, shape index: {}]   ;;  %s4556_s5 = inlined_call_operand.vmem [shape: f32[11,128], index: 5, kind: input, shape index: {}]   ;;  %s4557_s6 = inlined_call_operand.vmem [shape: bf16[128,128], index: 6, kind: input, shape index: {}]   ;;  %s4558_s7 = inlined_call_operand.vmem [shape: f32[1,128], index: 7, kind: input, shape index: {}]   ;;  %s4559_s8 = inlined_call_operand.vmem [shape: f32[256,128], index: 8, kind: output, shape index: {}]  }
   0x1 LB: > { %s2804_s28 = sadd.s32 4294967295, %s3273_s27   ;;  %p2808_p0 = scmp.ge.s32.totalorder %s3273_s27, 1  ;;  %s3273_s27 = sphi %s3323_s27, %s18_s27  }
   0x2   : > { %p274_p1 = scmp.lt.s32.totalorder %s3273_s27, 3 }
   0x4   : > { %p275_p2 = pnand %p2808_p0, %p274_p1 }
   0x5   : > { %s2809_s29 = sshll.u32 (!%p275_p2), %s2804_s28, 4 }
   0x6   : > { %278 = sbr.rel (%p275_p2) target bundleno = 2090 (0x82a), region = 52  ;;  %p314_p3 = scmp.lt.s32.totalorder (!%p275_p2), %s2809_s29, 31 }
   0xb   : > { %v3275_v0 = vmov 0   ;;  %s4563_s29 = smov (!%p314_p3, %s2809_s29), 31  ;;  %v449_v7 = vld [vmem:[%s4553_s2 + $0x18] sm:$0xff]  ;;  %v446_v18 = vld [vmem:[%s4553_s2] sm:$0xff]  ;;  %v332_v19 = vlaneseq  ;;  %vm748_vm0 = vcmask 1043456   ;;  %vm452_vm1 = vcmask 130048  }
   0xc   : > { %3155 = vset.pattern.permute.xlu1 %v3275_v0  ;;  %3154 = vset.pattern.permute.xlu0 %v3275_v0  ;;  %s3331_s30 = sshll.u32 %s4563_s29, 3  ;;  %v712_v20 = vld [vmem:[%s4554_s3] sm:$0xf]  ;;  %v3276_v24 = vmov 0.0   ;;  %v447_v39 = vld [vmem:[%s4553_s2 + $0x8] sm:$0xff]  ;;  %v448_v51 = vld [vmem:[%s4553_s2 + $0x10] sm:$0xff] }
   0xd   : > { %3156 = vset.pattern.permute.xlu2 %v3275_v0  ;;  %s3337_s11 = scalar_lea.vmem %s4551_s0, %s3331_s30  ;;  %515 = vmatpush.msra.mxu0 %v449_v7  ;;  %v750_v21 = vsel %vm748_vm0, %v712_v20, 0  ;;  %v3364_v22 = vand.u32 127, %v332_v19  ;;  %v450_v38 = vld [vmem:[%s4553_s2 + $0x20] sm:$0xff]  ;;  %s3422_s24 = scalar_lea.vmem %s4552_s1, %s3331_s30  ;;  %v451_v50 = vld [vmem:[%s4553_s2 + $0x28] sm:$0xff]  ;;  %vm723_vm15 = vcmask 64512  }
   0xe   : > { %v348_v1 = vld [vmem:[%s3337_s11 + $0x70] sm:$0xff]  ;;  %v346_v2 = vld [vmem:[%s3337_s11 + $0x60] sm:$0xff]  ;;  %v349_v4 = vld [vmem:[%s3337_s11 + $0x78] sm:$0xff]  ;;  %3139 = vmatpush.msra.mxu3 %v449_v7  ;;  %3137 = vmatpush.msra.mxu1 %v449_v7  ;;  %s4498_s15 = scalar_lea.vmem %s4559_s8, %s3331_s30 }
   0xf   : > { %393 = vperm.xlu1 %3155, %v348_v1   ;;  %387 = vperm.xlu0 %3154, %v346_v2   ;;  %v334_v3 = vld [vmem:[%s3337_s11] sm:$0xff]  ;;  %v347_v5 = vld [vmem:[%s3337_s11 + $0x68] sm:$0xff]  ;;  %v337_v8 = vld [vmem:[%s3337_s11 + $0x18] sm:$0xff] }
  0x10   : > { %351 = vperm.xlu2 %3156, %v334_v3   ;;  %v335_v6 = vld [vmem:[%s3337_s11 + $0x8] sm:$0xff]  ;;  %3138 = vmatpush.msra.mxu2 %v449_v7  ;;  %v336_v9 = vld [vmem:[%s3337_s11 + $0x10] sm:$0xff]  ;;  %v338_v10 = vld [vmem:[%s3337_s11 + $0x20] sm:$0xff] }
  0x11   : > { %v340_v11 = vld [vmem:[%s3337_s11 + $0x30] sm:$0xff]  ;;  %v339_v12 = vld [vmem:[%s3337_s11 + $0x28] sm:$0xff]  ;;  %v341_v13 = vld [vmem:[%s3337_s11 + $0x38] sm:$0xff]  ;;  %516 = vmatpush.msra.mxu0 %v446_v18  ;;  %3142 = vmatpush.msra.mxu3 %v446_v18 }
  0x12   : > { %v343_v14 = vld [vmem:[%s3337_s11 + $0x48] sm:$0xff]  ;;  %v342_v15 = vld [vmem:[%s3337_s11 + $0x40] sm:$0xff]  ;;  %v344_v16 = vld [vmem:[%s3337_s11 + $0x50] sm:$0xff]  ;;  %3140 = vmatpush.msra.mxu1 %v446_v18  ;;  %3141 = vmatpush.msra.mxu2 %v446_v18 }
  0x13   : > { %v345_v17 = vld [vmem:[%s3337_s11 + $0x58] sm:$0xff]  ;;  %759 = vmatpush.bf16.msrb.mxu3 %v750_v21  ;;  %v696_v52 = vld [vmem:[%s3422_s24] sm:$0xff]  ;;  %v697_v53 = vld [vmem:[%s3422_s24 + $0x8] sm:$0xff] }
  0x14   : > { %580 = vmatpush.msrb.mxu1 %v450_v38  ;;  %645 = vmatpush.msrb.mxu2 %v451_v50  ;;  %v713_v55 = vpack.c.bf16 %v697_v53, %v696_v52  ;;  %v698_v63 = vld [vmem:[%s3422_s24 + $0x10] sm:$0xff]  ;;  %v699_v0 = vld [vmem:[%s3422_s24 + $0x18] sm:$0xff]  ;;  %v700_v2 = vld [vmem:[%s3422_s24 + $0x20] sm:$0xff] }
  0x15   : > { %v714_v1 = vpack.c.bf16 %v699_v0, %v698_v63  ;;  %v701_v3 = vld [vmem:[%s3422_s24 + $0x28] sm:$0xff]  ;;  %v710_v18 = vld [vmem:[%s3422_s24 + $0x70] sm:$0xff]  ;;  %v711_v19 = vld [vmem:[%s3422_s24 + $0x78] sm:$0xff] }
  0x16   : > { %581 = vmatpush.msrb.mxu1 %v447_v39  ;;  %646 = vmatpush.msrb.mxu2 %v448_v51  ;;  %v720_v21 = vpack.c.bf16 %v711_v19, %v710_v18 }
  0x17   : > { %396 = vperm.xlu1 %3155, %v349_v4   ;;  %390 = vperm.xlu0 %3154, %v347_v5   ;;  %v715_v4 = vpack.c.bf16 %v701_v3, %v700_v2  ;;  %v702_v5 = vld [vmem:[%s3422_s24 + $0x30] sm:$0xff] }
  0x18   : > { %354 = vperm.xlu2 %3156, %v335_v6   ;;  %v703_v6 = vld [vmem:[%s3422_s24 + $0x38] sm:$0xff] }
  0x19   : > { %v716_v7 = vpack.c.bf16 %v703_v6, %v702_v5 }
  0x1f   : > { %360 = vperm.xlu1 %3155, %v337_v8   ;;  %357 = vperm.xlu0 %3154, %v336_v9   ;;  %v704_v8 = vld [vmem:[%s3422_s24 + $0x40] sm:$0xff]  ;;  %v705_v9 = vld [vmem:[%s3422_s24 + $0x48] sm:$0xff] }
  0x20   : > { %363 = vperm.xlu2 %3156, %v338_v10   ;;  %v717_v10 = vpack.c.bf16 %v705_v9, %v704_v8 }
  0x27   : > { %369 = vperm.xlu1 %3155, %v340_v11   ;;  %366 = vperm.xlu0 %3154, %v339_v12   ;;  %v706_v11 = vld [vmem:[%s3422_s24 + $0x50] sm:$0xff]  ;;  %v707_v12 = vld [vmem:[%s3422_s24 + $0x58] sm:$0xff] }
  0x28   : > { %372 = vperm.xlu2 %3156, %v341_v13   ;;  %v718_v13 = vpack.c.bf16 %v707_v12, %v706_v11 }
  0x2f   : > { %378 = vperm.xlu1 %3155, %v343_v14   ;;  %375 = vperm.xlu0 %3154, %v342_v15   ;;  %v708_v14 = vld [vmem:[%s3422_s24 + $0x60] sm:$0xff]  ;;  %v709_v15 = vld [vmem:[%s3422_s24 + $0x68] sm:$0xff] }
  0x30   : > { %381 = vperm.xlu2 %3156, %v344_v16   ;;  %v719_v16 = vpack.c.bf16 %v709_v15, %v708_v14 }
  0x37   : > { %384 = vperm.xlu0 %3154, %v345_v17  }
  0x6a   : > { %v352_v23 = vpop.permute.xlu2 %351 }
  0x6b   : > { %vm398_vm2 = vcmp.eq.s32.totalorder %v3364_v22, %v352_v23 }
  0x6c   : > { %v3368_v25 = vsel %vm398_vm2, 1.0, %v3276_v24 }
  0x6d   : > { %2831 = vmatmul.msk.f32.vlgmr.msra.gmra.mxu0 %vm452_vm1, %v3368_v25 }
  0x72   : > { %v355_v26 = vpop.permute.xlu2 %354 }
  0x73   : > { %vm399_vm3 = vcmp.eq.s32.totalorder %v3364_v22, %v355_v26 }
  0x74   : > { %v3374_v27 = vsel %vm399_vm3, 1.0, %v3276_v24 }
  0x75   : > { %2832 = vmatmul.msk.f32.gmra.mxu0 %vm452_vm1, %v3374_v27 }
  0x7a   : > { %v364_v28 = vpop.permute.xlu2 %363 }
  0x7b   : > { %vm402_vm4 = vcmp.eq.s32.totalorder %v3364_v22, %v364_v28 }
  0x7c   : > { %v3380_v29 = vsel %vm402_vm4, 1.0, %v3276_v24 }
  0x7d   : > { %2835 = vmatmul.msk.f32.vlgmr.msra.gmra.mxu1 %vm452_vm1, %v3380_v29 }
  0x81   : > { %v394_v30 = vpop.permute.xlu1 %393  ;;  %v388_v31 = vpop.permute.xlu0 %387 }
  0x82   : > { %vm410_vm5 = vcmp.eq.s32.totalorder %v3364_v22, %v388_v31  ;;  %v373_v33 = vpop.permute.xlu2 %372  ;;  %vm412_vm8 = vcmp.eq.s32.totalorder %v3364_v22, %v394_v30 }
  0x83   : > { %v3386_v32 = vsel %vm410_vm5, 1.0, %v3276_v24  ;;  %v3408_v41 = vsel %vm412_vm8, 1.0, %v3276_v24  ;;  %vm405_vm0 = vcmp.eq.s32.totalorder %v3364_v22, %v373_v33 }
  0x84   : > { %2843 = vmatmul.msk.f32.vlgmr.msra.gmra.mxu3 %vm452_vm1, %v3386_v32  ;;  %v2822_v59 = vsel %vm405_vm0, 1.0, %v3276_v24 }
  0x89   : > { %v397_v34 = vpop.permute.xlu1 %396  ;;  %v391_v35 = vpop.permute.xlu0 %390 }
  0x8a   : > { %vm411_vm6 = vcmp.eq.s32.totalorder %v3364_v22, %v391_v35  ;;  %v382_v37 = vpop.permute.xlu2 %381  ;;  %vm413_vm11 = vcmp.eq.s32.totalorder %v3364_v22, %v397_v34 }
  0x8b   : > { %v3392_v36 = vsel %vm411_vm6, 1.0, %v3276_v24  ;;  %vm408_vm7 = vcmp.eq.s32.totalorder %v3364_v22, %v382_v37  ;;  %v3427_v49 = vsel %vm413_vm11, 1.0, %v3276_v24 }
  0x8c   : > { %2844 = vmatmul.msk.f32.gmra.mxu3 %vm452_vm1, %v3392_v36  ;;  %v3404_v40 = vsel %vm408_vm7, 1.0, %v3276_v24 }
  0x91   : > { %v361_v42 = vpop.permute.xlu1 %360  ;;  %v358_v43 = vpop.permute.xlu0 %357 }
  0x92   : > { %vm400_vm9 = vcmp.eq.s32.totalorder %v3364_v22, %v358_v43  ;;  %vm401_vm10 = vcmp.eq.s32.totalorder %v3364_v22, %v361_v42 }
  0x93   : > { %v2817_v44 = vsel %vm400_vm9, 1.0, %v3276_v24  ;;  %v2818_v46 = vsel %vm401_vm10, 1.0, %v3276_v24 }
  0x94   : > { %2833 = vmatmul.msk.f32.gmra.mxu0 %vm452_vm1, %v2817_v44  ;;  %2845 = vmatmul.msk.f32.gmra.mxu3 %vm452_vm1, %v3408_v41 }
  0x99   : > { %v367_v45 = vpop.permute.xlu0 %366  ;;  %v370_v47 = vpop.permute.xlu1 %369 }
  0x9a   : > { %vm403_vm12 = vcmp.eq.s32.totalorder %v3364_v22, %v367_v45  ;;  %vm404_vm13 = vcmp.eq.s32.totalorder %v3364_v22, %v370_v47 }
  0x9b   : > { %v2820_v48 = vsel %vm403_vm12, 1.0, %v3276_v24  ;;  %v2821_v56 = vsel %vm404_vm13, 1.0, %v3276_v24 }
  0x9c   : > { %2834 = vmatmul.msk.f32.gmra.mxu0 %vm452_vm1, %v2818_v46  ;;  %2836 = vmatmul.msk.f32.gmra.mxu1 %vm452_vm1, %v2820_v48 }
  0x9d   : > { %2846 = vmatmul.msk.f32.gmra.mxu3 %vm452_vm1, %v3427_v49 }
  0xa1   : > { %v376_v54 = vpop.permute.xlu0 %375  ;;  %v379_v58 = vpop.permute.xlu1 %378 }
  0xa2   : > { %vm406_vm14 = vcmp.eq.s32.totalorder %v3364_v22, %v376_v54  ;;  %vm407_vm2 = vcmp.eq.s32.totalorder %v3364_v22, %v379_v58 }
  0xa3   : > { %v2823_v57 = vsel %vm406_vm14, 1.0, %v3276_v24  ;;  %v2824_v61 = vsel %vm407_vm2, 1.0, %v3276_v24 }
  0xa4   : > { %2837 = vmatmul.msk.f32.gmra.mxu1 %vm452_vm1, %v2821_v56  ;;  %2839 = vmatmul.msk.f32.vlgmr.msra.gmra.mxu2 %vm452_vm1, %v2823_v57 }
  0xa5   : > { %2879 = vmatmul.msk.bf16.vlgmr.msrb.gmra.mxu3 %vm723_vm15, %v713_v55 }
  0xa9   : > { %v385_v60 = vpop.permute.xlu0 %384 }
  0xaa   : > { %vm409_vm3 = vcmp.eq.s32.totalorder %v3364_v22, %v385_v60 }
  0xab   : > { %v2826_v62 = vsel %vm409_vm3, 1.0, %v3276_v24 }
  0xac   : > { %2838 = vmatmul.msk.f32.gmra.mxu1 %vm452_vm1, %v2822_v59  ;;  %2840 = vmatmul.msk.f32.gmra.mxu2 %vm452_vm1, %v2824_v61 }
  0xb4   : > { %2841 = vmatmul.msk.f32.gmra.mxu2 %vm452_vm1, %v3404_v40  ;;  %2847 = vmatmul.msk.f32.vlgmr.msrb.gmra.mxu1 %vm452_vm1, %v3368_v25 }
  0xb5   : > { %2880 = vmatmul.msk.bf16.gmra.mxu3 %vm723_vm15, %v714_v1 }
  0xbc   : > { %2842 = vmatmul.msk.f32.gmra.mxu2 %vm452_vm1, %v2826_v62  ;;  %2848 = vmatmul.msk.f32.gmra.mxu1 %vm452_vm1, %v3374_v27 }
  0xc4   : > { %2849 = vmatmul.msk.f32.gmra.mxu1 %vm452_vm1, %v2817_v44  ;;  %2863 = vmatmul.msk.f32.vlgmr.msrb.gmra.mxu2 %vm452_vm1, %v3368_v25  ;;  %v3531_v25 = vld [vmem:[%s4556_s5] ss:$0 sm:$0xff] }
  0xc5   : > { %2881 = vmatmul.msk.bf16.gmra.mxu3 %vm723_vm15, %v715_v4 }
  0xcc   : > { %2850 = vmatmul.msk.f32.gmra.mxu1 %vm452_vm1, %v2818_v46  ;;  %2864 = vmatmul.msk.f32.gmra.mxu2 %vm452_vm1, %v3374_v27 }
  0xd4   : > { %2851 = vmatmul.msk.f32.gmra.mxu1 %vm452_vm1, %v3380_v29  ;;  %2865 = vmatmul.msk.f32.gmra.mxu2 %vm452_vm1, %v2817_v44 }
  0xd5   : > { %2882 = vmatmul.msk.bf16.gmra.mxu3 %vm723_vm15, %v716_v7 }
  0xdc   : > { %2852 = vmatmul.msk.f32.gmra.mxu1 %vm452_vm1, %v2820_v48  ;;  %2866 = vmatmul.msk.f32.gmra.mxu2 %vm452_vm1, %v2818_v46 }
  0xe4   : > { %2853 = vmatmul.msk.f32.gmra.mxu1 %vm452_vm1, %v2821_v56  ;;  %2867 = vmatmul.msk.f32.gmra.mxu2 %vm452_vm1, %v3380_v29 }
  0xe5   : > { %2883 = vmatmul.msk.bf16.gmra.mxu3 %vm723_vm15, %v717_v10  ;;  %v3277_v10 = vmov 128.0  }
  0xe6   : > { %3169 = vrcp.f32 %v3277_v10 }
  0xea   : > { %v518_v24 = vpop.f32.mrf.mxu0 }
  0xeb   : > { %v833_v29 = vmul.f32 2.0, %v518_v24 }
  0xec   : > { %2854 = vmatmul.msk.f32.gmra.mxu1 %vm452_vm1, %v2822_v59  ;;  %2868 = vmatmul.msk.f32.gmra.mxu2 %vm452_vm1, %v2820_v48  ;;  %v3170_v11 = vpop.eup %3169 }
  0xed   : > { %v900_v12 = vmul.f32 128.0, %v3170_v11 }
  0xef   : > { %v901_v14 = vsub.f32 1.0, %v900_v12 }
  0xf1   : > { %v902_v15 = vmul.f32 %v3170_v11, %v901_v14 }
  0xf2   : > { %v521_v31 = vpop.f32.mrf.mxu0 }
  0xf3   : > { %v834_v38 = vmul.f32 2.0, %v521_v31  ;;  %v903_v18 = vadd.f32 %v3170_v11, %v902_v15 }
  0xf4   : > { %2855 = vmatmul.msk.f32.gmra.mxu1 %vm452_vm1, %v2823_v57  ;;  %2869 = vmatmul.msk.f32.gmra.mxu2 %vm452_vm1, %v2821_v56 }
  0xf5   : > { %2884 = vmatmul.msk.bf16.gmra.mxu3 %vm723_vm15, %v718_v13 }
  0xfa   : > { %v530_v53 = vpop.f32.mrf.mxu1 }
  0xfc   : > { %2856 = vmatmul.msk.f32.gmra.mxu1 %vm452_vm1, %v2824_v61  ;;  %2870 = vmatmul.msk.f32.gmra.mxu2 %vm452_vm1, %v2822_v59 }
 0x104   : > { %2857 = vmatmul.msk.f32.gmra.mxu1 %vm452_vm1, %v3404_v40  ;;  %2871 = vmatmul.msk.f32.gmra.mxu2 %vm452_vm1, %v2823_v57  ;;  %v837_v57 = vmul.f32 2.0, %v530_v53 }
 0x105   : > { %2885 = vmatmul.msk.bf16.gmra.mxu3 %vm723_vm15, %v719_v16 }
 0x107   : > { %v3504_v17 = vpop.f32.mrf.mxu3 }
 0x10c   : > { %2858 = vmatmul.msk.f32.gmra.mxu1 %vm452_vm1, %v2826_v62  ;;  %2872 = vmatmul.msk.f32.gmra.mxu2 %vm452_vm1, %v2824_v61 }
 0x10f   : > { %v3510_v20 = vpop.f32.mrf.mxu3 }
 0x114   : > { %2859 = vmatmul.msk.f32.gmra.mxu1 %vm452_vm1, %v3386_v32  ;;  %2873 = vmatmul.msk.f32.gmra.mxu2 %vm452_vm1, %v3404_v40  ;;  %v524_v40 = vpop.f32.mrf.mxu0 }
 0x115   : > { %2886 = vmatmul.msk.bf16.gmra.mxu3 %vm723_vm15, %v720_v21  ;;  %v835_v44 = vmul.f32 2.0, %v524_v40 }
 0x117   : > { %v3517_v22 = vpop.f32.mrf.mxu3 }
 0x119   : > { %v533_v60 = vpop.f32.mrf.mxu1 }
 0x11a   : > { %v838_v1 = vmul.f32 2.0, %v533_v60 }
 0x11c   : > { %2860 = vmatmul.msk.f32.gmra.mxu1 %vm452_vm1, %v3392_v36  ;;  %2874 = vmatmul.msk.f32.gmra.mxu2 %vm452_vm1, %v2826_v62  ;;  %v527_v48 = vpop.f32.mrf.mxu0 }
 0x11d   : > { %v836_v52 = vmul.f32 2.0, %v527_v48 }
 0x120   : > { %v3522_v23 = vpop.f32.mrf.mxu3 }
 0x121   : > { %v536_v5 = vpop.f32.mrf.mxu1 }
 0x122   : > { %v839_v7 = vmul.f32 2.0, %v536_v5 }
 0x124   : > { %2861 = vmatmul.msk.f32.gmra.mxu1 %vm452_vm1, %v3408_v41  ;;  %2875 = vmatmul.msk.f32.gmra.mxu2 %vm452_vm1, %v3386_v32 }
 0x128   : > { %v761_v26 = vpop.f32.mrf.mxu3 }
 0x129   : > { %v762_v27 = vadd.f32 %v3531_v25, %v761_v26 }
 0x12b   : > { %v801_v28 = vadd.f32 %v762_v27, %v518_v24 }
 0x12c   : > { %2862 = vmatmul.msk.f32.gmra.mxu1 %vm452_vm1, %v3427_v49  ;;  %2876 = vmatmul.msk.f32.gmra.mxu2 %vm452_vm1, %v3392_v36 }
 0x12d   : > { %v817_v30 = vmax.f32 %v801_v28, 0.0  ;;  %v539_v28 = vpop.f32.mrf.mxu1 }
 0x12f   : > { %v3538_v33 = vadd.f32 %v833_v29, %v817_v30 }
 0x130   : > { %v763_v32 = vpop.f32.mrf.mxu3 }
 0x131   : > { %v764_v34 = vadd.f32 %v3531_v25, %v763_v32  ;;  %867 = vadd.xlane.f32.xlu1 %v3538_v33  ;;  %v542_v32 = vpop.f32.mrf.mxu2 }
 0x133   : > { %v802_v35 = vadd.f32 %v764_v34, %v521_v31 }
 0x134   : > { %2877 = vmatmul.msk.f32.gmra.mxu2 %vm452_vm1, %v3408_v41 }
 0x135   : > { %v818_v37 = vmax.f32 %v802_v35, 0.0 }
 0x137   : > { %v3544_v39 = vadd.f32 %v834_v38, %v818_v37 }
 0x138   : > { %v766_v36 = vpop.f32.mrf.mxu3 }
 0x139   : > { %v767_v42 = vadd.f32 %v3531_v25, %v766_v36  ;;  %869 = vadd.xlane.f32.xlu2 %v3544_v39  ;;  %v840_v36 = vmul.f32 2.0, %v539_v28 }
 0x13b   : > { %v803_v43 = vadd.f32 %v767_v42, %v524_v40 }
 0x13c   : > { %2878 = vmatmul.msk.f32.gmra.mxu2 %vm452_vm1, %v3427_v49  ;;  %vm904_vm1 = vweird.f32 %v3170_v11 }
 0x13d   : > { %v819_v45 = vmax.f32 %v803_v43, 0.0  ;;  %v3569_v19 = vsel %vm904_vm1, %v3170_v11, %v903_v18 }
 0x13f   : > { %v3550_v46 = vadd.f32 %v835_v44, %v819_v45  ;;  %v545_v45 = vpop.f32.mrf.mxu2 }
 0x140   : > { %v768_v47 = vpop.f32.mrf.mxu3 }
 0x141   : > { %v769_v41 = vadd.f32 %v3531_v25, %v768_v47  ;;  %871 = vadd.xlane.f32.xlu0 %v3550_v46 }
 0x143   : > { %v804_v50 = vadd.f32 %v769_v41, %v527_v48 }
 0x145   : > { %v820_v51 = vmax.f32 %v804_v50, 0.0 }
 0x147   : > { %v3554_v54 = vadd.f32 %v836_v52, %v820_v51 }
 0x148   : > { %v771_v55 = vpop.f32.mrf.mxu3 }
 0x149   : > { %v772_v56 = vadd.f32 %v3531_v25, %v771_v55  ;;  %873 = vadd.xlane.f32.xlu2 %v3554_v54 }
 0x14b   : > { %v805_v49 = vadd.f32 %v772_v56, %v530_v53 }
 0x14d   : > { %v821_v58 = vmax.f32 %v805_v49, 0.0 }
 0x14f   : > { %v3558_v59 = vadd.f32 %v837_v57, %v821_v58 }
 0x150   : > { %v773_v61 = vpop.f32.mrf.mxu3 }
 0x151   : > { %v774_v62 = vadd.f32 %v3531_v25, %v773_v61  ;;  %875 = vadd.xlane.f32.xlu1 %v3558_v59  ;;  %v548_v61 = vpop.f32.mrf.mxu2 }
 0x153   : > { %v806_v63 = vadd.f32 %v774_v62, %v533_v60  ;;  %v842_v62 = vmul.f32 2.0, %v545_v45 }
 0x155   : > { %v822_v0 = vmax.f32 %v806_v63, 0.0 }
 0x157   : > { %v3562_v2 = vadd.f32 %v838_v1, %v822_v0 }
 0x158   : > { %v776_v3 = vpop.f32.mrf.mxu3 }
 0x159   : > { %v777_v4 = vadd.f32 %v3531_v25, %v776_v3  ;;  %877 = vadd.xlane.f32.xlu2 %v3562_v2  ;;  %v551_v10 = vpop.f32.mrf.mxu2 }
 0x15b   : > { %v807_v6 = vadd.f32 %v777_v4, %v536_v5 }
 0x15d   : > { %v823_v8 = vmax.f32 %v807_v6, 0.0 }
 0x15f   : > { %v3566_v9 = vadd.f32 %v839_v7, %v823_v8  ;;  %v843_v8 = vmul.f32 2.0, %v548_v61 }
 0x160   : > { %v778_v13 = vpop.f32.mrf.mxu3 }
 0x161   : > { %879 = vadd.xlane.f32.xlu2 %v3566_v9  ;;  %v779_v24 = vadd.f32 %v3531_v25, %v778_v13 }
 0x163   : > { %v808_v30 = vadd.f32 %v779_v24, %v539_v28 }
 0x165   : > { %v824_v38 = vmax.f32 %v808_v30, 0.0 }
 0x167   : > { %v3583_v42 = vadd.f32 %v840_v36, %v824_v38 }
 0x168   : > { %v781_v16 = vpop.f32.mrf.mxu3 }
 0x169   : > { %v782_v35 = vadd.f32 %v3531_v25, %v781_v16 }
 0x170   : > { %v783_v29 = vpop.f32.mrf.mxu3 }
 0x171   : > { %v784_v48 = vadd.f32 %v3531_v25, %v783_v29 }
 0x173   : > { %v810_v52 = vadd.f32 %v784_v48, %v545_v45  ;;  %v846_v45 = vmul.f32 2.0, %v3510_v20 }
 0x175   : > { %v826_v57 = vmax.f32 %v810_v52, 0.0  ;;  %v3100_v52 = vld [vmem:[%s4555_s4 + $0x18] sm:$0xff] }
 0x177   : > { %v3603_v0 = vadd.f32 %v842_v62, %v826_v57 }
 0x178   : > { %v786_v44 = vpop.f32.mrf.mxu3 }
 0x179   : > { %v787_v58 = vadd.f32 %v3531_v25, %v786_v44 }
 0x17b   : > { %v811_v63 = vadd.f32 %v787_v58, %v548_v61  ;;  %v3097_v58 = vld [vmem:[%s4555_s4] sm:$0xff] }
 0x17d   : > { %v827_v4 = vmax.f32 %v811_v63, 0.0 }
 0x17f   : > { %v3613_v12 = vadd.f32 %v843_v8, %v827_v4 }
 0x180   : > { %v788_v56 = vpop.f32.mrf.mxu3 }
 0x181   : > { %v789_v5 = vadd.f32 %v3531_v25, %v788_v56  ;;  %v3098_v56 = vld [vmem:[%s4555_s4 + $0x8] sm:$0xff] }
 0x183   : > { %v812_v11 = vadd.f32 %v789_v5, %v551_v10 }
 0x185   : > { %v828_v15 = vmax.f32 %v812_v11, 0.0 }
 0x188   : > { %v791_v7 = vpop.f32.mrf.mxu3 }
 0x189   : > { %v792_v16 = vadd.f32 %v3531_v25, %v791_v7 }
 0x190   : > { %v793_v24 = vpop.f32.mrf.mxu3 }
 0x1a4   : > { %v868_v21 = vpop.xlane.xlu1 %867 }
 0x1a5   : > { %v906_v26 = vmul.f32 %v3569_v19, %v868_v21 }
 0x1a7   : > { %v3574_v27 = vsub.f32 %v3538_v33, %v906_v26  ;;  %v809_v33 = vadd.f32 %v782_v35, %v542_v32  ;;  %v813_v26 = vadd.f32 %v792_v16, %v3504_v17 }
 0x1a9   : > { %v938_v31 = vmul.f32 %v3574_v27, %v3574_v27  ;;  %v825_v41 = vmax.f32 %v809_v33, 0.0  ;;  %v796_v33 = vpop.f32.mrf.mxu3 }
 0x1aa   : > { %v797_v44 = vadd.f32 %v3531_v25, %v796_v33 }
 0x1ab   : > { %954 = vadd.xlane.f32.xlu0 %v938_v31  ;;  %v829_v31 = vmax.f32 %v813_v26, 0.0 }
 0x1ac   : > { %v870_v34 = vpop.xlane.xlu2 %869 }
 0x1ad   : > { %v907_v37 = vmul.f32 %v3569_v19, %v870_v34 }
 0x1af   : > { %v3581_v40 = vsub.f32 %v3544_v39, %v907_v37  ;;  %v841_v39 = vmul.f32 2.0, %v542_v32  ;;  %v794_v32 = vadd.f32 %v3531_v25, %v793_v24 }
 0x1b1   : > { %v939_v43 = vmul.f32 %v3581_v40, %v3581_v40  ;;  %v3593_v53 = vadd.f32 %v841_v39, %v825_v41  ;;  %v814_v37 = vadd.f32 %v794_v32, %v3510_v20  ;;  %v847_v41 = vmul.f32 2.0, %v3517_v22  ;;  %v3103_v20 = vld [vmem:[%s4555_s4 + $0x30] sm:$0xff]  ;;  %v3102_v39 = vld [vmem:[%s4555_s4 + $0x28] sm:$0xff]  ;;  %v798_v8 = vpop.f32.mrf.mxu3 }
 0x1b3   : > { %881 = vadd.xlane.f32.xlu0 %v3583_v42  ;;  %956 = vadd.xlane.f32.xlu1 %v939_v43  ;;  %v830_v43 = vmax.f32 %v814_v37, 0.0 }
 0x1b4   : > { %v872_v47 = vpop.xlane.xlu0 %871 }
 0x1b5   : > { %v908_v50 = vmul.f32 %v3569_v19, %v872_v47 }
 0x1b7   : > { %v3591_v51 = vsub.f32 %v3550_v46, %v908_v50  ;;  %v3104_v50 = vld [vmem:[%s4555_s4 + $0x38] sm:$0xff] }
 0x1b8   : > { %1302 = vmatpush.bf16.msrb.mxu0 %v3104_v50  ;;  %v848_v50 = vmul.f32 2.0, %v3522_v23 }
 0x1b9   : > { %v940_v55 = vmul.f32 %v3591_v51, %v3591_v51 }
 0x1bb   : > { %883 = vadd.xlane.f32.xlu0 %v3593_v53  ;;  %958 = vadd.xlane.f32.xlu1 %v940_v55  ;;  %v3099_v55 = vld [vmem:[%s4555_s4 + $0x10] sm:$0xff] }
 0x1bc   : > { %v874_v49 = vpop.xlane.xlu2 %873  ;;  %1303 = vmatpush.bf16.msrb.mxu0 %v3103_v20  ;;  %v3702_v20 = vld [vmem:[%s4556_s5 + $0x3] ss:$0 sm:$0xff] }
 0x1bd   : > { %v909_v60 = vmul.f32 %v3569_v19, %v874_v49 }
 0x1bf   : > { %v3601_v46 = vsub.f32 %v3554_v54, %v909_v60 }
 0x1c0   : > { %1304 = vmatpush.bf16.msrb.mxu0 %v3102_v39 }
 0x1c1   : > { %v941_v1 = vmul.f32 %v3601_v46, %v3601_v46 }
 0x1c3   : > { %885 = vadd.xlane.f32.xlu1 %v3603_v0  ;;  %960 = vadd.xlane.f32.xlu2 %v941_v1 }
 0x1c4   : > { %v876_v3 = vpop.xlane.xlu1 %875 }
 0x1c5   : > { %v910_v6 = vmul.f32 %v3569_v19, %v876_v3 }
 0x1c7   : > { %v3611_v54 = vsub.f32 %v3558_v59, %v910_v6  ;;  %v844_v59 = vmul.f32 2.0, %v551_v10 }
 0x1c9   : > { %v942_v13 = vmul.f32 %v3611_v54, %v3611_v54  ;;  %v3624_v28 = vadd.f32 %v844_v59, %v828_v15  ;;  %v799_v15 = vadd.f32 %v3531_v25, %v798_v8 }
 0x1cb   : > { %887 = vadd.xlane.f32.xlu1 %v3613_v12  ;;  %962 = vadd.xlane.f32.xlu2 %v942_v13 }
 0x1cc   : > { %v878_v14 = vpop.xlane.xlu2 %877 }
 0x1cd   : > { %v911_v18 = vmul.f32 %v3569_v19, %v878_v14 }
 0x1cf   : > { %v3621_v21 = vsub.f32 %v3562_v2, %v911_v18  ;;  %v845_v2 = vmul.f32 2.0, %v3504_v17  ;;  %v815_v17 = vadd.f32 %v797_v44, %v3517_v22  ;;  %v3101_v22 = vld [vmem:[%s4555_s4 + $0x20] sm:$0xff] }
 0x1d0   : > { %1305 = vmatpush.bf16.msrb.mxu0 %v3101_v22 }
 0x1d1   : > { %v943_v29 = vmul.f32 %v3621_v21, %v3621_v21  ;;  %v3636_v38 = vadd.f32 %v845_v2, %v829_v31  ;;  %v831_v47 = vmax.f32 %v815_v17, 0.0  ;;  %v816_v31 = vadd.f32 %v799_v15, %v3522_v23 }
 0x1d3   : > { %889 = vadd.xlane.f32.xlu2 %v3624_v28  ;;  %964 = vadd.xlane.f32.xlu0 %v943_v29  ;;  %v3648_v48 = vadd.f32 %v847_v41, %v831_v47 }
 0x1d4   : > { %v880_v30 = vpop.xlane.xlu2 %879  ;;  %1306 = vmatpush.bf16.msrb.mxu0 %v3100_v52 }
 0x1d5   : > { %v912_v34 = vmul.f32 %v3569_v19, %v880_v30 }
 0x1d7   : > { %v3633_v35 = vsub.f32 %v3566_v9, %v912_v34  ;;  %v3644_v9 = vadd.f32 %v846_v45, %v830_v43 }
 0x1d8   : > { %1307 = vmatpush.bf16.msrb.mxu0 %v3099_v55 }
 0x1d9   : > { %v944_v36 = vmul.f32 %v3633_v35, %v3633_v35 }
 0x1db   : > { %891 = vadd.xlane.f32.xlu2 %v3636_v38  ;;  %966 = vadd.xlane.f32.xlu0 %v944_v36 }
 0x1dc   : > { %1308 = vmatpush.bf16.msrb.mxu0 %v3098_v56 }
 0x1e0   : > { %1309 = vmatpush.bf16.msrb.mxu0 %v3097_v58 }
 0x1e3   : > { %893 = vadd.xlane.f32.xlu0 %v3644_v9 }
 0x1eb   : > { %895 = vadd.xlane.f32.xlu0 %v3648_v48 }
 0x21e   : > { %v955_v49 = vpop.xlane.xlu0 %954 }
 0x21f   : > { %v986_v57 = vmul.f32 %v955_v49, %v3569_v19  ;;  %v3714_v49 = vld [vmem:[%s4556_s5 + $0x6] ss:$0 sm:$0xff] }
 0x221   : > { %v1002_v60 = vadd.f32 1e-05, %v986_v57 }
 0x223   : > { %3171 = vrsqrt.f32 %v1002_v60  ;;  %vm1024_vm5 = vweird.f32 %v1002_v60 }
 0x226   : > { %v882_v61 = vpop.xlane.xlu0 %881  ;;  %v957_v62 = vpop.xlane.xlu1 %956 }
 0x227   : > { %v913_v63 = vmul.f32 %v3569_v19, %v882_v61  ;;  %v987_v1 = vmul.f32 %v957_v62, %v3569_v19 }
 0x229   : > { %v3172_v3 = vpop.eup %3171  ;;  %v3679_v4 = vsub.f32 %v3583_v42, %v913_v63  ;;  %v1003_v5 = vadd.f32 1e-05, %v987_v1 }
 0x22a   : > { %v1019_v6 = vmul.f32 %v3172_v3, %v1002_v60  ;;  %vm1025_vm4 = vweird.f32 %v3172_v3 }
 0x22b   : > { %3173 = vrsqrt.f32 %v1003_v5  ;;  %v945_v7 = vmul.f32 %v3679_v4, %v3679_v4  ;;  %vm1026_vm6 = vmor %vm1024_vm5, %vm1025_vm4  ;;  %vm1034_vm8 = vweird.f32 %v1003_v5 }
 0x22c   : > { %v1020_v10 = vmul.f32 %v3172_v3, %v1019_v6 }
 0x22d   : > { %968 = vadd.xlane.f32.xlu1 %v945_v7 }
 0x22e   : > { %v1021_v11 = vmul.f32 0.5, %v1020_v10  ;;  %v884_v13 = vpop.xlane.xlu0 %883  ;;  %v959_v14 = vpop.xlane.xlu1 %958 }
 0x22f   : > { %v914_v16 = vmul.f32 %v3569_v19, %v884_v13  ;;  %v988_v18 = vmul.f32 %v959_v14, %v3569_v19 }
 0x230   : > { %v1022_v42 = vsub.f32 1.5, %v1021_v11 }
 0x231   : > { %v3174_v59 = vpop.eup %3173  ;;  %v3687_v24 = vsub.f32 %v3593_v53, %v914_v16  ;;  %v1004_v26 = vadd.f32 1e-05, %v988_v18  ;;  %v832_v53 = vmax.f32 %v816_v31, 0.0 }
 0x232   : > { %v1023_v29 = vmul.f32 %v3172_v3, %v1022_v42  ;;  %v1029_v30 = vmul.f32 %v3174_v59, %v1003_v5  ;;  %vm1035_vm7 = vweird.f32 %v3174_v59 }
 0x233   : > { %3175 = vrsqrt.f32 %v1004_v26  ;;  %v946_v32 = vmul.f32 %v3687_v24, %v3687_v24  ;;  %vm1036_vm9 = vmor %vm1034_vm8, %vm1035_vm7  ;;  %v3704_v52 = vadd.f32 %v848_v50, %v832_v53  ;;  %vm1044_vm11 = vweird.f32 %v1004_v26 }
 0x234   : > { %v1030_v25 = vmul.f32 %v3174_v59, %v1029_v30  ;;  %v1027_v34 = vsel %vm1026_vm6, %v3172_v3, %v1023_v29 }
 0x235   : > { %970 = vadd.xlane.f32.xlu1 %v946_v32  ;;  %v1178_v17 = vmul.f32 %v1027_v34, %v3574_v27 }
 0x236   : > { %v1031_v2 = vmul.f32 0.5, %v1030_v25  ;;  %v886_v37 = vpop.xlane.xlu1 %885  ;;  %v961_v36 = vpop.xlane.xlu2 %960 }
 0x237   : > { %v915_v33 = vmul.f32 %v3569_v19, %v886_v37  ;;  %v989_v43 = vmul.f32 %v961_v36, %v3569_v19  ;;  %v1195_v23 = vmul.f32 %v3702_v20, %v1178_v17 }
 0x238   : > { %v1032_v44 = vsub.f32 1.5, %v1031_v2 }
 0x239   : > { %v3176_v45 = vpop.eup %3175  ;;  %v3696_v47 = vsub.f32 %v3603_v0, %v915_v33  ;;  %v1005_v41 = vadd.f32 1e-05, %v989_v43  ;;  %v1212_v6 = vadd.f32 %v3714_v49, %v1195_v23 }
 0x23a   : > { %v1033_v39 = vmul.f32 %v3174_v59, %v1032_v44  ;;  %v1039_v22 = vmul.f32 %v3176_v45, %v1004_v26  ;;  %vm1045_vm10 = vweird.f32 %v3176_v45 }
 0x23b   : > { %3177 = vrsqrt.f32 %v1005_v41  ;;  %v947_v27 = vmul.f32 %v3696_v47, %v3696_v47  ;;  %vm1046_vm12 = vmor %vm1044_vm11, %vm1045_vm10  ;;  %vm1054_vm14 = vweird.f32 %v1005_v41 }
 0x23c   : > { %v1037_v0 = vsel %vm1036_vm9, %v3174_v59, %v1033_v39  ;;  %v1040_v55 = vmul.f32 %v3176_v45, %v1039_v22 }
 0x23d   : > { %v1179_v56 = vmul.f32 %v1037_v0, %v3581_v40  ;;  %897 = vadd.xlane.f32.xlu1 %v3704_v52  ;;  %972 = vadd.xlane.f32.xlu2 %v947_v27 }
 0x23e   : > { %v1041_v57 = vmul.f32 0.5, %v1040_v55  ;;  %v888_v58 = vpop.xlane.xlu1 %887  ;;  %v963_v60 = vpop.xlane.xlu2 %962 }
 0x23f   : > { %v916_v61 = vmul.f32 %v3569_v19, %v888_v58  ;;  %v990_v62 = vmul.f32 %v963_v60, %v3569_v19  ;;  %v1196_v63 = vmul.f32 %v3702_v20, %v1179_v56 }
 0x240   : > { %v1042_v40 = vsub.f32 1.5, %v1041_v57 }
 0x241   : > { %v3178_v1 = vpop.eup %3177  ;;  %v3720_v3 = vsub.f32 %v3613_v12, %v916_v61  ;;  %v1006_v5 = vadd.f32 1e-05, %v990_v62  ;;  %v1213_v7 = vadd.f32 %v3714_v49, %v1196_v63 }
 0x242   : > { %v1043_v8 = vmul.f32 %v3176_v45, %v1042_v40  ;;  %v1049_v10 = vmul.f32 %v3178_v1, %v1005_v41  ;;  %vm1055_vm13 = vweird.f32 %v3178_v1 }
 0x243   : > { %3179 = vrsqrt.f32 %v1006_v5  ;;  %v1244_v11 = vpack.c.bf16 %v1213_v7, %v1212_v6  ;;  %v948_v13 = vmul.f32 %v3720_v3, %v3720_v3  ;;  %vm1056_vm15 = vmor %vm1054_vm14, %vm1055_vm13  ;;  %vm1064_vm2 = vweird.f32 %v1006_v5 }
 0x244   : > { %v1050_v14 = vmul.f32 %v3178_v1, %v1049_v10  ;;  %v1047_v18 = vsel %vm1046_vm12, %v3176_v45, %v1043_v8 }
 0x245   : > { %1310 = vmatmul.bf16.vlgmr.msrb.gmra.mxu0 %v1244_v11  ;;  %974 = vadd.xlane.f32.xlu2 %v948_v13  ;;  %v1180_v26 = vmul.f32 %v1047_v18, %v3591_v51 }
 0x246   : > { %v1051_v12 = vmul.f32 0.5, %v1050_v14  ;;  %v965_v15 = vpop.xlane.xlu0 %964  ;;  %v890_v16 = vpop.xlane.xlu2 %889 }
 0x247   : > { %v991_v42 = vmul.f32 %v965_v15, %v3569_v19  ;;  %v917_v59 = vmul.f32 %v3569_v19, %v890_v16  ;;  %v1197_v33 = vmul.f32 %v3702_v20, %v1180_v26 }
 0x248   : > { %v1052_v29 = vsub.f32 1.5, %v1051_v12 }
 0x249   : > { %v3180_v30 = vpop.eup %3179  ;;  %v1007_v31 = vadd.f32 1e-05, %v991_v42  ;;  %v3729_v32 = vsub.f32 %v3624_v28, %v917_v59  ;;  %v1214_v39 = vadd.f32 %v3714_v49, %v1197_v33 }
 0x24a   : > { %v1053_v25 = vmul.f32 %v3178_v1, %v1052_v29  ;;  %v1059_v34 = vmul.f32 %v3180_v30, %v1006_v5  ;;  %vm1065_vm0 = vweird.f32 %v3180_v30 }
 0x24b   : > { %3181 = vrsqrt.f32 %v1007_v31  ;;  %v949_v2 = vmul.f32 %v3729_v32, %v3729_v32  ;;  %vm1066_vm3 = vmor %vm1064_vm2, %vm1065_vm0  ;;  %vm1074_vm4 = vweird.f32 %v1007_v31 }
 0x24c   : > { %v1060_v37 = vmul.f32 %v3180_v30, %v1059_v34  ;;  %v1057_v36 = vsel %vm1056_vm15, %v3178_v1, %v1053_v25 }
 0x24d   : > { %976 = vadd.xlane.f32.xlu0 %v949_v2  ;;  %v1181_v53 = vmul.f32 %v1057_v36, %v3601_v46 }
 0x24e   : > { %v1061_v43 = vmul.f32 0.5, %v1060_v37  ;;  %v967_v28 = vpop.xlane.xlu0 %966  ;;  %v892_v44 = vpop.xlane.xlu2 %891 }
 0x24f   : > { %v918_v51 = vmul.f32 %v3569_v19, %v892_v44  ;;  %v1198_v45 = vmul.f32 %v3702_v20, %v1181_v53 }
 0x250   : > { %v1062_v17 = vsub.f32 1.5, %v1061_v43 }
 0x251   : > { %v3182_v41 = vpop.eup %3181  ;;  %v3739_v50 = vsub.f32 %v3636_v38, %v918_v51  ;;  %v1215_v22 = vadd.f32 %v3714_v49, %v1198_v45 }
 0x252   : > { %v1063_v27 = vmul.f32 %v3180_v30, %v1062_v17  ;;  %v1069_v46 = vmul.f32 %v3182_v41, %v1007_v31  ;;  %vm1075_vm1 = vweird.f32 %v3182_v41 }
 0x253   : > { %v1245_v0 = vpack.c.bf16 %v1215_v22, %v1214_v39  ;;  %v950_v55 = vmul.f32 %v3739_v50, %v3739_v50  ;;  %vm1076_vm5 = vmor %vm1074_vm4, %vm1075_vm1 }
 0x254   : > { %v1070_v56 = vmul.f32 %v3182_v41, %v1069_v46  ;;  %v1067_v38 = vsel %vm1066_vm3, %v3180_v30, %v1063_v27 }
 0x255   : > { %1315 = vmatmul.bf16.gmra.mxu0 %v1245_v0  ;;  %978 = vadd.xlane.f32.xlu1 %v950_v55  ;;  %v1182_v62 = vmul.f32 %v1067_v38, %v3611_v54 }
 0x256   : > { %v1071_v23 = vmul.f32 0.5, %v1070_v56  ;;  %v894_v57 = vpop.xlane.xlu0 %893 }
 0x257   : > { %v919_v58 = vmul.f32 %v3569_v19, %v894_v57  ;;  %v1199_v6 = vmul.f32 %v3702_v20, %v1182_v62 }
 0x258   : > { %v1072_v60 = vsub.f32 1.5, %v1071_v23 }
 0x259   : > { %v3747_v61 = vsub.f32 %v3644_v9, %v919_v58  ;;  %v1216_v54 = vadd.f32 %v3714_v49, %v1199_v6 }
 0x25a   : > { %v1073_v63 = vmul.f32 %v3182_v41, %v1072_v60  ;;  %v583_v60 = vpop.f32.mrf.mxu1 }
 0x25b   : > { %v951_v40 = vmul.f32 %v3747_v61, %v3747_v61 }
 0x25c   : > { %v1077_v1 = vsel %vm1076_vm5, %v3182_v41, %v1073_v63 }
 0x25d   : > { %980 = vadd.xlane.f32.xlu2 %v951_v40  ;;  %v1183_v5 = vmul.f32 %v1077_v1, %v3621_v21  ;;  %v992_v21 = vmul.f32 %v967_v28, %v3569_v19 }
 0x25e   : > { %v896_v7 = vpop.xlane.xlu0 %895 }
 0x25f   : > { %v920_v8 = vmul.f32 %v3569_v19, %v896_v7  ;;  %v1200_v9 = vmul.f32 %v3702_v20, %v1183_v5  ;;  %v1008_v12 = vadd.f32 1e-05, %v992_v21 }
 0x261   : > { %v3757_v10 = vsub.f32 %v3648_v48, %v920_v8  ;;  %v1217_v11 = vadd.f32 %v3714_v49, %v1200_v9  ;;  %3183 = vrsqrt.f32 %v1008_v12  ;;  %vm1084_vm7 = vweird.f32 %v1008_v12  ;;  %v3783_v9 = vld [vmem:[%s4556_s5 + $0x1] ss:$0 sm:$0xff] }
 0x263   : > { %v1246_v13 = vpack.c.bf16 %v1217_v11, %v1216_v54  ;;  %v952_v14 = vmul.f32 %v3757_v10, %v3757_v10 }
 0x265   : > { %1320 = vmatmul.bf16.gmra.mxu0 %v1246_v13  ;;  %982 = vadd.xlane.f32.xlu0 %v952_v14 }
 0x267   : > { %v3184_v15 = vpop.eup %3183 }
 0x268   : > { %v1079_v16 = vmul.f32 %v3184_v15, %v1008_v12  ;;  %vm1085_vm6 = vweird.f32 %v3184_v15 }
 0x269   : > { %vm1086_vm8 = vmor %vm1084_vm7, %vm1085_vm6 }
 0x26a   : > { %v1080_v18 = vmul.f32 %v3184_v15, %v1079_v16 }
 0x26c   : > { %v1081_v29 = vmul.f32 0.5, %v1080_v18 }
 0x26e   : > { %v1082_v30 = vsub.f32 1.5, %v1081_v29 }
 0x270   : > { %v1083_v2 = vmul.f32 %v3184_v15, %v1082_v30 }
 0x272   : > { %v1087_v28 = vsel %vm1086_vm8, %v3184_v15, %v1083_v2 }
 0x273   : > { %v1184_v22 = vmul.f32 %v1087_v28, %v3633_v35 }
 0x275   : > { %v1201_v57 = vmul.f32 %v3702_v20, %v1184_v22 }
 0x277   : > { %v1218_v1 = vadd.f32 %v3714_v49, %v1201_v57 }
 0x2a0   : > { %v969_v42 = vpop.xlane.xlu1 %968 }
 0x2a1   : > { %v993_v48 = vmul.f32 %v969_v42, %v3569_v19 }
 0x2a3   : > { %v1009_v59 = vadd.f32 1e-05, %v993_v48  ;;  %v586_v48 = vpop.f32.mrf.mxu1 }
 0x2a5   : > { %3185 = vrsqrt.f32 %v1009_v59  ;;  %vm1094_vm10 = vweird.f32 %v1009_v59 }
 0x2a8   : > { %v971_v31 = vpop.xlane.xlu1 %970 }
 0x2a9   : > { %v994_v26 = vmul.f32 %v971_v31, %v3569_v19 }
 0x2ab   : > { %v3186_v25 = vpop.eup %3185  ;;  %v1010_v34 = vadd.f32 1e-05, %v994_v26 }
 0x2ac   : > { %v1089_v37 = vmul.f32 %v3186_v25, %v1009_v59  ;;  %vm1095_vm9 = vweird.f32 %v3186_v25 }
 0x2ad   : > { %3187 = vrsqrt.f32 %v1010_v34  ;;  %vm1096_vm11 = vmor %vm1094_vm10, %vm1095_vm9  ;;  %vm1104_vm13 = vweird.f32 %v1010_v34 }
 0x2ae   : > { %v1090_v36 = vmul.f32 %v3186_v25, %v1089_v37 }
 0x2b0   : > { %v1091_v53 = vmul.f32 0.5, %v1090_v36  ;;  %v898_v33 = vpop.xlane.xlu1 %897  ;;  %v973_v43 = vpop.xlane.xlu2 %972 }
 0x2b1   : > { %v921_v44 = vmul.f32 %v3569_v19, %v898_v33  ;;  %v995_v51 = vmul.f32 %v973_v43, %v3569_v19 }
 0x2b2   : > { %v1092_v45 = vsub.f32 1.5, %v1091_v53 }
 0x2b3   : > { %v3188_v17 = vpop.eup %3187  ;;  %v3769_v41 = vsub.f32 %v3704_v52, %v921_v44  ;;  %v1011_v39 = vadd.f32 1e-05, %v995_v51 }
 0x2b4   : > { %v1093_v27 = vmul.f32 %v3186_v25, %v1092_v45  ;;  %v1099_v46 = vmul.f32 %v3188_v17, %v1010_v34  ;;  %vm1105_vm12 = vweird.f32 %v3188_v17 }
 0x2b5   : > { %3189 = vrsqrt.f32 %v1011_v39  ;;  %v953_v0 = vmul.f32 %v3769_v41, %v3769_v41  ;;  %vm1106_vm14 = vmor %vm1104_vm13, %vm1105_vm12  ;;  %vm1114_vm0 = vweird.f32 %v1011_v39 }
 0x2b6   : > { %v1100_v55 = vmul.f32 %v3188_v17, %v1099_v46  ;;  %v1097_v56 = vsel %vm1096_vm11, %v3186_v25, %v1093_v27  ;;  %v1383_v25 = vmul.f32 2.0, %v583_v60 }
 0x2b7   : > { %984 = vadd.xlane.f32.xlu1 %v953_v0  ;;  %v1185_v23 = vmul.f32 %v1097_v56, %v3679_v4 }
 0x2b8   : > { %v1101_v52 = vmul.f32 0.5, %v1100_v55  ;;  %v975_v38 = vpop.xlane.xlu2 %974  ;;  %v589_v55 = vpop.f32.mrf.mxu1 }
 0x2b9   : > { %v996_v58 = vmul.f32 %v975_v38, %v3569_v19  ;;  %v1202_v35 = vmul.f32 %v3702_v20, %v1185_v23 }
 0x2ba   : > { %v1102_v62 = vsub.f32 1.5, %v1101_v52  ;;  %v1384_v52 = vmul.f32 2.0, %v586_v48 }
 0x2bb   : > { %v3190_v63 = vpop.eup %3189  ;;  %v1012_v40 = vadd.f32 1e-05, %v996_v58  ;;  %v1219_v5 = vadd.f32 %v3714_v49, %v1202_v35 }
 0x2bc   : > { %v1103_v6 = vmul.f32 %v3188_v17, %v1102_v62  ;;  %v1109_v7 = vmul.f32 %v3190_v63, %v1011_v39  ;;  %vm1115_vm15 = vweird.f32 %v3190_v63 }
 0x2bd   : > { %3191 = vrsqrt.f32 %v1012_v40  ;;  %v1247_v4 = vpack.c.bf16 %v1219_v5, %v1218_v1  ;;  %vm1116_vm2 = vmor %vm1114_vm0, %vm1115_vm15  ;;  %vm1124_vm1 = vweird.f32 %v1012_v40 }
 0x2be   : > { %v1110_v8 = vmul.f32 %v3190_v63, %v1109_v7  ;;  %v1107_v13 = vsel %vm1106_vm14, %v3188_v17, %v1103_v6 }
 0x2bf   : > { %1325 = vmatmul.bf16.gmra.mxu0 %v1247_v4  ;;  %v1186_v42 = vmul.f32 %v1107_v13, %v3687_v24 }
 0x2c0   : > { %v1111_v54 = vmul.f32 0.5, %v1110_v8  ;;  %v977_v11 = vpop.xlane.xlu0 %976 }
 0x2c1   : > { %v997_v14 = vmul.f32 %v977_v11, %v3569_v19  ;;  %v1203_v37 = vmul.f32 %v3702_v20, %v1186_v42 }
 0x2c2   : > { %v1112_v21 = vsub.f32 1.5, %v1111_v54  ;;  %v1311_v12 = vpop.f32.mrf.mxu0 }
 0x2c3   : > { %v3192_v15 = vpop.eup %3191  ;;  %v1013_v16 = vadd.f32 1e-05, %v997_v14  ;;  %v1312_v18 = vadd.f32 %v3783_v9, %v1311_v12  ;;  %v1385_v14 = vmul.f32 2.0, %v589_v55 }
 0x2c4   : > { %v1113_v59 = vmul.f32 %v3190_v63, %v1112_v21  ;;  %v1119_v29 = vmul.f32 %v3192_v15, %v1012_v40  ;;  %vm1125_vm3 = vweird.f32 %v3192_v15 }
 0x2c5   : > { %3193 = vrsqrt.f32 %v1013_v16  ;;  %v1351_v30 = vadd.f32 %v1312_v18, %v583_v60  ;;  %vm3798_vm4 = vmor %vm1124_vm1, %vm1125_vm3  ;;  %vm1134_vm6 = vweird.f32 %v1013_v16  ;;  %v592_v18 = vpop.f32.mrf.mxu1 }
 0x2c6   : > { %v1120_v31 = vmul.f32 %v3192_v15, %v1119_v29  ;;  %v1117_v26 = vsel %vm1116_vm2, %v3190_v63, %v1113_v59 }
 0x2c7   : > { %v1367_v34 = vmax.f32 %v1351_v30, 0.0  ;;  %v1187_v2 = vmul.f32 %v1117_v26, %v3696_v47  ;;  %v1220_v47 = vadd.f32 %v3714_v49, %v1203_v37 }
 0x2c8   : > { %v1121_v36 = vmul.f32 0.5, %v1120_v31  ;;  %v979_v53 = vpop.xlane.xlu1 %978 }
 0x2c9   : > { %v998_v33 = vmul.f32 %v979_v53, %v3569_v19  ;;  %v3791_v24 = vadd.f32 %v1383_v25, %v1367_v34  ;;  %v1204_v43 = vmul.f32 %v3702_v20, %v1187_v2  ;;  %v1386_v53 = vmul.f32 2.0, %v592_v18 }
 0x2ca   : > { %v1122_v28 = vsub.f32 1.5, %v1121_v36  ;;  %v1313_v44 = vpop.f32.mrf.mxu0 }
 0x2cb   : > { %v3194_v51 = vpop.eup %3193  ;;  %v1014_v45 = vadd.f32 1e-05, %v998_v33  ;;  %v1314_v17 = vadd.f32 %v3783_v9, %v1313_v44  ;;  %1417 = vadd.xlane.f32.xlu2 %v3791_v24  ;;  %v1221_v39 = vadd.f32 %v3714_v49, %v1204_v43 }
 0x2cc   : > { %v1123_v22 = vmul.f32 %v3192_v15, %v1122_v28  ;;  %v1129_v27 = vmul.f32 %v3194_v51, %v1013_v16  ;;  %vm1135_vm5 = vweird.f32 %v3194_v51 }
 0x2cd   : > { %3195 = vrsqrt.f32 %v1014_v45  ;;  %v1352_v46 = vadd.f32 %v1314_v17, %v586_v48  ;;  %v1248_v0 = vpack.c.bf16 %v1221_v39, %v1220_v47  ;;  %vm1136_vm7 = vmor %vm1134_vm6, %vm1135_vm5  ;;  %vm1144_vm9 = vweird.f32 %v1014_v45  ;;  %v595_v44 = vpop.f32.mrf.mxu1 }
 0x2ce   : > { %v1130_v56 = vmul.f32 %v3194_v51, %v1129_v27  ;;  %v1127_v35 = vsel %vm3798_vm4, %v3192_v15, %v1123_v22 }
 0x2cf   : > { %1330 = vmatmul.bf16.gmra.mxu0 %v1248_v0  ;;  %v1368_v57 = vmax.f32 %v1352_v46, 0.0  ;;  %v1188_v7 = vmul.f32 %v1127_v35, %v3720_v3  ;;  %v1387_v46 = vmul.f32 2.0, %v595_v44 }
 0x2d0   : > { %v1131_v38 = vmul.f32 0.5, %v1130_v56  ;;  %v981_v58 = vpop.xlane.xlu2 %980 }
 0x2d1   : > { %v999_v60 = vmul.f32 %v981_v58, %v3569_v19  ;;  %v3805_v62 = vadd.f32 %v1384_v52, %v1368_v57  ;;  %v1205_v15 = vmul.f32 %v3702_v20, %v1188_v7 }
 0x2d2   : > { %v1132_v63 = vsub.f32 1.5, %v1131_v38  ;;  %v1316_v40 = vpop.f32.mrf.mxu0 }
 0x2d3   : > { %v3196_v1 = vpop.eup %3195  ;;  %v1015_v5 = vadd.f32 1e-05, %v999_v60  ;;  %v1317_v6 = vadd.f32 %v3783_v9, %v1316_v40  ;;  %1419 = vadd.xlane.f32.xlu0 %v3805_v62  ;;  %v1222_v31 = vadd.f32 %v3714_v49, %v1205_v15 }
 0x2d4   : > { %v1133_v4 = vmul.f32 %v3194_v51, %v1132_v63  ;;  %v1139_v8 = vmul.f32 %v3196_v1, %v1014_v45  ;;  %vm1145_vm8 = vweird.f32 %v3196_v1 }
 0x2d5   : > { %3197 = vrsqrt.f32 %v1015_v5  ;;  %v1353_v54 = vadd.f32 %v1317_v6, %v589_v55  ;;  %vm1146_vm10 = vmor %vm1144_vm9, %vm1145_vm8  ;;  %vm1154_vm12 = vweird.f32 %v1015_v5  ;;  %v598_v35 = vpop.f32.mrf.mxu1 }
 0x2d6   : > { %v1140_v11 = vmul.f32 %v3196_v1, %v1139_v8  ;;  %v1137_v13 = vsel %vm1136_vm7, %v3194_v51, %v1133_v4  ;;  %v1388_v40 = vmul.f32 2.0, %v598_v35 }
 0x2d7   : > { %v1369_v21 = vmax.f32 %v1353_v54, 0.0  ;;  %v1189_v12 = vmul.f32 %v1137_v13, %v3729_v32 }
 0x2d8   : > { %v1141_v42 = vmul.f32 0.5, %v1140_v11 }
 0x2d9   : > { %v3812_v48 = vadd.f32 %v1385_v14, %v1369_v21  ;;  %v1206_v3 = vmul.f32 %v3702_v20, %v1189_v12 }
 0x2da   : > { %v1142_v59 = vsub.f32 1.5, %v1141_v42  ;;  %v1318_v16 = vpop.f32.mrf.mxu0 }
 0x2db   : > { %v3198_v29 = vpop.eup %3197  ;;  %v1319_v30 = vadd.f32 %v3783_v9, %v1318_v16  ;;  %1421 = vadd.xlane.f32.xlu1 %v3812_v48  ;;  %v1223_v26 = vadd.f32 %v3714_v49, %v1206_v3 }
 0x2dc   : > { %v1143_v32 = vmul.f32 %v3196_v1, %v1142_v59  ;;  %v1149_v25 = vmul.f32 %v3198_v29, %v1015_v5  ;;  %vm1155_vm11 = vweird.f32 %v3198_v29  ;;  %v983_v5 = vpop.xlane.xlu0 %982 }
 0x2dd   : > { %v1354_v34 = vadd.f32 %v1319_v30, %v592_v18  ;;  %v1249_v2 = vpack.c.bf16 %v1223_v26, %v1222_v31  ;;  %vm1156_vm13 = vmor %vm1154_vm12, %vm1155_vm11  ;;  %v1000_v6 = vmul.f32 %v983_v5, %v3569_v19  ;;  %v601_v12 = vpop.f32.mrf.mxu1 }
 0x2de   : > { %v1150_v37 = vmul.f32 %v3198_v29, %v1149_v25  ;;  %v1147_v43 = vsel %vm1146_vm10, %v3196_v1, %v1143_v32 }
 0x2df   : > { %1335 = vmatmul.bf16.gmra.mxu0 %v1249_v2  ;;  %v1370_v36 = vmax.f32 %v1354_v34, 0.0  ;;  %v1190_v39 = vmul.f32 %v1147_v43, %v3739_v50  ;;  %v1016_v7 = vadd.f32 1e-05, %v1000_v6 }
 0x2e0   : > { %v1151_v33 = vmul.f32 0.5, %v1150_v37 }
 0x2e1   : > { %v3819_v28 = vadd.f32 %v1386_v53, %v1370_v36  ;;  %v1207_v56 = vmul.f32 %v3702_v20, %v1190_v39  ;;  %3199 = vrsqrt.f32 %v1016_v7  ;;  %vm1164_vm15 = vweird.f32 %v1016_v7 }
 0x2e2   : > { %v1152_v51 = vsub.f32 1.5, %v1151_v33  ;;  %v1321_v17 = vpop.f32.mrf.mxu0  ;;  %v1389_v53 = vmul.f32 2.0, %v601_v12 }
 0x2e3   : > { %v1322_v47 = vadd.f32 %v3783_v9, %v1321_v17  ;;  %1423 = vadd.xlane.f32.xlu2 %v3819_v28  ;;  %v1224_v50 = vadd.f32 %v3714_v49, %v1207_v56 }
 0x2e4   : > { %v1153_v45 = vmul.f32 %v3198_v29, %v1152_v51 }
 0x2e5   : > { %v1355_v22 = vadd.f32 %v1322_v47, %v595_v44  ;;  %v604_v30 = vpop.f32.mrf.mxu1 }
 0x2e6   : > { %v1157_v27 = vsel %vm1156_vm13, %v3198_v29, %v1153_v45 }
 0x2e7   : > { %v1371_v0 = vmax.f32 %v1355_v22, 0.0  ;;  %v1191_v55 = vmul.f32 %v1157_v27, %v3747_v61  ;;  %v3200_v4 = vpop.eup %3199 }
 0x2e8   : > { %v1159_v8 = vmul.f32 %v3200_v4, %v1016_v7  ;;  %vm1165_vm14 = vweird.f32 %v3200_v4  ;;  %v3111_v7 = vld [vmem:[%s4555_s4 + $0x70] sm:$0xff] }
 0x2e9   : > { %v3826_v23 = vadd.f32 %v1387_v46, %v1371_v0  ;;  %v1208_v57 = vmul.f32 %v3702_v20, %v1191_v55  ;;  %vm1166_vm0 = vmor %vm1164_vm15, %vm1165_vm14 }
 0x2ea   : > { %v1323_v52 = vpop.f32.mrf.mxu0  ;;  %v1160_v54 = vmul.f32 %v3200_v4, %v1159_v8 }
 0x2eb   : > { %v1324_v38 = vadd.f32 %v3783_v9, %v1323_v52  ;;  %1425 = vadd.xlane.f32.xlu0 %v3826_v23  ;;  %v1225_v58 = vadd.f32 %v3714_v49, %v1208_v57 }
 0x2ec   : > { %v1161_v21 = vmul.f32 0.5, %v1160_v54 }
 0x2ed   : > { %v1356_v60 = vadd.f32 %v1324_v38, %v598_v35  ;;  %v1250_v63 = vpack.c.bf16 %v1225_v58, %v1224_v50  ;;  %v607_v46 = vpop.f32.mrf.mxu1  ;;  %v1390_v38 = vmul.f32 2.0, %v604_v30 }
 0x2ee   : > { %v1162_v15 = vsub.f32 1.5, %v1161_v21 }
 0x2ef   : > { %1340 = vmatmul.bf16.gmra.mxu0 %v1250_v63  ;;  %v1372_v61 = vmax.f32 %v1356_v60, 0.0 }
 0x2f0   : > { %v1163_v42 = vmul.f32 %v3200_v4, %v1162_v15 }
 0x2f1   : > { %v3833_v1 = vadd.f32 %v1388_v40, %v1372_v61  ;;  %v1391_v40 = vmul.f32 2.0, %v607_v46 }
 0x2f2   : > { %v1167_v29 = vsel %vm1166_vm0, %v3200_v4, %v1163_v42 }
 0x2f3   : > { %1427 = vadd.xlane.f32.xlu1 %v3833_v1  ;;  %v1192_v25 = vmul.f32 %v1167_v29, %v3757_v10  ;;  %v3112_v10 = vld [vmem:[%s4555_s4 + $0x78] sm:$0xff] }
 0x2f4   : > { %1846 = vmatpush.bf16.msra.mxu1 %v3112_v10 }
 0x2f5   : > { %v1209_v17 = vmul.f32 %v3702_v20, %v1192_v25 }
 0x2f8   : > { %1847 = vmatpush.bf16.msra.mxu1 %v3111_v7 }
 0x32a   : > { %v985_v11 = vpop.xlane.xlu1 %984 }
 0x32b   : > { %v1001_v13 = vmul.f32 %v985_v11, %v3569_v19 }
 0x32d   : > { %v1017_v14 = vadd.f32 1e-05, %v1001_v13 }
 0x32f   : > { %3201 = vrsqrt.f32 %v1017_v14  ;;  %vm1174_vm3 = vweird.f32 %v1017_v14 }
 0x335   : > { %v3202_v18 = vpop.eup %3201 }
 0x336   : > { %v1169_v3 = vmul.f32 %v3202_v18, %v1017_v14  ;;  %vm1175_vm2 = vweird.f32 %v3202_v18 }
 0x337   : > { %vm1176_vm1 = vmor %vm1174_vm3, %vm1175_vm2 }
 0x338   : > { %v1170_v59 = vmul.f32 %v3202_v18, %v1169_v3 }
 0x33a   : > { %v1171_v16 = vmul.f32 0.5, %v1170_v59 }
 0x33c   : > { %v1172_v31 = vsub.f32 1.5, %v1171_v16  ;;  %v1326_v26 = vpop.f32.mrf.mxu0  ;;  %v3109_v16 = vld [vmem:[%s4555_s4 + $0x60] sm:$0xff] }
 0x33d   : > { %v1327_v32 = vadd.f32 %v3783_v9, %v1326_v26 }
 0x33e   : > { %v1173_v34 = vmul.f32 %v3202_v18, %v1172_v31  ;;  %v1418_v2 = vpop.xlane.xlu2 %1417 }
 0x33f   : > { %v1357_v37 = vadd.f32 %v1327_v32, %v601_v12  ;;  %v1449_v36 = vmul.f32 %v1418_v2, %v3569_v19  ;;  %v3108_v32 = vld [vmem:[%s4555_s4 + $0x58] sm:$0xff] }
 0x340   : > { %v1177_v33 = vsel %vm1176_vm1, %v3202_v18, %v1173_v34  ;;  %v3110_v18 = vld [vmem:[%s4555_s4 + $0x68] sm:$0xff] }
 0x341   : > { %v1373_v43 = vmax.f32 %v1357_v37, 0.0  ;;  %v3842_v44 = vsub.f32 %v3791_v24, %v1449_v36  ;;  %v1193_v51 = vmul.f32 %v1177_v33, %v3769_v41  ;;  %v1226_v41 = vadd.f32 %v3714_v49, %v1209_v17  ;;  %1848 = vmatpush.bf16.msra.mxu1 %v3110_v18 }
 0x343   : > { %v3849_v47 = vadd.f32 %v1389_v53, %v1373_v43  ;;  %v1481_v39 = vmul.f32 %v3842_v44, %v3842_v44  ;;  %v1210_v45 = vmul.f32 %v3702_v20, %v1193_v51  ;;  %v3107_v53 = vld [vmem:[%s4555_s4 + $0x50] sm:$0xff] }
 0x344   : > { %v1328_v22 = vpop.f32.mrf.mxu0 }
 0x345   : > { %v1329_v24 = vadd.f32 %v3783_v9, %v1328_v22  ;;  %1429 = vadd.xlane.f32.xlu1 %v3849_v47  ;;  %1497 = vadd.xlane.f32.xlu2 %v1481_v39  ;;  %v1227_v27 = vadd.f32 %v3714_v49, %v1210_v45 }
 0x346   : > { %v1420_v0 = vpop.xlane.xlu0 %1419  ;;  %1849 = vmatpush.bf16.msra.mxu1 %v3109_v16 }
 0x347   : > { %v1358_v55 = vadd.f32 %v1329_v24, %v604_v30  ;;  %v1450_v56 = vmul.f32 %v1420_v0, %v3569_v19  ;;  %v1251_v57 = vpack.c.bf16 %v1227_v27, %v1226_v41 }
 0x349   : > { %v3860_v52 = vsub.f32 %v3805_v62, %v1450_v56  ;;  %1345 = vmatmul.bf16.gmra.mxu0 %v1251_v57  ;;  %v1374_v20 = vmax.f32 %v1358_v55, 0.0  ;;  %v610_v62 = vpop.f32.mrf.mxu1 }
 0x34a   : > { %v1392_v21 = vmul.f32 2.0, %v610_v62  ;;  %1850 = vmatpush.bf16.msra.mxu1 %v3108_v32 }
 0x34b   : > { %v1482_v50 = vmul.f32 %v3860_v52, %v3860_v52  ;;  %v3864_v58 = vadd.f32 %v1390_v38, %v1374_v20 }
 0x34c   : > { %v1331_v35 = vpop.f32.mrf.mxu0 }
 0x34d   : > { %v1332_v49 = vadd.f32 %v3783_v9, %v1331_v35  ;;  %1499 = vadd.xlane.f32.xlu0 %v1482_v50  ;;  %1431 = vadd.xlane.f32.xlu2 %v3864_v58 }
 0x34e   : > { %v1422_v60 = vpop.xlane.xlu1 %1421  ;;  %1851 = vmatpush.bf16.msra.mxu1 %v3107_v53 }
 0x34f   : > { %v1359_v63 = vadd.f32 %v1332_v49, %v607_v46  ;;  %v1451_v61 = vmul.f32 %v1422_v60, %v3569_v19 }
 0x351   : > { %v1375_v5 = vmax.f32 %v1359_v63, 0.0  ;;  %v3870_v6 = vsub.f32 %v3812_v48, %v1451_v61  ;;  %v613_v42 = vpop.f32.mrf.mxu1  ;;  %v3105_v61 = vld [vmem:[%s4555_s4 + $0x40] sm:$0xff] }
 0x352   : > { %v1393_v25 = vmul.f32 2.0, %v613_v42 }
 0x353   : > { %v1483_v4 = vmul.f32 %v3870_v6, %v3870_v6  ;;  %v3877_v8 = vadd.f32 %v1391_v40, %v1375_v5 }
 0x354   : > { %v1333_v54 = vpop.f32.mrf.mxu0 }
 0x355   : > { %v1334_v11 = vadd.f32 %v3783_v9, %v1333_v54  ;;  %1501 = vadd.xlane.f32.xlu0 %v1483_v4  ;;  %1433 = vadd.xlane.f32.xlu2 %v3877_v8 }
 0x356   : > { %v1424_v13 = vpop.xlane.xlu2 %1423 }
 0x357   : > { %v1360_v14 = vadd.f32 %v1334_v11, %v610_v62  ;;  %v1452_v48 = vmul.f32 %v1424_v13, %v3569_v19 }
 0x359   : > { %v1376_v12 = vmax.f32 %v1360_v14, 0.0  ;;  %v3883_v15 = vsub.f32 %v3819_v28, %v1452_v48  ;;  %v616_v33 = vpop.f32.mrf.mxu1 }
 0x35a   : > { %v1394_v39 = vmul.f32 2.0, %v616_v33 }
 0x35b   : > { %v3888_v3 = vadd.f32 %v1392_v21, %v1376_v12  ;;  %v1484_v59 = vmul.f32 %v3883_v15, %v3883_v15 }
 0x35c   : > { %v1336_v29 = vpop.f32.mrf.mxu0 }
 0x35d   : > { %v1337_v30 = vadd.f32 %v3783_v9, %v1336_v29  ;;  %1435 = vadd.xlane.f32.xlu0 %v3888_v3  ;;  %1503 = vadd.xlane.f32.xlu1 %v1484_v59 }
 0x35e   : > { %v1426_v28 = vpop.xlane.xlu0 %1425 }
 0x35f   : > { %v1361_v31 = vadd.f32 %v1337_v30, %v613_v42  ;;  %v1453_v26 = vmul.f32 %v1426_v28, %v3569_v19 }
 0x361   : > { %v1377_v34 = vmax.f32 %v1361_v31, 0.0  ;;  %v3902_v2 = vsub.f32 %v3826_v23, %v1453_v26  ;;  %v619_v0 = vpop.f32.mrf.mxu1 }
 0x362   : > { %v1395_v56 = vmul.f32 2.0, %v619_v0 }
 0x363   : > { %v3904_v37 = vadd.f32 %v1393_v25, %v1377_v34  ;;  %v1485_v36 = vmul.f32 %v3902_v2, %v3902_v2 }
 0x364   : > { %v1338_v43 = vpop.f32.mrf.mxu0 }
 0x365   : > { %v1339_v51 = vadd.f32 %v3783_v9, %v1338_v43  ;;  %1437 = vadd.xlane.f32.xlu0 %v3904_v37  ;;  %1505 = vadd.xlane.f32.xlu1 %v1485_v36 }
 0x366   : > { %v1428_v17 = vpop.xlane.xlu1 %1427 }
 0x367   : > { %v1362_v23 = vadd.f32 %v1339_v51, %v616_v33  ;;  %v1454_v10 = vmul.f32 %v1428_v17, %v3569_v19 }
 0x369   : > { %v1378_v45 = vmax.f32 %v1362_v23, 0.0  ;;  %v3915_v22 = vsub.f32 %v3833_v1, %v1454_v10  ;;  %v3106_v1 = vld [vmem:[%s4555_s4 + $0x48] sm:$0xff]  ;;  %v622_v62 = vpop.f32.mrf.mxu1 }
 0x36a   : > { %1852 = vmatpush.bf16.msra.mxu1 %v3106_v1  ;;  %v1396_v12 = vmul.f32 2.0, %v622_v62 }
 0x36b   : > { %v1486_v24 = vmul.f32 %v3915_v22, %v3915_v22  ;;  %v3919_v41 = vadd.f32 %v1394_v39, %v1378_v45 }
 0x36c   : > { %v1341_v27 = vpop.f32.mrf.mxu0 }
 0x36d   : > { %v1342_v46 = vadd.f32 %v3783_v9, %v1341_v27  ;;  %1507 = vadd.xlane.f32.xlu2 %v1486_v24  ;;  %1439 = vadd.xlane.f32.xlu1 %v3919_v41 }
 0x36e   : > { %1853 = vmatpush.bf16.msra.mxu1 %v3105_v61 }
 0x36f   : > { %v1363_v55 = vadd.f32 %v1342_v46, %v619_v0 }
 0x371   : > { %v1379_v57 = vmax.f32 %v1363_v55, 0.0  ;;  %v625_v59 = vpop.f32.mrf.mxu1 }
 0x372   : > { %v1397_v43 = vmul.f32 2.0, %v625_v59 }
 0x373   : > { %v3923_v20 = vadd.f32 %v1395_v56, %v1379_v57 }
 0x374   : > { %v1343_v38 = vpop.f32.mrf.mxu0 }
 0x375   : > { %1441 = vadd.xlane.f32.xlu1 %v3923_v20  ;;  %v1344_v49 = vadd.f32 %v3783_v9, %v1343_v38 }
 0x377   : > { %v1364_v7 = vadd.f32 %v1344_v49, %v622_v62 }
 0x379   : > { %v1380_v13 = vmax.f32 %v1364_v7, 0.0  ;;  %v628_v0 = vpop.f32.mrf.mxu1  ;;  %v3974_v7 = vld [vmem:[%s4556_s5 + $0x4] ss:$0 sm:$0xff] }
 0x37a   : > { %v1398_v49 = vmul.f32 2.0, %v628_v0 }
 0x37b   : > { %v3945_v16 = vadd.f32 %v1396_v12, %v1380_v13 }
 0x3b8   : > { %v1430_v50 = vpop.xlane.xlu1 %1429  ;;  %v1498_v35 = vpop.xlane.xlu2 %1497 }
 0x3b9   : > { %v1455_v60 = vmul.f32 %v1430_v50, %v3569_v19  ;;  %v1529_v63 = vmul.f32 %v1498_v35, %v3569_v19 }
 0x3bb   : > { %v3936_v40 = vsub.f32 %v3849_v47, %v1455_v60  ;;  %v1545_v5 = vadd.f32 1e-05, %v1529_v63 }
 0x3bd   : > { %3203 = vrsqrt.f32 %v1545_v5  ;;  %v1487_v4 = vmul.f32 %v3936_v40, %v3936_v40  ;;  %vm1567_vm5 = vweird.f32 %v1545_v5 }
 0x3bf   : > { %1509 = vadd.xlane.f32.xlu2 %v1487_v4 }
 0x3c0   : > { %v1500_v54 = vpop.xlane.xlu0 %1499  ;;  %v1432_v11 = vpop.xlane.xlu2 %1431 }
 0x3c1   : > { %v1530_v14 = vmul.f32 %v1500_v54, %v3569_v19  ;;  %v1456_v48 = vmul.f32 %v1432_v11, %v3569_v19 }
 0x3c3   : > { %v3204_v21 = vpop.eup %3203  ;;  %v1546_v18 = vadd.f32 1e-05, %v1530_v14  ;;  %v3943_v47 = vsub.f32 %v3864_v58, %v1456_v48 }
 0x3c4   : > { %v1562_v42 = vmul.f32 %v3204_v21, %v1545_v5  ;;  %vm1568_vm4 = vweird.f32 %v3204_v21 }
 0x3c5   : > { %3205 = vrsqrt.f32 %v1546_v18  ;;  %v1488_v29 = vmul.f32 %v3943_v47, %v3943_v47  ;;  %vm1569_vm6 = vmor %vm1567_vm5, %vm1568_vm4  ;;  %vm1577_vm8 = vweird.f32 %v1546_v18 }
 0x3c6   : > { %v1563_v30 = vmul.f32 %v3204_v21, %v1562_v42  ;;  %v1346_v28 = vpop.f32.mrf.mxu0 }
 0x3c7   : > { %v1347_v31 = vadd.f32 %v3783_v9, %v1346_v28  ;;  %1443 = vadd.xlane.f32.xlu2 %v3945_v16  ;;  %1511 = vadd.xlane.f32.xlu0 %v1488_v29 }
 0x3c8   : > { %v1564_v26 = vmul.f32 0.5, %v1563_v30  ;;  %v1502_v32 = vpop.xlane.xlu0 %1501  ;;  %v1434_v25 = vpop.xlane.xlu2 %1433 }
 0x3c9   : > { %v1365_v58 = vadd.f32 %v1347_v31, %v625_v59  ;;  %v1531_v34 = vmul.f32 %v1502_v32, %v3569_v19  ;;  %v1457_v36 = vmul.f32 %v1434_v25, %v3569_v19 }
 0x3ca   : > { %v1565_v53 = vsub.f32 1.5, %v1564_v26 }
 0x3cb   : > { %v3206_v33 = vpop.eup %3205  ;;  %v1381_v51 = vmax.f32 %v1365_v58, 0.0  ;;  %v3953_v17 = vadd.f32 1e-05, %v1531_v34  ;;  %v3956_v23 = vsub.f32 %v3877_v8, %v1457_v36 }
 0x3cc   : > { %v1566_v10 = vmul.f32 %v3204_v21, %v1565_v53  ;;  %v1572_v39 = vmul.f32 %v3206_v33, %v1546_v18  ;;  %vm1578_vm7 = vweird.f32 %v3206_v33 }
 0x3cd   : > { %3207 = vrsqrt.f32 %v3953_v17  ;;  %v3959_v45 = vadd.f32 %v1397_v43, %v1381_v51  ;;  %v1489_v24 = vmul.f32 %v3956_v23, %v3956_v23  ;;  %vm1579_vm9 = vmor %vm1577_vm8, %vm1578_vm7  ;;  %vm1587_vm11 = vweird.f32 %v3953_v17 }
 0x3ce   : > { %v1573_v27 = vmul.f32 %v3206_v33, %v1572_v39  ;;  %v1348_v46 = vpop.f32.mrf.mxu0  ;;  %v1570_v8 = vsel %vm1569_vm6, %v3204_v21, %v1566_v10  ;;  %v3987_v21 = vld [vmem:[%s4556_s5 + $0x7] ss:$0 sm:$0xff] }
 0x3cf   : > { %v1349_v55 = vadd.f32 %v3783_v9, %v1348_v46  ;;  %1445 = vadd.xlane.f32.xlu2 %v3959_v45  ;;  %1513 = vadd.xlane.f32.xlu0 %v1489_v24  ;;  %v1721_v61 = vmul.f32 %v1570_v8, %v3842_v44 }
 0x3d0   : > { %v1574_v56 = vmul.f32 0.5, %v1573_v27  ;;  %v1436_v57 = vpop.xlane.xlu0 %1435  ;;  %v1504_v1 = vpop.xlane.xlu1 %1503 }
 0x3d1   : > { %v1366_v38 = vadd.f32 %v1349_v55, %v628_v0  ;;  %v1458_v50 = vmul.f32 %v1436_v57, %v3569_v19  ;;  %v1532_v35 = vmul.f32 %v1504_v1, %v3569_v19  ;;  %v1738_v48 = vmul.f32 %v3974_v7, %v1721_v61 }
 0x3d2   : > { %v1575_v60 = vsub.f32 1.5, %v1574_v56 }
 0x3d3   : > { %v3208_v63 = vpop.eup %3207  ;;  %v1382_v62 = vmax.f32 %v1366_v38, 0.0  ;;  %v3969_v9 = vsub.f32 %v3888_v3, %v1458_v50  ;;  %v1548_v5 = vadd.f32 1e-05, %v1532_v35  ;;  %v1755_v32 = vadd.f32 %v3987_v21, %v1738_v48 }
 0x3d4   : > { %v1576_v4 = vmul.f32 %v3206_v33, %v1575_v60  ;;  %v1582_v54 = vmul.f32 %v3208_v63, %v3953_v17  ;;  %vm1588_vm10 = vweird.f32 %v3208_v63 }
 0x3d5   : > { %3209 = vrsqrt.f32 %v1548_v5  ;;  %v1490_v11 = vmul.f32 %v3969_v9, %v3969_v9  ;;  %v3979_v44 = vadd.f32 %v1398_v49, %v1382_v62  ;;  %vm1589_vm12 = vmor %vm1587_vm11, %vm1588_vm10  ;;  %vm1597_vm14 = vweird.f32 %v1548_v5 }
 0x3d6   : > { %v1580_v13 = vsel %vm1579_vm9, %v3206_v33, %v1576_v4  ;;  %v1583_v3 = vmul.f32 %v3208_v63, %v1582_v54 }
 0x3d7   : > { %v1722_v14 = vmul.f32 %v1580_v13, %v3860_v52  ;;  %1515 = vadd.xlane.f32.xlu1 %v1490_v11  ;;  %1447 = vadd.xlane.f32.xlu0 %v3979_v44 }
 0x3d8   : > { %v1584_v12 = vmul.f32 0.5, %v1583_v3  ;;  %v1438_v18 = vpop.xlane.xlu0 %1437  ;;  %v1506_v42 = vpop.xlane.xlu1 %1505 }
 0x3d9   : > { %v1459_v59 = vmul.f32 %v1438_v18, %v3569_v19  ;;  %v1533_v29 = vmul.f32 %v1506_v42, %v3569_v19  ;;  %v1739_v30 = vmul.f32 %v3974_v7, %v1722_v14 }
 0x3da   : > { %v1585_v52 = vsub.f32 1.5, %v1584_v12 }
 0x3db   : > { %v3210_v28 = vpop.eup %3209  ;;  %v3993_v31 = vsub.f32 %v3904_v37, %v1459_v59  ;;  %v1549_v26 = vadd.f32 1e-05, %v1533_v29  ;;  %v1756_v25 = vadd.f32 %v3987_v21, %v1739_v30 }
 0x3dc   : > { %v1586_v58 = vmul.f32 %v3208_v63, %v1585_v52  ;;  %v1592_v34 = vmul.f32 %v3210_v28, %v1548_v5  ;;  %vm1598_vm13 = vweird.f32 %v3210_v28 }
 0x3dd   : > { %3211 = vrsqrt.f32 %v1549_v26  ;;  %v1491_v36 = vmul.f32 %v3993_v31, %v3993_v31  ;;  %v1788_v53 = vpack.c.bf16 %v1756_v25, %v1755_v32  ;;  %vm1599_vm15 = vmor %vm1597_vm14, %vm1598_vm13  ;;  %vm1607_vm2 = vweird.f32 %v1549_v26 }
 0x3de   : > { %v1593_v33 = vmul.f32 %v3210_v28, %v1592_v34  ;;  %v1590_v10 = vsel %vm1589_vm12, %v3208_v63, %v1586_v58 }
 0x3df   : > { %1517 = vadd.xlane.f32.xlu1 %v1491_v36  ;;  %1854 = vmatmul.bf16.vlgmr.msra.gmra.mxu1 %v1788_v53  ;;  %v1723_v17 = vmul.f32 %v1590_v10, %v3870_v6 }
 0x3e0   : > { %v1594_v37 = vmul.f32 0.5, %v1593_v33  ;;  %v1440_v43 = vpop.xlane.xlu1 %1439  ;;  %v1508_v51 = vpop.xlane.xlu2 %1507 }
 0x3e1   : > { %v1460_v39 = vmul.f32 %v1440_v43, %v3569_v19  ;;  %v1534_v24 = vmul.f32 %v1508_v51, %v3569_v19  ;;  %v1740_v35 = vmul.f32 %v3974_v7, %v1723_v17 }
 0x3e2   : > { %v1595_v27 = vsub.f32 1.5, %v1594_v37 }
 0x3e3   : > { %v3212_v46 = vpop.eup %3211  ;;  %v4003_v0 = vsub.f32 %v3919_v41, %v1460_v39  ;;  %v1550_v55 = vadd.f32 1e-05, %v1534_v24  ;;  %v1757_v5 = vadd.f32 %v3987_v21, %v1740_v35 }
 0x3e4   : > { %v1596_v8 = vmul.f32 %v3210_v28, %v1595_v27  ;;  %v1602_v56 = vmul.f32 %v3212_v46, %v1549_v26  ;;  %vm1608_vm0 = vweird.f32 %v3212_v46 }
 0x3e5   : > { %3213 = vrsqrt.f32 %v1550_v55  ;;  %v1492_v57 = vmul.f32 %v4003_v0, %v4003_v0  ;;  %vm1609_vm3 = vmor %vm1607_vm2, %vm1608_vm0  ;;  %vm1617_vm4 = vweird.f32 %v1550_v55 }
 0x3e6   : > { %v1603_v1 = vmul.f32 %v3212_v46, %v1602_v56  ;;  %v1600_v38 = vsel %vm1599_vm15, %v3210_v28, %v1596_v8 }
 0x3e7   : > { %1519 = vadd.xlane.f32.xlu2 %v1492_v57  ;;  %v1724_v50 = vmul.f32 %v1600_v38, %v3883_v15 }
 0x3e8   : > { %v1604_v41 = vmul.f32 0.5, %v1603_v1  ;;  %v1442_v49 = vpop.xlane.xlu1 %1441 }
 0x3e9   : > { %v1461_v60 = vmul.f32 %v1442_v49, %v3569_v19  ;;  %v1741_v6 = vmul.f32 %v3974_v7, %v1724_v50 }
 0x3ea   : > { %v1605_v63 = vsub.f32 1.5, %v1604_v41 }
 0x3eb   : > { %v3214_v61 = vpop.eup %3213  ;;  %v4013_v62 = vsub.f32 %v3923_v20, %v1461_v60  ;;  %v1758_v4 = vadd.f32 %v3987_v21, %v1741_v6 }
 0x3ec   : > { %v1606_v54 = vmul.f32 %v3212_v46, %v1605_v63  ;;  %v1612_v15 = vmul.f32 %v3214_v61, %v1550_v55  ;;  %vm1618_vm1 = vweird.f32 %v3214_v61 }
 0x3ed   : > { %v1789_v11 = vpack.c.bf16 %v1758_v4, %v1757_v5  ;;  %v1493_v13 = vmul.f32 %v4013_v62, %v4013_v62  ;;  %vm1619_vm5 = vmor %vm1617_vm4, %vm1618_vm1 }
 0x3ee   : > { %v1613_v3 = vmul.f32 %v3214_v61, %v1612_v15  ;;  %v1610_v14 = vsel %vm1609_vm3, %v3212_v46, %v1606_v54 }
 0x3ef   : > { %1859 = vmatmul.bf16.gmra.mxu1 %v1789_v11  ;;  %1521 = vadd.xlane.f32.xlu0 %v1493_v13  ;;  %v1725_v12 = vmul.f32 %v1610_v14, %v3902_v2 }
 0x3f0   : > { %v1614_v48 = vmul.f32 0.5, %v1613_v3 }
 0x3f1   : > { %v1742_v29 = vmul.f32 %v3974_v7, %v1725_v12 }
 0x3f2   : > { %v1615_v20 = vsub.f32 1.5, %v1614_v48 }
 0x3f3   : > { %v1759_v52 = vadd.f32 %v3987_v21, %v1742_v29 }
 0x3f4   : > { %v1616_v18 = vmul.f32 %v3214_v61, %v1615_v20 }
 0x3f6   : > { %v1620_v42 = vsel %vm1619_vm5, %v3214_v61, %v1616_v18 }
 0x3f7   : > { %v1726_v59 = vmul.f32 %v1620_v42, %v3915_v22  ;;  %v648_v42 = vpop.f32.mrf.mxu2 }
 0x3f9   : > { %v1743_v30 = vmul.f32 %v3974_v7, %v1726_v59 }
 0x3fb   : > { %v1760_v28 = vadd.f32 %v3987_v21, %v1743_v30 }
 0x3fd   : > { %v1790_v26 = vpack.c.bf16 %v1760_v28, %v1759_v52 }
 0x3ff   : > { %1864 = vmatmul.bf16.gmra.mxu1 %v1790_v26 }
 0x432   : > { %v1510_v32 = vpop.xlane.xlu2 %1509 }
 0x433   : > { %v1535_v25 = vmul.f32 %v1510_v32, %v3569_v19 }
 0x435   : > { %v1551_v2 = vadd.f32 1e-05, %v1535_v25 }
 0x437   : > { %3215 = vrsqrt.f32 %v1551_v2  ;;  %vm1627_vm7 = vweird.f32 %v1551_v2 }
 0x43a   : > { %v1512_v58 = vpop.xlane.xlu0 %1511  ;;  %v1444_v34 = vpop.xlane.xlu2 %1443 }
 0x43b   : > { %v1536_v36 = vmul.f32 %v1512_v58, %v3569_v19  ;;  %v1462_v22 = vmul.f32 %v1444_v34, %v3569_v19 }
 0x43d   : > { %v3216_v53 = vpop.eup %3215  ;;  %v1552_v33 = vadd.f32 1e-05, %v1536_v36  ;;  %v4029_v37 = vsub.f32 %v3945_v16, %v1462_v22 }
 0x43e   : > { %v1622_v43 = vmul.f32 %v3216_v53, %v1551_v2  ;;  %vm1628_vm6 = vweird.f32 %v3216_v53  ;;  %v4057_v2 = vld [vmem:[%s4556_s5 + $0x2] ss:$0 sm:$0xff] }
 0x43f   : > { %3217 = vrsqrt.f32 %v1552_v33  ;;  %v1494_v51 = vmul.f32 %v4029_v37, %v4029_v37  ;;  %vm1629_vm8 = vmor %vm1627_vm7, %vm1628_vm6  ;;  %vm1637_vm10 = vweird.f32 %v1552_v33 }
 0x440   : > { %v1623_v10 = vmul.f32 %v3216_v53, %v1622_v43 }
 0x441   : > { %1523 = vadd.xlane.f32.xlu1 %v1494_v51 }
 0x442   : > { %v1624_v39 = vmul.f32 0.5, %v1623_v10  ;;  %v1514_v24 = vpop.xlane.xlu0 %1513  ;;  %v1446_v27 = vpop.xlane.xlu2 %1445 }
 0x443   : > { %v1537_v46 = vmul.f32 %v1514_v24, %v3569_v19  ;;  %v1463_v55 = vmul.f32 %v1446_v27, %v3569_v19  ;;  %v651_v24 = vpop.f32.mrf.mxu2 }
 0x444   : > { %v1625_v17 = vsub.f32 1.5, %v1624_v39 }
 0x445   : > { %v3218_v8 = vpop.eup %3217  ;;  %v1553_v56 = vadd.f32 1e-05, %v1537_v46  ;;  %v4036_v16 = vsub.f32 %v3959_v45, %v1463_v55 }
 0x446   : > { %v1626_v57 = vmul.f32 %v3216_v53, %v1625_v17  ;;  %v1632_v1 = vmul.f32 %v3218_v8, %v1552_v33  ;;  %vm1638_vm9 = vweird.f32 %v3218_v8 }
 0x447   : > { %3219 = vrsqrt.f32 %v1553_v56  ;;  %v1495_v38 = vmul.f32 %v4036_v16, %v4036_v16  ;;  %vm1639_vm11 = vmor %vm1637_vm10, %vm1638_vm9  ;;  %vm1647_vm13 = vweird.f32 %v1553_v56 }
 0x448   : > { %v1633_v50 = vmul.f32 %v3218_v8, %v1632_v1  ;;  %v1630_v35 = vsel %vm1629_vm8, %v3216_v53, %v1626_v57 }
 0x449   : > { %1525 = vadd.xlane.f32.xlu2 %v1495_v38  ;;  %v1727_v5 = vmul.f32 %v1630_v35, %v3936_v40 }
 0x44a   : > { %v1634_v41 = vmul.f32 0.5, %v1633_v50  ;;  %v1516_v49 = vpop.xlane.xlu1 %1515  ;;  %v1448_v60 = vpop.xlane.xlu0 %1447 }
 0x44b   : > { %v1538_v6 = vmul.f32 %v1516_v49, %v3569_v19  ;;  %v1464_v45 = vmul.f32 %v1448_v60, %v3569_v19  ;;  %v1744_v20 = vmul.f32 %v3974_v7, %v1727_v5 }
 0x44c   : > { %v1635_v63 = vsub.f32 1.5, %v1634_v41 }
 0x44d   : > { %v3220_v61 = vpop.eup %3219  ;;  %v1554_v4 = vadd.f32 1e-05, %v1538_v6  ;;  %v4044_v54 = vsub.f32 %v3979_v44, %v1464_v45  ;;  %v1761_v52 = vadd.f32 %v3987_v21, %v1744_v20 }
 0x44e   : > { %v1636_v15 = vmul.f32 %v3218_v8, %v1635_v63  ;;  %v1642_v11 = vmul.f32 %v3220_v61, %v1553_v56  ;;  %vm1648_vm12 = vweird.f32 %v3220_v61  ;;  %v1927_v56 = vmul.f32 2.0, %v648_v42 }
 0x44f   : > { %3221 = vrsqrt.f32 %v1554_v4  ;;  %v1496_v13 = vmul.f32 %v4044_v54, %v4044_v54  ;;  %vm1649_vm14 = vmor %vm1647_vm13, %vm1648_vm12  ;;  %vm1657_vm0 = vweird.f32 %v1554_v4 }
 0x450   : > { %v1640_v3 = vsel %vm1639_vm11, %v3218_v8, %v1636_v15  ;;  %v1643_v14 = vmul.f32 %v3220_v61, %v1642_v11  ;;  %v654_v15 = vpop.f32.mrf.mxu2 }
 0x451   : > { %v1728_v48 = vmul.f32 %v1640_v3, %v3943_v47  ;;  %1527 = vadd.xlane.f32.xlu0 %v1496_v13  ;;  %v1928_v3 = vmul.f32 2.0, %v651_v24 }
 0x452   : > { %v1644_v40 = vmul.f32 0.5, %v1643_v14  ;;  %v1518_v12 = vpop.xlane.xlu1 %1517 }
 0x453   : > { %v1539_v44 = vmul.f32 %v1518_v12, %v3569_v19  ;;  %v1745_v18 = vmul.f32 %v3974_v7, %v1728_v48 }
 0x454   : > { %v1645_v59 = vsub.f32 1.5, %v1644_v40 }
 0x455   : > { %v3222_v29 = vpop.eup %3221  ;;  %v1555_v30 = vadd.f32 1e-05, %v1539_v44  ;;  %v1762_v28 = vadd.f32 %v3987_v21, %v1745_v18 }
 0x456   : > { %v1646_v26 = vmul.f32 %v3220_v61, %v1645_v59  ;;  %v1652_v47 = vmul.f32 %v3222_v29, %v1554_v4  ;;  %vm1658_vm15 = vweird.f32 %v3222_v29 }
 0x457   : > { %3223 = vrsqrt.f32 %v1555_v30  ;;  %v1791_v32 = vpack.c.bf16 %v1762_v28, %v1761_v52  ;;  %vm1659_vm2 = vmor %vm1657_vm0, %vm1658_vm15  ;;  %vm1667_vm1 = vweird.f32 %v1555_v30 }
 0x458   : > { %v1653_v25 = vmul.f32 %v3222_v29, %v1652_v47  ;;  %v1650_v58 = vsel %vm1649_vm14, %v3220_v61, %v1646_v26  ;;  %v657_v47 = vpop.f32.mrf.mxu2 }
 0x459   : > { %1869 = vmatmul.bf16.gmra.mxu1 %v1791_v32  ;;  %v1729_v51 = vmul.f32 %v1650_v58, %v3956_v23 }
 0x45a   : > { %v1654_v34 = vmul.f32 0.5, %v1653_v25  ;;  %v1520_v36 = vpop.xlane.xlu2 %1519 }
 0x45b   : > { %v1540_v22 = vmul.f32 %v1520_v36, %v3569_v19  ;;  %v1746_v38 = vmul.f32 %v3974_v7, %v1729_v51 }
 0x45c   : > { %v1655_v53 = vsub.f32 1.5, %v1654_v34  ;;  %v1855_v33 = vpop.f32.mrf.mxu1 }
 0x45d   : > { %v3224_v43 = vpop.eup %3223  ;;  %v1556_v10 = vadd.f32 1e-05, %v1540_v22  ;;  %v1856_v39 = vadd.f32 %v4057_v2, %v1855_v33  ;;  %v1763_v45 = vadd.f32 %v3987_v21, %v1746_v38  ;;  %v1930_v33 = vmul.f32 2.0, %v657_v47 }
 0x45e   : > { %v1656_v27 = vmul.f32 %v3222_v29, %v1655_v53  ;;  %v1662_v46 = vmul.f32 %v3224_v43, %v1555_v30  ;;  %vm1668_vm3 = vweird.f32 %v3224_v43  ;;  %v1929_v30 = vmul.f32 2.0, %v654_v15 }
 0x45f   : > { %3225 = vrsqrt.f32 %v1556_v10  ;;  %v1895_v55 = vadd.f32 %v1856_v39, %v648_v42  ;;  %vm1669_vm4 = vmor %vm1667_vm1, %vm1668_vm3  ;;  %vm1677_vm6 = vweird.f32 %v1556_v10 }
 0x460   : > { %v1660_v17 = vsel %vm1659_vm2, %v3222_v29, %v1656_v27  ;;  %v1663_v8 = vmul.f32 %v3224_v43, %v1662_v46  ;;  %v660_v51 = vpop.f32.mrf.mxu2 }
 0x461   : > { %v1730_v57 = vmul.f32 %v1660_v17, %v3969_v9  ;;  %v1911_v1 = vmax.f32 %v1895_v55, 0.0  ;;  %v1931_v27 = vmul.f32 2.0, %v660_v51 }
 0x462   : > { %v1664_v50 = vmul.f32 0.5, %v1663_v8 }
 0x463   : > { %v4064_v23 = vadd.f32 %v1927_v56, %v1911_v1  ;;  %v1747_v35 = vmul.f32 %v3974_v7, %v1730_v57 }
 0x464   : > { %v1665_v41 = vsub.f32 1.5, %v1664_v50  ;;  %v1857_v49 = vpop.f32.mrf.mxu1 }
 0x465   : > { %v3226_v60 = vpop.eup %3225  ;;  %v1858_v6 = vadd.f32 %v4057_v2, %v1857_v49  ;;  %1961 = vadd.xlane.f32.xlu1 %v4064_v23  ;;  %v1764_v63 = vadd.f32 %v3987_v21, %v1747_v35  ;;  %v1522_v35 = vpop.xlane.xlu0 %1521 }
 0x466   : > { %v1666_v9 = vmul.f32 %v3224_v43, %v1665_v41  ;;  %v1672_v61 = vmul.f32 %v3226_v60, %v1556_v10  ;;  %vm1678_vm5 = vweird.f32 %v3226_v60  ;;  %v1541_v41 = vmul.f32 %v1522_v35, %v3569_v19 }
 0x467   : > { %v1896_v5 = vadd.f32 %v1858_v6, %v651_v24  ;;  %v1792_v4 = vpack.c.bf16 %v1764_v63, %v1763_v45  ;;  %vm1679_vm7 = vmor %vm1677_vm6, %vm1678_vm5 }
 0x468   : > { %v1673_v11 = vmul.f32 %v3226_v60, %v1672_v61  ;;  %v1670_v14 = vsel %vm1669_vm4, %v3224_v43, %v1666_v9  ;;  %v663_v56 = vpop.f32.mrf.mxu2  ;;  %v1557_v49 = vadd.f32 1e-05, %v1541_v41 }
 0x469   : > { %v1912_v13 = vmax.f32 %v1896_v5, 0.0  ;;  %1874 = vmatmul.bf16.gmra.mxu1 %v1792_v4  ;;  %v1731_v44 = vmul.f32 %v1670_v14, %v3993_v31  ;;  %v1932_v38 = vmul.f32 2.0, %v663_v56 }
 0x46a   : > { %v1674_v48 = vmul.f32 0.5, %v1673_v11  ;;  %3227 = vrsqrt.f32 %v1557_v49  ;;  %vm1687_vm9 = vweird.f32 %v1557_v49 }
 0x46b   : > { %v4071_v20 = vadd.f32 %v1928_v3, %v1912_v13  ;;  %v1748_v26 = vmul.f32 %v3974_v7, %v1731_v44 }
 0x46c   : > { %v1675_v40 = vsub.f32 1.5, %v1674_v48  ;;  %v1860_v12 = vpop.f32.mrf.mxu1 }
 0x46d   : > { %v1861_v18 = vadd.f32 %v4057_v2, %v1860_v12  ;;  %1963 = vadd.xlane.f32.xlu2 %v4071_v20  ;;  %v1765_v34 = vadd.f32 %v3987_v21, %v1748_v26 }
 0x46e   : > { %v1676_v42 = vmul.f32 %v3226_v60, %v1675_v40 }
 0x46f   : > { %v1897_v59 = vadd.f32 %v1861_v18, %v654_v15 }
 0x470   : > { %v1680_v29 = vsel %vm1679_vm7, %v3226_v60, %v1676_v42  ;;  %v3228_v60 = vpop.eup %3227 }
 0x471   : > { %v1732_v52 = vmul.f32 %v1680_v29, %v4003_v0  ;;  %v1913_v28 = vmax.f32 %v1897_v59, 0.0  ;;  %v1682_v6 = vmul.f32 %v3228_v60, %v1557_v49  ;;  %vm1688_vm8 = vweird.f32 %v3228_v60 }
 0x472   : > { %vm1689_vm10 = vmor %vm1687_vm9, %vm1688_vm8 }
 0x473   : > { %v4078_v32 = vadd.f32 %v1929_v30, %v1913_v28  ;;  %v1749_v31 = vmul.f32 %v3974_v7, %v1732_v52  ;;  %v1683_v45 = vmul.f32 %v3228_v60, %v1682_v6 }
 0x474   : > { %v1862_v25 = vpop.f32.mrf.mxu1 }
 0x475   : > { %v1863_v58 = vadd.f32 %v4057_v2, %v1862_v25  ;;  %1965 = vadd.xlane.f32.xlu0 %v4078_v32  ;;  %v1766_v36 = vadd.f32 %v3987_v21, %v1749_v31  ;;  %v1684_v5 = vmul.f32 0.5, %v1683_v45 }
 0x477   : > { %v1898_v22 = vadd.f32 %v1863_v58, %v657_v47  ;;  %v1793_v53 = vpack.c.bf16 %v1766_v36, %v1765_v34  ;;  %v1685_v4 = vsub.f32 1.5, %v1684_v5 }
 0x479   : > { %v1914_v0 = vmax.f32 %v1898_v22, 0.0  ;;  %1879 = vmatmul.bf16.gmra.mxu1 %v1793_v53  ;;  %v1686_v14 = vmul.f32 %v3228_v60, %v1685_v4  ;;  %v666_v22 = vpop.f32.mrf.mxu2 }
 0x47a   : > { %v1933_v49 = vmul.f32 2.0, %v666_v22 }
 0x47b   : > { %v4085_v43 = vadd.f32 %v1930_v33, %v1914_v0  ;;  %v1690_v12 = vsel %vm1689_vm10, %v3228_v60, %v1686_v14 }
 0x47c   : > { %v1865_v10 = vpop.f32.mrf.mxu1  ;;  %v1733_v30 = vmul.f32 %v1690_v12, %v4013_v62 }
 0x47d   : > { %v1866_v39 = vadd.f32 %v4057_v2, %v1865_v10  ;;  %1967 = vadd.xlane.f32.xlu1 %v4085_v43 }
 0x47e   : > { %v1750_v58 = vmul.f32 %v3974_v7, %v1733_v30 }
 0x47f   : > { %v1899_v24 = vadd.f32 %v1866_v39, %v660_v51 }
 0x480   : > { %v1767_v62 = vadd.f32 %v3987_v21, %v1750_v58 }
 0x481   : > { %v1915_v46 = vmax.f32 %v1899_v24, 0.0 }
 0x483   : > { %v4089_v55 = vadd.f32 %v1931_v27, %v1915_v46 }
 0x484   : > { %v1867_v17 = vpop.f32.mrf.mxu1 }
 0x485   : > { %v1868_v8 = vadd.f32 %v4057_v2, %v1867_v17  ;;  %1969 = vadd.xlane.f32.xlu2 %v4089_v55 }
 0x487   : > { %v1900_v57 = vadd.f32 %v1868_v8, %v663_v56 }
 0x489   : > { %v1916_v1 = vmax.f32 %v1900_v57, 0.0  ;;  %v669_v57 = vpop.f32.mrf.mxu2 }
 0x48b   : > { %v4093_v50 = vadd.f32 %v1932_v38, %v1916_v1 }
 0x48d   : > { %1971 = vadd.xlane.f32.xlu0 %v4093_v50 }
 0x4b4   : > { %v1524_v63 = vpop.xlane.xlu1 %1523 }
 0x4b5   : > { %v1542_v9 = vmul.f32 %v1524_v63, %v3569_v19 }
 0x4b7   : > { %v1558_v61 = vadd.f32 1e-05, %v1542_v9 }
 0x4b9   : > { %3229 = vrsqrt.f32 %v1558_v61  ;;  %vm1697_vm12 = vweird.f32 %v1558_v61 }
 0x4bc   : > { %v1526_v15 = vpop.xlane.xlu2 %1525 }
 0x4bd   : > { %v1543_v11 = vmul.f32 %v1526_v15, %v3569_v19 }
 0x4bf   : > { %v3230_v13 = vpop.eup %3229  ;;  %v1559_v3 = vadd.f32 1e-05, %v1543_v11 }
 0x4c0   : > { %v1692_v48 = vmul.f32 %v3230_v13, %v1558_v61  ;;  %vm1698_vm11 = vweird.f32 %v3230_v13 }
 0x4c1   : > { %3231 = vrsqrt.f32 %v1559_v3  ;;  %vm1699_vm13 = vmor %vm1697_vm12, %vm1698_vm11  ;;  %vm1707_vm15 = vweird.f32 %v1559_v3 }
 0x4c2   : > { %v1693_v40 = vmul.f32 %v3230_v13, %v1692_v48  ;;  %v672_v48 = vpop.f32.mrf.mxu2 }
 0x4c4   : > { %v1694_v44 = vmul.f32 0.5, %v1693_v40  ;;  %v1528_v18 = vpop.xlane.xlu0 %1527 }
 0x4c5   : > { %v1544_v42 = vmul.f32 %v1528_v18, %v3569_v19 }
 0x4c6   : > { %v1695_v59 = vsub.f32 1.5, %v1694_v44 }
 0x4c7   : > { %v3232_v29 = vpop.eup %3231  ;;  %v1560_v52 = vadd.f32 1e-05, %v1544_v42 }
 0x4c8   : > { %v1696_v28 = vmul.f32 %v3230_v13, %v1695_v59  ;;  %v1702_v26 = vmul.f32 %v3232_v29, %v1559_v3  ;;  %vm1708_vm14 = vweird.f32 %v3232_v29 }
 0x4c9   : > { %3233 = vrsqrt.f32 %v1560_v52  ;;  %vm1709_vm0 = vmor %vm1707_vm15, %vm1708_vm14  ;;  %vm1717_vm3 = vweird.f32 %v1560_v52 }
 0x4ca   : > { %v1700_v47 = vsel %vm1699_vm13, %v3230_v13, %v1696_v28  ;;  %v1703_v31 = vmul.f32 %v3232_v29, %v1702_v26  ;;  %v675_v26 = vpop.f32.mrf.mxu2 }
 0x4cb   : > { %v1734_v25 = vmul.f32 %v1700_v47, %v4029_v37 }
 0x4cc   : > { %v1704_v34 = vmul.f32 0.5, %v1703_v31 }
 0x4cd   : > { %v1751_v36 = vmul.f32 %v3974_v7, %v1734_v25 }
 0x4ce   : > { %v1705_v53 = vsub.f32 1.5, %v1704_v34 }
 0x4cf   : > { %v3234_v0 = vpop.eup %3233  ;;  %v1768_v33 = vadd.f32 %v3987_v21, %v1751_v36 }
 0x4d0   : > { %v1706_v51 = vmul.f32 %v3232_v29, %v1705_v53  ;;  %v1712_v10 = vmul.f32 %v3234_v0, %v1560_v52  ;;  %vm1718_vm2 = vweird.f32 %v3234_v0  ;;  %v1935_v52 = vmul.f32 2.0, %v672_v48 }
 0x4d1   : > { %v1794_v39 = vpack.c.bf16 %v1768_v33, %v1767_v62  ;;  %vm1719_vm1 = vmor %vm1717_vm3, %vm1718_vm2  ;;  %v1936_v53 = vmul.f32 2.0, %v675_v26 }
 0x4d2   : > { %v1713_v24 = vmul.f32 %v3234_v0, %v1712_v10  ;;  %v1710_v37 = vsel %vm1709_vm0, %v3232_v29, %v1706_v51  ;;  %v678_v51 = vpop.f32.mrf.mxu2 }
 0x4d3   : > { %1884 = vmatmul.bf16.gmra.mxu1 %v1794_v39  ;;  %v1735_v8 = vmul.f32 %v1710_v37, %v4036_v16 }
 0x4d4   : > { %v1714_v27 = vmul.f32 0.5, %v1713_v24 }
 0x4d5   : > { %v1752_v16 = vmul.f32 %v3974_v7, %v1735_v8 }
 0x4d6   : > { %v1715_v46 = vsub.f32 1.5, %v1714_v27  ;;  %v1870_v17 = vpop.f32.mrf.mxu1 }
 0x4d7   : > { %v1871_v56 = vadd.f32 %v4057_v2, %v1870_v17 }
 0x4d8   : > { %v1716_v1 = vmul.f32 %v3234_v0, %v1715_v46  ;;  %v1962_v38 = vpop.xlane.xlu1 %1961  ;;  %v1937_v46 = vmul.f32 2.0, %v678_v51 }
 0x4d9   : > { %v1901_v35 = vadd.f32 %v1871_v56, %v666_v22  ;;  %v1993_v41 = vmul.f32 %v1962_v38, %v3569_v19 }
 0x4da   : > { %v1720_v60 = vsel %vm1719_vm1, %v3234_v0, %v1716_v1  ;;  %v681_v38 = vpop.f32.mrf.mxu2 }
 0x4db   : > { %v1736_v6 = vmul.f32 %v1720_v60, %v4044_v54  ;;  %v1917_v45 = vmax.f32 %v1901_v35, 0.0  ;;  %v4111_v63 = vsub.f32 %v4064_v23, %v1993_v41  ;;  %v1769_v54 = vadd.f32 %v3987_v21, %v1752_v16 }
 0x4dc   : > { %v1938_v60 = vmul.f32 2.0, %v681_v38 }
 0x4dd   : > { %v4114_v9 = vadd.f32 %v1933_v49, %v1917_v45  ;;  %v2025_v61 = vmul.f32 %v4111_v63, %v4111_v63  ;;  %v1753_v5 = vmul.f32 %v3974_v7, %v1736_v6  ;;  %v1934_v7 = vmul.f32 2.0, %v669_v57 }
 0x4de   : > { %v1872_v4 = vpop.f32.mrf.mxu1 }
 0x4df   : > { %v1873_v15 = vadd.f32 %v4057_v2, %v1872_v4  ;;  %1973 = vadd.xlane.f32.xlu0 %v4114_v9  ;;  %2041 = vadd.xlane.f32.xlu1 %v2025_v61  ;;  %v1770_v23 = vadd.f32 %v3987_v21, %v1753_v5  ;;  %v3120_v61 = vld [vmem:[%s4555_s4 + $0xb8] sm:$0xff]  ;;  %v3119_v5 = vld [vmem:[%s4555_s4 + $0xb0] sm:$0xff]  ;;  %v3117_v4 = vld [vmem:[%s4555_s4 + $0xa0] sm:$0xff] }
 0x4e0   : > { %v1964_v11 = vpop.xlane.xlu2 %1963  ;;  %2390 = vmatpush.bf16.msra.mxu2 %v3120_v61 }
 0x4e1   : > { %v1902_v13 = vadd.f32 %v1873_v15, %v669_v57  ;;  %v1994_v3 = vmul.f32 %v1964_v11, %v3569_v19  ;;  %v1795_v14 = vpack.c.bf16 %v1770_v23, %v1769_v54  ;;  %v3116_v15 = vld [vmem:[%s4555_s4 + $0x98] sm:$0xff]  ;;  %v3115_v23 = vld [vmem:[%s4555_s4 + $0x90] sm:$0xff] }
 0x4e2   : > { %v684_v54 = vpop.f32.mrf.mxu2 }
 0x4e3   : > { %v1918_v40 = vmax.f32 %v1902_v13, 0.0  ;;  %v4125_v12 = vsub.f32 %v4071_v20, %v1994_v3  ;;  %1889 = vmatmul.bf16.gmra.mxu1 %v1795_v14  ;;  %v3114_v13 = vld [vmem:[%s4555_s4 + $0x88] sm:$0xff] }
 0x4e4   : > { %2391 = vmatpush.bf16.msra.mxu2 %v3119_v5 }
 0x4e5   : > { %v4127_v44 = vadd.f32 %v1934_v7, %v1918_v40  ;;  %v2026_v18 = vmul.f32 %v4125_v12, %v4125_v12 }
 0x4e6   : > { %v1875_v42 = vpop.f32.mrf.mxu1 }
 0x4e7   : > { %v1876_v21 = vadd.f32 %v4057_v2, %v1875_v42  ;;  %1975 = vadd.xlane.f32.xlu1 %v4127_v44  ;;  %2043 = vadd.xlane.f32.xlu2 %v2026_v18  ;;  %v3113_v42 = vld [vmem:[%s4555_s4 + $0x80] sm:$0xff] }
 0x4e8   : > { %v1966_v59 = vpop.xlane.xlu0 %1965 }
 0x4e9   : > { %v1903_v29 = vadd.f32 %v1876_v21, %v672_v48  ;;  %v1995_v30 = vmul.f32 %v1966_v59, %v3569_v19  ;;  %v1939_v21 = vmul.f32 2.0, %v684_v54 }
 0x4ea   : > { %v687_v59 = vpop.f32.mrf.mxu2 }
 0x4eb   : > { %v1919_v20 = vmax.f32 %v1903_v29, 0.0  ;;  %v4135_v28 = vsub.f32 %v4078_v32, %v1995_v30 }
 0x4ed   : > { %v4137_v47 = vadd.f32 %v1935_v52, %v1919_v20  ;;  %v2027_v31 = vmul.f32 %v4135_v28, %v4135_v28 }
 0x4ee   : > { %v1877_v25 = vpop.f32.mrf.mxu1 }
 0x4ef   : > { %v1878_v58 = vadd.f32 %v4057_v2, %v1877_v25  ;;  %1977 = vadd.xlane.f32.xlu1 %v4137_v47  ;;  %2045 = vadd.xlane.f32.xlu2 %v2027_v31 }
 0x4f0   : > { %v1968_v34 = vpop.xlane.xlu1 %1967 }
 0x4f1   : > { %v1904_v36 = vadd.f32 %v1878_v58, %v675_v26  ;;  %v1996_v22 = vmul.f32 %v1968_v34, %v3569_v19 }
 0x4f3   : > { %v1920_v0 = vmax.f32 %v1904_v36, 0.0  ;;  %v4145_v32 = vsub.f32 %v4085_v43, %v1996_v22 }
 0x4f5   : > { %v2028_v62 = vmul.f32 %v4145_v32, %v4145_v32  ;;  %v4149_v33 = vadd.f32 %v1936_v53, %v1920_v0  ;;  %v1940_v0 = vmul.f32 2.0, %v687_v59 }
 0x4f6   : > { %v1880_v10 = vpop.f32.mrf.mxu1 }
 0x4f7   : > { %v1881_v39 = vadd.f32 %v4057_v2, %v1880_v10  ;;  %2047 = vadd.xlane.f32.xlu0 %v2028_v62  ;;  %1979 = vadd.xlane.f32.xlu2 %v4149_v33 }
 0x4f8   : > { %v1970_v24 = vpop.xlane.xlu2 %1969 }
 0x4f9   : > { %v1905_v37 = vadd.f32 %v1881_v39, %v678_v51  ;;  %v1997_v27 = vmul.f32 %v1970_v24, %v3569_v19  ;;  %v690_v24 = vpop.f32.mrf.mxu2 }
 0x4fb   : > { %v1921_v17 = vmax.f32 %v1905_v37, 0.0  ;;  %v4155_v43 = vsub.f32 %v4089_v55, %v1997_v27 }
 0x4fd   : > { %v4157_v8 = vadd.f32 %v1937_v46, %v1921_v17  ;;  %v2029_v56 = vmul.f32 %v4155_v43, %v4155_v43 }
 0x4fe   : > { %v1882_v57 = vpop.f32.mrf.mxu1 }
 0x4ff   : > { %v1883_v1 = vadd.f32 %v4057_v2, %v1882_v57  ;;  %1981 = vadd.xlane.f32.xlu2 %v4157_v8  ;;  %2049 = vadd.xlane.f32.xlu0 %v2029_v56 }
 0x500   : > { %v1972_v35 = vpop.xlane.xlu0 %1971 }
 0x501   : > { %v1906_v41 = vadd.f32 %v1883_v1, %v681_v38  ;;  %v1998_v49 = vmul.f32 %v1972_v35, %v3569_v19 }
 0x503   : > { %v1922_v6 = vmax.f32 %v1906_v41, 0.0  ;;  %v4165_v55 = vsub.f32 %v4093_v50, %v1998_v49  ;;  %v3118_v50 = vld [vmem:[%s4555_s4 + $0xa8] sm:$0xff] }
 0x504   : > { %2392 = vmatpush.bf16.msra.mxu2 %v3118_v50 }
 0x505   : > { %v2030_v45 = vmul.f32 %v4165_v55, %v4165_v55  ;;  %v4169_v16 = vadd.f32 %v1938_v60, %v1922_v6  ;;  %v1941_v6 = vmul.f32 2.0, %v690_v24 }
 0x507   : > { %2051 = vadd.xlane.f32.xlu1 %v2030_v45  ;;  %1983 = vadd.xlane.f32.xlu0 %v4169_v16 }
 0x508   : > { %2393 = vmatpush.bf16.msra.mxu2 %v3117_v4 }
 0x50c   : > { %2394 = vmatpush.bf16.msra.mxu2 %v3116_v15 }
 0x510   : > { %2395 = vmatpush.bf16.msra.mxu2 %v3115_v23 }
 0x514   : > { %2396 = vmatpush.bf16.msra.mxu2 %v3114_v13  ;;  %v693_v13 = vpop.f32.mrf.mxu2 }
 0x518   : > { %2397 = vmatpush.bf16.msra.mxu2 %v3113_v42 }
 0x550   : > { %v1885_v11 = vpop.f32.mrf.mxu1 }
 0x551   : > { %v1886_v3 = vadd.f32 %v4057_v2, %v1885_v11 }
 0x552   : > { %v1974_v14 = vpop.xlane.xlu0 %1973  ;;  %v2042_v48 = vpop.xlane.xlu1 %2041 }
 0x553   : > { %v1907_v40 = vadd.f32 %v1886_v3, %v684_v54  ;;  %v1999_v7 = vmul.f32 %v1974_v14, %v3569_v19  ;;  %v2073_v18 = vmul.f32 %v2042_v48, %v3569_v19 }
 0x555   : > { %v1923_v29 = vmax.f32 %v1907_v40, 0.0  ;;  %v4200_v30 = vsub.f32 %v4114_v9, %v1999_v7  ;;  %v2089_v52 = vadd.f32 1e-05, %v2073_v18 }
 0x557   : > { %3235 = vrsqrt.f32 %v2089_v52  ;;  %v2031_v20 = vmul.f32 %v4200_v30, %v4200_v30  ;;  %v4204_v26 = vadd.f32 %v1939_v21, %v1923_v29  ;;  %vm2111_vm5 = vweird.f32 %v2089_v52 }
 0x558   : > { %v1887_v31 = vpop.f32.mrf.mxu1  ;;  %v1942_v21 = vmul.f32 2.0, %v693_v13 }
 0x559   : > { %v1888_v25 = vadd.f32 %v4057_v2, %v1887_v31  ;;  %2053 = vadd.xlane.f32.xlu1 %v2031_v20  ;;  %1985 = vadd.xlane.f32.xlu0 %v4204_v26 }
 0x55a   : > { %v1976_v58 = vpop.xlane.xlu1 %1975  ;;  %v2044_v34 = vpop.xlane.xlu2 %2043 }
 0x55b   : > { %v1908_v36 = vadd.f32 %v1888_v25, %v687_v59  ;;  %v2000_v9 = vmul.f32 %v1976_v58, %v3569_v19  ;;  %v2074_v22 = vmul.f32 %v2044_v34, %v3569_v19  ;;  %v4242_v25 = vld [vmem:[%s4556_s5 + $0x5] ss:$0 sm:$0xff] }
 0x55d   : > { %v3236_v53 = vpop.eup %3235  ;;  %v1924_v62 = vmax.f32 %v1908_v36, 0.0  ;;  %v4211_v51 = vsub.f32 %v4127_v44, %v2000_v9  ;;  %v2090_v10 = vadd.f32 1e-05, %v2074_v22 }
 0x55e   : > { %v2106_v39 = vmul.f32 %v3236_v53, %v2089_v52  ;;  %vm2112_vm4 = vweird.f32 %v3236_v53 }
 0x55f   : > { %3237 = vrsqrt.f32 %v2090_v10  ;;  %v4213_v37 = vadd.f32 %v1940_v0, %v1924_v62  ;;  %v2032_v27 = vmul.f32 %v4211_v51, %v4211_v51  ;;  %vm2113_vm6 = vmor %vm2111_vm5, %vm2112_vm4  ;;  %vm2121_vm8 = vweird.f32 %v2090_v10  ;;  %v4255_v0 = vld [vmem:[%s4556_s5 + $0x8] ss:$0 sm:$0xff] }
 0x560   : > { %v2107_v46 = vmul.f32 %v3236_v53, %v2106_v39  ;;  %v1890_v17 = vpop.f32.mrf.mxu1 }
 0x561   : > { %v1891_v56 = vadd.f32 %v4057_v2, %v1890_v17  ;;  %1987 = vadd.xlane.f32.xlu1 %v4213_v37  ;;  %2055 = vadd.xlane.f32.xlu2 %v2032_v27 }
 0x562   : > { %v2108_v57 = vmul.f32 0.5, %v2107_v46  ;;  %v1978_v1 = vpop.xlane.xlu1 %1977  ;;  %v2046_v44 = vpop.xlane.xlu2 %2045 }
 0x563   : > { %v1909_v38 = vadd.f32 %v1891_v56, %v690_v24  ;;  %v2001_v35 = vmul.f32 %v1978_v1, %v3569_v19  ;;  %v2075_v41 = vmul.f32 %v2046_v44, %v3569_v19 }
 0x564   : > { %v2109_v49 = vsub.f32 1.5, %v2108_v57 }
 0x565   : > { %v3238_v60 = vpop.eup %3237  ;;  %v1925_v45 = vmax.f32 %v1909_v38, 0.0  ;;  %v4222_v61 = vsub.f32 %v4137_v47, %v2001_v35  ;;  %v4224_v5 = vadd.f32 1e-05, %v2075_v41 }
 0x566   : > { %v2110_v50 = vmul.f32 %v3236_v53, %v2109_v49  ;;  %v2116_v4 = vmul.f32 %v3238_v60, %v2090_v10  ;;  %vm2122_vm7 = vweird.f32 %v3238_v60 }
 0x567   : > { %3239 = vrsqrt.f32 %v4224_v5  ;;  %v4227_v15 = vadd.f32 %v1941_v6, %v1925_v45  ;;  %v2033_v54 = vmul.f32 %v4222_v61, %v4222_v61  ;;  %vm2123_vm9 = vmor %vm2121_vm8, %vm2122_vm7  ;;  %vm2131_vm11 = vweird.f32 %v4224_v5 }
 0x568   : > { %v2117_v23 = vmul.f32 %v3238_v60, %v2116_v4  ;;  %v1892_v11 = vpop.f32.mrf.mxu1  ;;  %v2114_v3 = vsel %vm2113_vm6, %v3236_v53, %v2110_v50 }
 0x569   : > { %v1893_v47 = vadd.f32 %v4057_v2, %v1892_v11  ;;  %1989 = vadd.xlane.f32.xlu1 %v4227_v15  ;;  %2057 = vadd.xlane.f32.xlu2 %v2033_v54  ;;  %v2265_v52 = vmul.f32 %v2114_v3, %v4111_v63 }
 0x56a   : > { %v2118_v14 = vmul.f32 0.5, %v2117_v23  ;;  %v2048_v48 = vpop.xlane.xlu0 %2047  ;;  %v1980_v40 = vpop.xlane.xlu2 %1979 }
 0x56b   : > { %v1910_v7 = vadd.f32 %v1893_v47, %v693_v13  ;;  %v2076_v18 = vmul.f32 %v2048_v48, %v3569_v19  ;;  %v2002_v42 = vmul.f32 %v1980_v40, %v3569_v19  ;;  %v2282_v53 = vmul.f32 %v4242_v25, %v2265_v52 }
 0x56c   : > { %v2119_v59 = vsub.f32 1.5, %v2118_v14 }
 0x56d   : > { %v3240_v29 = vpop.eup %3239  ;;  %v1926_v20 = vmax.f32 %v1910_v7, 0.0  ;;  %v2092_v2 = vadd.f32 1e-05, %v2076_v18  ;;  %v4237_v31 = vsub.f32 %v4149_v33, %v2002_v42  ;;  %v4264_v1 = vadd.f32 %v4255_v0, %v2282_v53 }
 0x56e   : > { %v2120_v58 = vmul.f32 %v3238_v60, %v2119_v59  ;;  %v2126_v34 = vmul.f32 %v3240_v29, %v4224_v5  ;;  %vm2132_vm10 = vweird.f32 %v3240_v29 }
 0x56f   : > { %3241 = vrsqrt.f32 %v2092_v2  ;;  %v4245_v36 = vadd.f32 %v1942_v21, %v1926_v20  ;;  %v2034_v63 = vmul.f32 %v4237_v31, %v4237_v31  ;;  %vm2133_vm12 = vmor %vm2131_vm11, %vm2132_vm10  ;;  %vm2141_vm14 = vweird.f32 %v2092_v2 }
 0x570   : > { %v2124_v9 = vsel %vm2123_vm9, %v3238_v60, %v2120_v58  ;;  %v2127_v22 = vmul.f32 %v3240_v29, %v2126_v34 }
 0x571   : > { %v2266_v33 = vmul.f32 %v2124_v9, %v4125_v12  ;;  %1991 = vadd.xlane.f32.xlu2 %v4245_v36  ;;  %2059 = vadd.xlane.f32.xlu0 %v2034_v63 }
 0x572   : > { %v2128_v62 = vmul.f32 0.5, %v2127_v22  ;;  %v2050_v10 = vpop.xlane.xlu0 %2049  ;;  %v1982_v39 = vpop.xlane.xlu2 %1981 }
 0x573   : > { %v2077_v24 = vmul.f32 %v2050_v10, %v3569_v19  ;;  %v2003_v27 = vmul.f32 %v1982_v39, %v3569_v19  ;;  %v2283_v46 = vmul.f32 %v4242_v25, %v2266_v33 }
 0x574   : > { %v2129_v12 = vsub.f32 1.5, %v2128_v62 }
 0x575   : > { %v3242_v17 = vpop.eup %3241  ;;  %v2093_v56 = vadd.f32 1e-05, %v2077_v24  ;;  %v4261_v57 = vsub.f32 %v4157_v8, %v2003_v27  ;;  %v4267_v44 = vadd.f32 %v4255_v0, %v2283_v46 }
 0x576   : > { %v2130_v38 = vmul.f32 %v3240_v29, %v2129_v12  ;;  %v2136_v35 = vmul.f32 %v3242_v17, %v2092_v2  ;;  %vm2142_vm13 = vweird.f32 %v3242_v17 }
 0x577   : > { %3243 = vrsqrt.f32 %v2093_v56  ;;  %v2332_v41 = vpack.c.bf16 %v4267_v44, %v4264_v1  ;;  %v2035_v49 = vmul.f32 %v4261_v57, %v4261_v57  ;;  %vm2143_vm15 = vmor %vm2141_vm14, %vm2142_vm13  ;;  %vm2151_vm2 = vweird.f32 %v2093_v56 }
 0x578   : > { %v2137_v8 = vmul.f32 %v3242_v17, %v2136_v35  ;;  %v2134_v50 = vsel %vm2133_vm12, %v3240_v29, %v2130_v38  ;;  %v3127_v38 = vld [vmem:[%s4555_s4 + $0xf0] sm:$0xff] }
 0x579   : > { %2398 = vmatmul.bf16.vlgmr.msra.gmra.mxu2 %v2332_v41  ;;  %2061 = vadd.xlane.f32.xlu0 %v2035_v49  ;;  %v2267_v5 = vmul.f32 %v2134_v50, %v4135_v28 }
 0x57a   : > { %v2138_v60 = vmul.f32 0.5, %v2137_v8  ;;  %v2052_v6 = vpop.xlane.xlu1 %2051  ;;  %v1984_v45 = vpop.xlane.xlu0 %1983  ;;  %v3126_v8 = vld [vmem:[%s4555_s4 + $0xe8] sm:$0xff] }
 0x57b   : > { %v2078_v4 = vmul.f32 %v2052_v6, %v3569_v19  ;;  %v2004_v54 = vmul.f32 %v1984_v45, %v3569_v19  ;;  %v2284_v42 = vmul.f32 %v4242_v25, %v2267_v5 }
 0x57c   : > { %v2139_v23 = vsub.f32 1.5, %v2138_v60 }
 0x57d   : > { %v3244_v11 = vpop.eup %3243  ;;  %v2094_v13 = vadd.f32 1e-05, %v2078_v4  ;;  %v4277_v47 = vsub.f32 %v4169_v16, %v2004_v54  ;;  %v4286_v29 = vadd.f32 %v4255_v0, %v2284_v42  ;;  %v3123_v42 = vld [vmem:[%s4555_s4 + $0xd0] sm:$0xff] }
 0x57e   : > { %v2140_v3 = vmul.f32 %v3242_v17, %v2139_v23  ;;  %v2146_v14 = vmul.f32 %v3244_v11, %v2093_v56  ;;  %vm2152_vm0 = vweird.f32 %v3244_v11 }
 0x57f   : > { %3245 = vrsqrt.f32 %v2094_v13  ;;  %v2036_v48 = vmul.f32 %v4277_v47, %v4277_v47  ;;  %vm2153_vm3 = vmor %vm2151_vm2, %vm2152_vm0  ;;  %vm2161_vm4 = vweird.f32 %v2094_v13 }
 0x580   : > { %v2147_v40 = vmul.f32 %v3244_v11, %v2146_v14  ;;  %v2144_v7 = vsel %vm2143_vm15, %v3242_v17, %v2140_v3  ;;  %v3124_v3 = vld [vmem:[%s4555_s4 + $0xd8] sm:$0xff] }
 0x581   : > { %2063 = vadd.xlane.f32.xlu1 %v2036_v48  ;;  %v2268_v18 = vmul.f32 %v2144_v7, %v4145_v32 }
 0x582   : > { %v2148_v21 = vmul.f32 0.5, %v2147_v40 }
 0x583   : > { %v2285_v16 = vmul.f32 %v4242_v25, %v2268_v18 }
 0x584   : > { %v2149_v59 = vsub.f32 1.5, %v2148_v21 }
 0x585   : > { %v3246_v28 = vpop.eup %3245  ;;  %v4289_v52 = vadd.f32 %v4255_v0, %v2285_v16 }
 0x586   : > { %v2150_v20 = vmul.f32 %v3244_v11, %v2149_v59  ;;  %v2156_v2 = vmul.f32 %v3246_v28, %v2094_v13  ;;  %vm2162_vm1 = vweird.f32 %v3246_v28 }
 0x587   : > { %v2333_v58 = vpack.c.bf16 %v4289_v52, %v4286_v29  ;;  %vm2163_vm5 = vmor %vm2161_vm4, %vm2162_vm1 }
 0x588   : > { %v2157_v32 = vmul.f32 %v3246_v28, %v2156_v2  ;;  %v2154_v34 = vsel %vm2153_vm3, %v3244_v11, %v2150_v20 }
 0x589   : > { %2403 = vmatmul.bf16.gmra.mxu2 %v2333_v58  ;;  %v2269_v22 = vmul.f32 %v2154_v34, %v4155_v43  ;;  %v3128_v43 = vld [vmem:[%s4555_s4 + $0xf8] sm:$0xff] }
 0x58a   : > { %v2158_v63 = vmul.f32 0.5, %v2157_v32  ;;  %2530 = vmatpush.bf16.msra.mxu3 %v3128_v43  ;;  %v3122_v32 = vld [vmem:[%s4555_s4 + $0xc8] sm:$0xff] }
 0x58b   : > { %v2286_v10 = vmul.f32 %v4242_v25, %v2269_v22 }
 0x58c   : > { %v2159_v9 = vsub.f32 1.5, %v2158_v63 }
 0x58d   : > { %v4298_v24 = vadd.f32 %v4255_v0, %v2286_v10 }
 0x58e   : > { %v2160_v33 = vmul.f32 %v3246_v28, %v2159_v9  ;;  %2531 = vmatpush.bf16.msra.mxu3 %v3127_v38 }
 0x590   : > { %v2164_v53 = vsel %vm2163_vm5, %v3246_v28, %v2160_v33 }
 0x591   : > { %v2270_v62 = vmul.f32 %v2164_v53, %v4165_v55 }
 0x592   : > { %2532 = vmatpush.bf16.msra.mxu3 %v3126_v8 }
 0x593   : > { %v2287_v39 = vmul.f32 %v4242_v25, %v2270_v62  ;;  %v3121_v62 = vld [vmem:[%s4555_s4 + $0xc0] sm:$0xff] }
 0x595   : > { %v4301_v27 = vadd.f32 %v4255_v0, %v2287_v39 }
 0x597   : > { %v2334_v46 = vpack.c.bf16 %v4301_v27, %v4298_v24 }
 0x599   : > { %2408 = vmatmul.bf16.gmra.mxu2 %v2334_v46 }
 0x5cc   : > { %v2054_v12 = vpop.xlane.xlu1 %2053  ;;  %v1986_v55 = vpop.xlane.xlu0 %1985 }
 0x5cd   : > { %v2079_v17 = vmul.f32 %v2054_v12, %v3569_v19  ;;  %v2005_v56 = vmul.f32 %v1986_v55, %v3569_v19 }
 0x5cf   : > { %v2095_v35 = vadd.f32 1e-05, %v2079_v17  ;;  %v4314_v41 = vsub.f32 %v4204_v26, %v2005_v56  ;;  %v3125_v26 = vld [vmem:[%s4555_s4 + $0xe0] sm:$0xff] }
 0x5d0   : > { %2533 = vmatpush.bf16.msra.mxu3 %v3125_v26 }
 0x5d1   : > { %3247 = vrsqrt.f32 %v2095_v35  ;;  %v2037_v49 = vmul.f32 %v4314_v41, %v4314_v41  ;;  %vm2171_vm7 = vweird.f32 %v2095_v35 }
 0x5d3   : > { %2065 = vadd.xlane.f32.xlu2 %v2037_v49 }
 0x5d4   : > { %v1988_v60 = vpop.xlane.xlu1 %1987  ;;  %v2056_v6 = vpop.xlane.xlu2 %2055  ;;  %2534 = vmatpush.bf16.msra.mxu3 %v3124_v3 }
 0x5d5   : > { %v2006_v45 = vmul.f32 %v1988_v60, %v3569_v19  ;;  %v2080_v50 = vmul.f32 %v2056_v6, %v3569_v19 }
 0x5d7   : > { %v3248_v4 = vpop.eup %3247  ;;  %v4327_v54 = vsub.f32 %v4213_v37, %v2006_v45  ;;  %v2096_v23 = vadd.f32 1e-05, %v2080_v50 }
 0x5d8   : > { %v2166_v11 = vmul.f32 %v3248_v4, %v2095_v35  ;;  %vm2172_vm6 = vweird.f32 %v3248_v4  ;;  %2535 = vmatpush.bf16.msra.mxu3 %v3123_v42 }
 0x5d9   : > { %3249 = vrsqrt.f32 %v2096_v23  ;;  %v2038_v13 = vmul.f32 %v4327_v54, %v4327_v54  ;;  %vm2173_vm8 = vmor %vm2171_vm7, %vm2172_vm6  ;;  %vm2181_vm10 = vweird.f32 %v2096_v23 }
 0x5da   : > { %v2167_v5 = vmul.f32 %v3248_v4, %v2166_v11 }
 0x5db   : > { %2067 = vadd.xlane.f32.xlu0 %v2038_v13 }
 0x5dc   : > { %v2168_v14 = vmul.f32 0.5, %v2167_v5  ;;  %v1990_v48 = vpop.xlane.xlu1 %1989  ;;  %v2058_v40 = vpop.xlane.xlu2 %2057  ;;  %2536 = vmatpush.bf16.msra.mxu3 %v3122_v32 }
 0x5dd   : > { %v2007_v37 = vmul.f32 %v1990_v48, %v3569_v19  ;;  %v2081_v7 = vmul.f32 %v2058_v40, %v3569_v19 }
 0x5de   : > { %v2169_v18 = vsub.f32 1.5, %v2168_v14 }
 0x5df   : > { %v3250_v21 = vpop.eup %3249  ;;  %v4340_v16 = vsub.f32 %v4227_v15, %v2007_v37  ;;  %v2097_v59 = vadd.f32 1e-05, %v2081_v7 }
 0x5e0   : > { %v2170_v28 = vmul.f32 %v3248_v4, %v2169_v18  ;;  %v2176_v20 = vmul.f32 %v3250_v21, %v2096_v23  ;;  %vm2182_vm9 = vweird.f32 %v3250_v21  ;;  %2537 = vmatpush.bf16.msra.mxu3 %v3121_v62 }
 0x5e1   : > { %3251 = vrsqrt.f32 %v2097_v59  ;;  %v2039_v2 = vmul.f32 %v4340_v16, %v4340_v16  ;;  %vm2183_vm11 = vmor %vm2181_vm10, %vm2182_vm9  ;;  %vm2191_vm13 = vweird.f32 %v2097_v59 }
 0x5e2   : > { %v2177_v58 = vmul.f32 %v3250_v21, %v2176_v20  ;;  %v2174_v34 = vsel %vm2173_vm8, %v3248_v4, %v2170_v28 }
 0x5e3   : > { %2069 = vadd.xlane.f32.xlu1 %v2039_v2  ;;  %v2271_v39 = vmul.f32 %v2174_v34, %v4200_v30 }
 0x5e4   : > { %v2178_v15 = vmul.f32 0.5, %v2177_v58  ;;  %v2060_v63 = vpop.xlane.xlu0 %2059  ;;  %v1992_v9 = vpop.xlane.xlu2 %1991 }
 0x5e5   : > { %v2082_v22 = vmul.f32 %v2060_v63, %v3569_v19  ;;  %v2008_v33 = vmul.f32 %v1992_v9, %v3569_v19  ;;  %v2288_v30 = vmul.f32 %v4242_v25, %v2271_v39 }
 0x5e6   : > { %v2179_v53 = vsub.f32 1.5, %v2178_v15 }
 0x5e7   : > { %v3252_v10 = vpop.eup %3251  ;;  %v2098_v46 = vadd.f32 1e-05, %v2082_v22  ;;  %v4354_v43 = vsub.f32 %v4245_v36, %v2008_v33  ;;  %v4363_v26 = vadd.f32 %v4255_v0, %v2288_v30 }
 0x5e8   : > { %v2180_v12 = vmul.f32 %v3250_v21, %v2179_v53  ;;  %v2186_v55 = vmul.f32 %v3252_v10, %v2097_v59  ;;  %vm2192_vm12 = vweird.f32 %v3252_v10 }
 0x5e9   : > { %3253 = vrsqrt.f32 %v2098_v46  ;;  %v2040_v17 = vmul.f32 %v4354_v43, %v4354_v43  ;;  %vm2193_vm14 = vmor %vm2191_vm13, %vm2192_vm12  ;;  %vm2201_vm0 = vweird.f32 %v2098_v46 }
 0x5ea   : > { %v2184_v56 = vsel %vm2183_vm11, %v3250_v21, %v2180_v12  ;;  %v2187_v38 = vmul.f32 %v3252_v10, %v2186_v55 }
 0x5eb   : > { %v2272_v35 = vmul.f32 %v2184_v56, %v4211_v51  ;;  %2071 = vadd.xlane.f32.xlu2 %v2040_v17 }
 0x5ec   : > { %v2188_v49 = vmul.f32 0.5, %v2187_v38  ;;  %v2062_v8 = vpop.xlane.xlu0 %2061 }
 0x5ed   : > { %v2083_v36 = vmul.f32 %v2062_v8, %v3569_v19  ;;  %v2289_v60 = vmul.f32 %v4242_v25, %v2272_v35 }
 0x5ee   : > { %v2189_v6 = vsub.f32 1.5, %v2188_v49 }
 0x5ef   : > { %v3254_v45 = vpop.eup %3253  ;;  %v2099_v50 = vadd.f32 1e-05, %v2083_v36  ;;  %v4366_v4 = vadd.f32 %v4255_v0, %v2289_v60 }
 0x5f0   : > { %v2190_v23 = vmul.f32 %v3252_v10, %v2189_v6  ;;  %v2196_v51 = vmul.f32 %v3254_v45, %v2098_v46  ;;  %vm2202_vm15 = vweird.f32 %v3254_v45 }
 0x5f1   : > { %3255 = vrsqrt.f32 %v2099_v50  ;;  %v2335_v11 = vpack.c.bf16 %v4366_v4, %v4363_v26  ;;  %vm2203_vm2 = vmor %vm2201_vm0, %vm2202_vm15  ;;  %vm2211_vm1 = vweird.f32 %v2099_v50 }
 0x5f2   : > { %v2197_v13 = vmul.f32 %v3254_v45, %v2196_v51  ;;  %v2194_v5 = vsel %vm2193_vm14, %v3252_v10, %v2190_v23 }
 0x5f3   : > { %2413 = vmatmul.bf16.gmra.mxu2 %v2335_v11  ;;  %v2273_v7 = vmul.f32 %v2194_v5, %v4222_v61  ;;  %v4378_v61 = vld [vmem:[%s4556_s5 + $0x9] ss:$0 sm:$0xff] }
 0x5f4   : > { %v2198_v3 = vmul.f32 0.5, %v2197_v13  ;;  %v2064_v14 = vpop.xlane.xlu1 %2063 }
 0x5f5   : > { %v2084_v48 = vmul.f32 %v2064_v14, %v3569_v19  ;;  %v2290_v2 = vmul.f32 %v4242_v25, %v2273_v7 }
 0x5f6   : > { %v2199_v40 = vsub.f32 1.5, %v2198_v3 }
 0x5f7   : > { %v3256_v37 = vpop.eup %3255  ;;  %v2100_v18 = vadd.f32 1e-05, %v2084_v48  ;;  %v4381_v9 = vadd.f32 %v4255_v0, %v2290_v2 }
 0x5f8   : > { %v2200_v42 = vmul.f32 %v3254_v45, %v2199_v40  ;;  %v2206_v21 = vmul.f32 %v3256_v37, %v2099_v50  ;;  %vm2212_vm3 = vweird.f32 %v3256_v37 }
 0x5f9   : > { %3257 = vrsqrt.f32 %v2100_v18  ;;  %vm2213_vm4 = vmor %vm2211_vm1, %vm2212_vm3  ;;  %vm2221_vm6 = vweird.f32 %v2100_v18 }
 0x5fa   : > { %v2204_v59 = vsel %vm2203_vm2, %v3254_v45, %v2200_v42  ;;  %v2207_v28 = vmul.f32 %v3256_v37, %v2206_v21 }
 0x5fb   : > { %v2274_v20 = vmul.f32 %v2204_v59, %v4237_v31 }
 0x5fc   : > { %v2208_v58 = vmul.f32 0.5, %v2207_v28  ;;  %v2399_v32 = vpop.f32.mrf.mxu2 }
 0x5fd   : > { %v2291_v34 = vmul.f32 %v4242_v25, %v2274_v20  ;;  %v2400_v10 = vadd.f32 %v4378_v61, %v2399_v32 }
 0x5fe   : > { %v2209_v15 = vsub.f32 1.5, %v2208_v58 }
 0x5ff   : > { %v3258_v63 = vpop.eup %3257  ;;  %v4384_v22 = vadd.f32 %v4255_v0, %v2291_v34  ;;  %v2439_v38 = vmax.f32 %v2400_v10, 0.0 }
 0x600   : > { %v2210_v31 = vmul.f32 %v3256_v37, %v2209_v15  ;;  %v2216_v33 = vmul.f32 %v3258_v63, %v2100_v18  ;;  %vm2222_vm5 = vweird.f32 %v3258_v63 }
 0x601   : > { %v2336_v53 = vpack.c.bf16 %v4384_v22, %v4381_v9  ;;  %vm2223_vm7 = vmor %vm2221_vm6, %vm2222_vm5 }
 0x602   : > { %v2217_v62 = vmul.f32 %v3258_v63, %v2216_v33  ;;  %v2214_v39 = vsel %vm2213_vm4, %v3256_v37, %v2210_v31 }
 0x603   : > { %2418 = vmatmul.bf16.gmra.mxu2 %v2336_v53  ;;  %v2275_v56 = vmul.f32 %v2214_v39, %v4261_v57 }
 0x604   : > { %v2218_v46 = vmul.f32 0.5, %v2217_v62  ;;  %v2401_v12 = vpop.f32.mrf.mxu2 }
 0x605   : > { %v2402_v55 = vadd.f32 %v4378_v61, %v2401_v12  ;;  %v2292_v60 = vmul.f32 %v4242_v25, %v2275_v56 }
 0x606   : > { %v2219_v17 = vsub.f32 1.5, %v2218_v46 }
 0x607   : > { %v2440_v35 = vmax.f32 %v2402_v55, 0.0  ;;  %v4395_v50 = vadd.f32 %v4255_v0, %v2292_v60  ;;  %v3136_v55 = vld [vmem:[%s4557_s6 + $0x38] sm:$0xff] }
 0x608   : > { %v2220_v30 = vmul.f32 %v3258_v63, %v2219_v17  ;;  %2671 = vmatpush.bf16.msra.mxu0 %v3136_v55 }
 0x609   : > { %v2472_v49 = vpack.c.bf16 %v2440_v35, %v2439_v38 }
 0x60a   : > { %v2224_v8 = vsel %vm2223_vm7, %v3258_v63, %v2220_v30 }
 0x60b   : > { %v2276_v36 = vmul.f32 %v2224_v8, %v4277_v47  ;;  %2538 = vmatmul.bf16.vlgmr.msra.gmra.mxu3 %v2472_v49  ;;  %v3135_v49 = vld [vmem:[%s4557_s6 + $0x30] sm:$0xff] }
 0x60c   : > { %v2404_v6 = vpop.f32.mrf.mxu2  ;;  %2672 = vmatpush.bf16.msra.mxu0 %v3135_v49 }
 0x60d   : > { %v2293_v45 = vmul.f32 %v4242_v25, %v2276_v36  ;;  %v2405_v51 = vadd.f32 %v4378_v61, %v2404_v6 }
 0x60f   : > { %v4398_v57 = vadd.f32 %v4255_v0, %v2293_v45  ;;  %v2441_v13 = vmax.f32 %v2405_v51, 0.0 }
 0x611   : > { %v2337_v23 = vpack.c.bf16 %v4398_v57, %v4395_v50 }
 0x613   : > { %2423 = vmatmul.bf16.gmra.mxu2 %v2337_v23 }
 0x614   : > { %v2406_v11 = vpop.f32.mrf.mxu2 }
 0x615   : > { %v2407_v47 = vadd.f32 %v4378_v61, %v2406_v11 }
 0x617   : > { %v2442_v5 = vmax.f32 %v2407_v47, 0.0 }
 0x619   : > { %v2473_v3 = vpack.c.bf16 %v2442_v5, %v2441_v13 }
 0x61b   : > { %2543 = vmatmul.bf16.gmra.mxu3 %v2473_v3  ;;  %v3133_v3 = vld [vmem:[%s4557_s6 + $0x20] sm:$0xff] }
 0x61c   : > { %v2409_v14 = vpop.f32.mrf.mxu2 }
 0x61d   : > { %v2410_v48 = vadd.f32 %v4378_v61, %v2409_v14 }
 0x61f   : > { %v2443_v7 = vmax.f32 %v2410_v48, 0.0 }
 0x624   : > { %v2411_v40 = vpop.f32.mrf.mxu2 }
 0x625   : > { %v2412_v37 = vadd.f32 %v4378_v61, %v2411_v40 }
 0x627   : > { %v2444_v18 = vmax.f32 %v2412_v37, 0.0 }
 0x629   : > { %v2474_v42 = vpack.c.bf16 %v2444_v18, %v2443_v7 }
 0x62b   : > { %2548 = vmatmul.bf16.gmra.mxu3 %v2474_v42  ;;  %v3132_v42 = vld [vmem:[%s4557_s6 + $0x18] sm:$0xff] }
 0x646   : > { %v2066_v21 = vpop.xlane.xlu2 %2065 }
 0x647   : > { %v2085_v59 = vmul.f32 %v2066_v21, %v3569_v19 }
 0x649   : > { %v2101_v28 = vadd.f32 1e-05, %v2085_v59 }
 0x64b   : > { %3259 = vrsqrt.f32 %v2101_v28  ;;  %vm2231_vm9 = vweird.f32 %v2101_v28 }
 0x64e   : > { %v2068_v20 = vpop.xlane.xlu0 %2067 }
 0x64f   : > { %v2086_v2 = vmul.f32 %v2068_v20, %v3569_v19  ;;  %v3131_v20 = vld [vmem:[%s4557_s6 + $0x10] sm:$0xff] }
 0x651   : > { %v3260_v58 = vpop.eup %3259  ;;  %v2102_v32 = vadd.f32 1e-05, %v2086_v2 }
 0x652   : > { %v2226_v34 = vmul.f32 %v3260_v58, %v2101_v28  ;;  %vm2232_vm8 = vweird.f32 %v3260_v58 }
 0x653   : > { %3261 = vrsqrt.f32 %v2102_v32  ;;  %vm2233_vm10 = vmor %vm2231_vm9, %vm2232_vm8  ;;  %vm2241_vm12 = vweird.f32 %v2102_v32 }
 0x654   : > { %v2227_v15 = vmul.f32 %v3260_v58, %v2226_v34  ;;  %v3130_v34 = vld [vmem:[%s4557_s6 + $0x8] sm:$0xff] }
 0x656   : > { %v2228_v63 = vmul.f32 0.5, %v2227_v15  ;;  %v2070_v31 = vpop.xlane.xlu1 %2069 }
 0x657   : > { %v2087_v33 = vmul.f32 %v2070_v31, %v3569_v19 }
 0x658   : > { %v2229_v53 = vsub.f32 1.5, %v2228_v63 }
 0x659   : > { %v3262_v62 = vpop.eup %3261  ;;  %v2103_v10 = vadd.f32 1e-05, %v2087_v33 }
 0x65a   : > { %v2230_v39 = vmul.f32 %v3260_v58, %v2229_v53  ;;  %v2236_v46 = vmul.f32 %v3262_v62, %v2102_v32  ;;  %vm2242_vm11 = vweird.f32 %v3262_v62 }
 0x65b   : > { %3263 = vrsqrt.f32 %v2103_v10  ;;  %vm2243_vm13 = vmor %vm2241_vm12, %vm2242_vm11  ;;  %vm2251_vm15 = vweird.f32 %v2103_v10 }
 0x65c   : > { %v2237_v12 = vmul.f32 %v3262_v62, %v2236_v46  ;;  %v2234_v17 = vsel %vm2233_vm10, %v3260_v58, %v2230_v39 }
 0x65d   : > { %v2277_v36 = vmul.f32 %v2234_v17, %v4314_v41 }
 0x65e   : > { %v2238_v56 = vmul.f32 0.5, %v2237_v12  ;;  %v2072_v38 = vpop.xlane.xlu2 %2071 }
 0x65f   : > { %v2088_v35 = vmul.f32 %v2072_v38, %v3569_v19  ;;  %v3134_v19 = vld [vmem:[%s4557_s6 + $0x28] sm:$0xff]  ;;  %v2294_v47 = vmul.f32 %v4242_v25, %v2277_v36 }
 0x660   : > { %v2239_v30 = vsub.f32 1.5, %v2238_v56  ;;  %2673 = vmatpush.bf16.msra.mxu0 %v3134_v19 }
 0x661   : > { %v3264_v8 = vpop.eup %3263  ;;  %v2104_v60 = vadd.f32 1e-05, %v2088_v35  ;;  %v4427_v48 = vadd.f32 %v4255_v0, %v2294_v47 }
 0x662   : > { %v2240_v6 = vmul.f32 %v3262_v62, %v2239_v30  ;;  %v2246_v45 = vmul.f32 %v3264_v8, %v2103_v10  ;;  %vm2252_vm14 = vweird.f32 %v3264_v8 }
 0x663   : > { %3265 = vrsqrt.f32 %v2104_v60  ;;  %vm2253_vm0 = vmor %vm2251_vm15, %vm2252_vm14  ;;  %vm2261_vm3 = vweird.f32 %v2104_v60 }
 0x664   : > { %v2244_v23 = vsel %vm2243_vm13, %v3262_v62, %v2240_v6  ;;  %v2247_v51 = vmul.f32 %v3264_v8, %v2246_v45  ;;  %2674 = vmatpush.bf16.msra.mxu0 %v3133_v3 }
 0x665   : > { %v2278_v11 = vmul.f32 %v2244_v23, %v4327_v54 }
 0x666   : > { %v2248_v13 = vmul.f32 0.5, %v2247_v51 }
 0x667   : > { %v2295_v41 = vmul.f32 %v4242_v25, %v2278_v11 }
 0x668   : > { %v2249_v5 = vsub.f32 1.5, %v2248_v13  ;;  %2675 = vmatpush.bf16.msra.mxu0 %v3132_v42 }
 0x669   : > { %v3266_v14 = vpop.eup %3265  ;;  %v4430_v40 = vadd.f32 %v4255_v0, %v2295_v41 }
 0x66a   : > { %v2250_v37 = vmul.f32 %v3264_v8, %v2249_v5  ;;  %v2256_v54 = vmul.f32 %v3266_v14, %v2104_v60  ;;  %vm2262_vm2 = vweird.f32 %v3266_v14 }
 0x66b   : > { %v2338_v7 = vpack.c.bf16 %v4430_v40, %v4427_v48  ;;  %vm2263_vm1 = vmor %vm2261_vm3, %vm2262_vm2 }
 0x66c   : > { %v2257_v18 = vmul.f32 %v3266_v14, %v2256_v54  ;;  %v2254_v21 = vsel %vm2253_vm0, %v3264_v8, %v2250_v37  ;;  %2676 = vmatpush.bf16.msra.mxu0 %v3131_v20  ;;  %v4465_v8 = vld [vmem:[%s4556_s5 + $0xa] ss:$0 sm:$0xff] }
 0x66d   : > { %2428 = vmatmul.bf16.gmra.mxu2 %v2338_v7  ;;  %v2279_v2 = vmul.f32 %v2254_v21, %v4340_v16  ;;  %v3129_v16 = vld [vmem:[%s4557_s6] sm:$0xff] }
 0x66e   : > { %v2258_v59 = vmul.f32 0.5, %v2257_v18 }
 0x66f   : > { %v2296_v63 = vmul.f32 %v4242_v25, %v2279_v2 }
 0x670   : > { %v2259_v28 = vsub.f32 1.5, %v2258_v59  ;;  %2677 = vmatpush.bf16.msra.mxu0 %v3130_v34 }
 0x671   : > { %v4451_v53 = vadd.f32 %v4255_v0, %v2296_v63 }
 0x672   : > { %v2260_v58 = vmul.f32 %v3266_v14, %v2259_v28 }
 0x674   : > { %v2264_v32 = vsel %vm2263_vm1, %v3266_v14, %v2260_v58  ;;  %2678 = vmatpush.bf16.msra.mxu0 %v3129_v16 }
 0x675   : > { %v2280_v15 = vmul.f32 %v2264_v32, %v4354_v43 }
 0x676   : > { %v2414_v31 = vpop.f32.mrf.mxu2 }
 0x677   : > { %v2297_v33 = vmul.f32 %v4242_v25, %v2280_v15  ;;  %v2415_v10 = vadd.f32 %v4378_v61, %v2414_v31 }
 0x679   : > { %v4454_v62 = vadd.f32 %v4255_v0, %v2297_v33  ;;  %v2445_v46 = vmax.f32 %v2415_v10, 0.0 }
 0x67b   : > { %v2339_v43 = vpack.c.bf16 %v4454_v62, %v4451_v53 }
 0x67d   : > { %2433 = vmatmul.bf16.gmra.mxu2 %v2339_v43 }
 0x67e   : > { %v2416_v39 = vpop.f32.mrf.mxu2 }
 0x67f   : > { %v2417_v25 = vadd.f32 %v4378_v61, %v2416_v39 }
 0x681   : > { %v2446_v12 = vmax.f32 %v2417_v25, 0.0 }
 0x683   : > { %v2475_v55 = vpack.c.bf16 %v2446_v12, %v2445_v46 }
 0x685   : > { %2553 = vmatmul.bf16.gmra.mxu3 %v2475_v55 }
 0x686   : > { %v2419_v17 = vpop.f32.mrf.mxu2 }
 0x687   : > { %v2420_v56 = vadd.f32 %v4378_v61, %v2419_v17 }
 0x689   : > { %v2447_v30 = vmax.f32 %v2420_v56, 0.0 }
 0x68e   : > { %v2421_v38 = vpop.f32.mrf.mxu2  ;;  %v2539_v0 = vpop.f32.mrf.mxu3 }
 0x68f   : > { %v2422_v35 = vadd.f32 %v4378_v61, %v2421_v38  ;;  %v2540_v60 = vadd.f32 %v4465_v8, %v2539_v0 }
 0x691   : > { %v2448_v49 = vmax.f32 %v2422_v35, 0.0  ;;  %v2579_v51 = vadd.f32 %v2540_v60, %v4264_v1  ;;  %v4492_v35 = vld [vmem:[%s4558_s7] ss:$0 sm:$0xff] }
 0x693   : > { %v2476_v36 = vpack.c.bf16 %v2448_v49, %v2447_v30 }
 0x695   : > { %2558 = vmatmul.bf16.gmra.mxu3 %v2476_v36 }
 0x696   : > { %v2424_v6 = vpop.f32.mrf.mxu2  ;;  %v2541_v45 = vpop.f32.mrf.mxu3 }
 0x697   : > { %v2542_v23 = vadd.f32 %v4465_v8, %v2541_v45  ;;  %v2425_v47 = vadd.f32 %v4378_v61, %v2424_v6 }
 0x699   : > { %v2580_v19 = vadd.f32 %v2542_v23, %v4267_v44  ;;  %v2449_v3 = vmax.f32 %v2425_v47, 0.0 }
 0x69b   : > { %v2611_v11 = vpack.c.bf16 %v2580_v19, %v2579_v51 }
 0x69d   : > { %2679 = vmatmul.bf16.vlgmr.msra.gmra.mxu0 %v2611_v11 }
 0x69e   : > { %v2426_v13 = vpop.f32.mrf.mxu2  ;;  %v2544_v41 = vpop.f32.mrf.mxu3 }
 0x69f   : > { %v2427_v5 = vadd.f32 %v4378_v61, %v2426_v13  ;;  %v2545_v54 = vadd.f32 %v4465_v8, %v2544_v41 }
 0x6a1   : > { %v2450_v14 = vmax.f32 %v2427_v5, 0.0  ;;  %v2581_v1 = vadd.f32 %v2545_v54, %v4286_v29 }
 0x6a3   : > { %v2477_v37 = vpack.c.bf16 %v2450_v14, %v2449_v3 }
 0x6a5   : > { %2563 = vmatmul.bf16.gmra.mxu3 %v2477_v37 }
 0x6a6   : > { %v2546_v7 = vpop.f32.mrf.mxu3 }
 0x6a7   : > { %v2547_v18 = vadd.f32 %v4465_v8, %v2546_v7 }
 0x6a9   : > { %v2582_v44 = vadd.f32 %v2547_v18, %v4289_v52 }
 0x6ab   : > { %v2612_v42 = vpack.c.bf16 %v2582_v44, %v2581_v1 }
 0x6ad   : > { %2684 = vmatmul.bf16.gmra.mxu0 %v2612_v42 }
 0x6ae   : > { %v2549_v21 = vpop.f32.mrf.mxu3 }
 0x6af   : > { %v2550_v59 = vadd.f32 %v4465_v8, %v2549_v21 }
 0x6b1   : > { %v2583_v2 = vadd.f32 %v2550_v59, %v4298_v24 }
 0x6b6   : > { %v2551_v28 = vpop.f32.mrf.mxu3 }
 0x6b7   : > { %v2552_v20 = vadd.f32 %v4465_v8, %v2551_v28 }
 0x6b9   : > { %v2584_v58 = vadd.f32 %v2552_v20, %v4301_v27 }
 0x6bb   : > { %v2613_v32 = vpack.c.bf16 %v2584_v58, %v2583_v2 }
 0x6bd   : > { %2689 = vmatmul.bf16.gmra.mxu0 %v2613_v32 }
 0x6f0   : > { %v2429_v34 = vpop.f32.mrf.mxu2 }
 0x6f1   : > { %v2430_v15 = vadd.f32 %v4378_v61, %v2429_v34 }
 0x6f3   : > { %v2451_v63 = vmax.f32 %v2430_v15, 0.0 }
 0x6f8   : > { %v2431_v29 = vpop.f32.mrf.mxu2 }
 0x6f9   : > { %v2432_v52 = vadd.f32 %v4378_v61, %v2431_v29 }
 0x6fb   : > { %v2452_v31 = vmax.f32 %v2432_v52, 0.0 }
 0x6fd   : > { %v2478_v33 = vpack.c.bf16 %v2452_v31, %v2451_v63 }
 0x6ff   : > { %2568 = vmatmul.bf16.gmra.mxu3 %v2478_v33 }
 0x700   : > { %v2434_v16 = vpop.f32.mrf.mxu2 }
 0x701   : > { %v2435_v43 = vadd.f32 %v4378_v61, %v2434_v16 }
 0x703   : > { %v2453_v39 = vmax.f32 %v2435_v43, 0.0 }
 0x708   : > { %v2436_v10 = vpop.f32.mrf.mxu2  ;;  %v2554_v24 = vpop.f32.mrf.mxu3 }
 0x709   : > { %v2437_v27 = vadd.f32 %v4378_v61, %v2436_v10  ;;  %v2555_v12 = vadd.f32 %v4465_v8, %v2554_v24 }
 0x70b   : > { %v2454_v25 = vmax.f32 %v2437_v27, 0.0  ;;  %v2585_v56 = vadd.f32 %v2555_v12, %v4363_v26 }
 0x70d   : > { %v2479_v46 = vpack.c.bf16 %v2454_v25, %v2453_v39 }
 0x70f   : > { %2573 = vmatmul.bf16.gmra.mxu3 %v2479_v46 }
 0x710   : > { %v2556_v55 = vpop.f32.mrf.mxu3 }
 0x711   : > { %v2557_v17 = vadd.f32 %v4465_v8, %v2556_v55 }
 0x713   : > { %v2586_v38 = vadd.f32 %v2557_v17, %v4366_v4 }
 0x715   : > { %v2614_v0 = vpack.c.bf16 %v2586_v38, %v2585_v56 }
 0x717   : > { %2694 = vmatmul.bf16.gmra.mxu0 %v2614_v0 }
 0x718   : > { %v2559_v61 = vpop.f32.mrf.mxu3 }
 0x719   : > { %v2560_v4 = vadd.f32 %v4465_v8, %v2559_v61 }
 0x71a   : > { %v2680_v30 = vpop.f32.mrf.mxu0 }
 0x71b   : > { %v2681_v26 = vadd.f32 %v4492_v35, %v2680_v30  ;;  %v2587_v6 = vadd.f32 %v2560_v4, %v4381_v9 }
 0x71d   : > { %2720 = vst [vmem:[%s4498_s15] sm:$0xff] %v2681_v26 }
 0x720   : > { %v2561_v49 = vpop.f32.mrf.mxu3 }
 0x721   : > { %v2562_v36 = vadd.f32 %v4465_v8, %v2561_v49 }
 0x722   : > { %v2682_v60 = vpop.f32.mrf.mxu0 }
 0x723   : > { %v2588_v45 = vadd.f32 %v2562_v36, %v4384_v22  ;;  %v2683_v23 = vadd.f32 %v4492_v35, %v2682_v60 }
 0x725   : > { %2721 = vst [vmem:[%s4498_s15 + $0x8] sm:$0xff] %v2683_v23  ;;  %v2615_v51 = vpack.c.bf16 %v2588_v45, %v2587_v6 }
 0x727   : > { %2699 = vmatmul.bf16.gmra.mxu0 %v2615_v51 }
 0x728   : > { %v2564_v19 = vpop.f32.mrf.mxu3 }
 0x729   : > { %v2565_v13 = vadd.f32 %v4465_v8, %v2564_v19 }
 0x72a   : > { %v2685_v11 = vpop.f32.mrf.mxu0 }
 0x72b   : > { %v2686_v47 = vadd.f32 %v4492_v35, %v2685_v11  ;;  %v2589_v22 = vadd.f32 %v2565_v13, %v4395_v50 }
 0x72d   : > { %2722 = vst [vmem:[%s4498_s15 + $0x10] sm:$0xff] %v2686_v47 }
 0x730   : > { %v2566_v41 = vpop.f32.mrf.mxu3 }
 0x731   : > { %v2567_v9 = vadd.f32 %v4465_v8, %v2566_v41 }
 0x732   : > { %v2687_v5 = vpop.f32.mrf.mxu0 }
 0x733   : > { %v2590_v3 = vadd.f32 %v2567_v9, %v4398_v57  ;;  %v2688_v14 = vadd.f32 %v4492_v35, %v2687_v5 }
 0x735   : > { %2723 = vst [vmem:[%s4498_s15 + $0x18] sm:$0xff] %v2688_v14  ;;  %v2616_v37 = vpack.c.bf16 %v2590_v3, %v2589_v22 }
 0x737   : > { %2704 = vmatmul.bf16.gmra.mxu0 %v2616_v37 }
 0x73a   : > { %v2690_v54 = vpop.f32.mrf.mxu0 }
 0x73b   : > { %v2691_v7 = vadd.f32 %v4492_v35, %v2690_v54 }
 0x73d   : > { %2724 = vst [vmem:[%s4498_s15 + $0x20] sm:$0xff] %v2691_v7 }
 0x742   : > { %v2692_v18 = vpop.f32.mrf.mxu0 }
 0x743   : > { %v2693_v1 = vadd.f32 %v4492_v35, %v2692_v18 }
 0x745   : > { %2725 = vst [vmem:[%s4498_s15 + $0x28] sm:$0xff] %v2693_v1 }
 0x782   : > { %v2569_v44 = vpop.f32.mrf.mxu3 }
 0x783   : > { %v2570_v42 = vadd.f32 %v4465_v8, %v2569_v44 }
 0x785   : > { %v2591_v21 = vadd.f32 %v2570_v42, %v4427_v48 }
 0x78a   : > { %v2571_v50 = vpop.f32.mrf.mxu3 }
 0x78b   : > { %v2572_v57 = vadd.f32 %v4465_v8, %v2571_v50 }
 0x78d   : > { %v2592_v59 = vadd.f32 %v2572_v57, %v4430_v40 }
 0x78f   : > { %v2617_v28 = vpack.c.bf16 %v2592_v59, %v2591_v21 }
 0x791   : > { %2709 = vmatmul.bf16.gmra.mxu0 %v2617_v28 }
 0x792   : > { %v2574_v20 = vpop.f32.mrf.mxu3 }
 0x793   : > { %v2575_v32 = vadd.f32 %v4465_v8, %v2574_v20 }
 0x794   : > { %v2695_v2 = vpop.f32.mrf.mxu0 }
 0x795   : > { %v2696_v58 = vadd.f32 %v4492_v35, %v2695_v2  ;;  %v2593_v48 = vadd.f32 %v2575_v32, %v4451_v53 }
 0x797   : > { %2726 = vst [vmem:[%s4498_s15 + $0x30] sm:$0xff] %v2696_v58 }
 0x79a   : > { %v2576_v34 = vpop.f32.mrf.mxu3 }
 0x79b   : > { %v2577_v15 = vadd.f32 %v4465_v8, %v2576_v34 }
 0x79c   : > { %v2697_v29 = vpop.f32.mrf.mxu0 }
 0x79d   : > { %v2594_v40 = vadd.f32 %v2577_v15, %v4454_v62  ;;  %v2698_v52 = vadd.f32 %v4492_v35, %v2697_v29 }
 0x79f   : > { %2727 = vst [vmem:[%s4498_s15 + $0x38] sm:$0xff] %v2698_v52  ;;  %v2618_v63 = vpack.c.bf16 %v2594_v40, %v2593_v48 }
 0x7a1   : > { %2714 = vmatmul.bf16.gmra.mxu0 %v2618_v63 }
 0x7a4   : > { %v2700_v31 = vpop.f32.mrf.mxu0 }
 0x7a5   : > { %v2701_v33 = vadd.f32 %v4492_v35, %v2700_v31 }
 0x7a7   : > { %2728 = vst [vmem:[%s4498_s15 + $0x40] sm:$0xff] %v2701_v33 }
 0x7ac   : > { %v2702_v16 = vpop.f32.mrf.mxu0 }
 0x7ad   : > { %v2703_v8 = vadd.f32 %v4492_v35, %v2702_v16 }
 0x7af   : > { %2729 = vst [vmem:[%s4498_s15 + $0x48] sm:$0xff] %v2703_v8 }
 0x7b4   : > { %v2705_v53 = vpop.f32.mrf.mxu0 }
 0x7b5   : > { %v2706_v62 = vadd.f32 %v4492_v35, %v2705_v53 }
 0x7b7   : > { %2730 = vst [vmem:[%s4498_s15 + $0x50] sm:$0xff] %v2706_v62 }
 0x7bc   : > { %v2707_v43 = vpop.f32.mrf.mxu0 }
 0x7bd   : > { %v2708_v10 = vadd.f32 %v4492_v35, %v2707_v43 }
 0x7bf   : > { %2731 = vst [vmem:[%s4498_s15 + $0x58] sm:$0xff] %v2708_v10 }
 0x80e   : > { %v2710_v24 = vpop.f32.mrf.mxu0 }
 0x80f   : > { %v2711_v27 = vadd.f32 %v4492_v35, %v2710_v24 }
 0x811   : > { %2732 = vst [vmem:[%s4498_s15 + $0x60] sm:$0xff] %v2711_v27 }
 0x816   : > { %v2712_v39 = vpop.f32.mrf.mxu0 }
 0x817   : > { %v2713_v25 = vadd.f32 %v4492_v35, %v2712_v39 }
 0x819   : > { %2733 = vst [vmem:[%s4498_s15 + $0x68] sm:$0xff] %v2713_v25 }
 0x81e   : > { %v2715_v46 = vpop.f32.mrf.mxu0 }
 0x81f   : > { %v2716_v12 = vadd.f32 %v4492_v35, %v2715_v46 }
 0x821   : > { %2734 = vst [vmem:[%s4498_s15 + $0x70] sm:$0xff] %v2716_v12 }
 0x826   : > { %v2717_v55 = vpop.f32.mrf.mxu0 }
 0x827   : > { %v2718_v17 = vadd.f32 %v4492_v35, %v2717_v55 }
 0x829   : > { %2735 = vst [vmem:[%s4498_s15 + $0x78] sm:$0xff] %v2718_v17 }
 0x82a PF: > { %s18_s27 = sadd.s32 1, %s3273_s27  }
 0x82b   : > { %p15_p4 = scmp.ge.s32.totalorder %s18_s27, 4  }
 0x82d   :  { %17 = sbr.rel (!%p15_p4) target bundleno = 1 (0x1), region = 88 }

</bundles_post_ra>
